<compile_context>
chip_gen: v6e
topology: v6e:2x2x1
jax: 0.10.0
libtpu: 0.0.40
codegen_flags: <defaults>
</compile_context>

<pallas_src>
import functools

import jax
import jax.numpy as jnp
from jax.experimental import pallas as pl
from jax.experimental.pallas import tpu as pltpu


def _sslice(start, size, stride):
    """Static slice helper: plain ds for stride 1, strided ds otherwise."""
    if stride == 1:
        return pl.ds(start, size)
    return pl.ds(start, size, stride)


def _rescat_kernel(x_ref, w1_ref, b1_ref, w2_ref, b2_ref, wt_ref, bt_ref,
                   o_ref, pad1_ref, pad2_ref, *, stride, v_th, H, W, Ho, Wo):
    # x_ref:   (1, H, W, Cin)      one image, NHWC
    # w1_ref:  (9, Cin, C1)        conv1 taps (BN1 folded), tap t = kh*3 + kw
    # b1_ref:  (1, C1)             conv1 bias (BN1 + pad constant folded)
    # w2_ref:  (9, C1, C2)         conv2 taps (BN2 folded)
    # b2_ref:  (1, C2)
    # wt_ref:  (Cin, Ct)           1x1 trans conv (BN_trans folded)
    # bt_ref:  (1, Ct)
    # o_ref:   (1, Ho*Wo, C2+Ct)   spikes, channels-last, [conv2 path | trans path]
    # pad1_ref:(H+2, W+2, Cin)     zero-padded x          (VMEM scratch)
    # pad2_ref:(H+2, W+2, C1)      zero-padded spike1     (VMEM scratch)
    Cin = x_ref.shape[3]
    C1 = w1_ref.shape[2]
    C2 = w2_ref.shape[2]
    Ct = wt_ref.shape[1]
    f32 = jnp.float32
    taps = [(dh, dw) for dh in range(3) for dw in range(3)]

    # ConstantPad2d(1, 0) on x.  (BN applied after pad is folded into W/b exactly.)
    pad1_ref[...] = jnp.zeros(pad1_ref.shape, f32)
    pad1_ref[1:H + 1, 1:W + 1, :] = x_ref[0].astype(f32)

    # conv1: 3x3 / stride 1  ==  sum of 9 shifted (H*W, Cin) @ (Cin, C1) matmuls.
    acc1 = jnp.zeros((H * W, C1), f32)
    for t, (dh, dw) in enumerate(taps):
        patch = pad1_ref[dh:dh + H, dw:dw + W, :].reshape(H * W, Cin)
        acc1 = acc1 + jnp.dot(patch, w1_ref[t], preferred_element_type=f32)
    spike1 = (acc1 + b1_ref[...] >= v_th).astype(f32)          # IF neuron fire

    # ConstantPad2d(1, 0) on spike1.
    pad2_ref[...] = jnp.zeros(pad2_ref.shape, f32)
    pad2_ref[1:H + 1, 1:W + 1, :] = spike1.reshape(H, W, C1)

    # conv2: 3x3 / stride s  ==  sum of 9 strided shifted (Ho*Wo, C1) @ (C1, C2) matmuls.
    acc2 = jnp.zeros((Ho * Wo, C2), f32)
    for t, (dh, dw) in enumerate(taps):
        patch = pad2_ref[_sslice(dh, Ho, stride), _sslice(dw, Wo, stride), :]
        acc2 = acc2 + jnp.dot(patch.reshape(Ho * Wo, C1), w2_ref[t],
                              preferred_element_type=f32)
    spike2 = (acc2 + b2_ref[...] >= v_th).astype(o_ref.dtype)

    # trans path: 1x1 conv with stride s == channel matmul on the spatial subsample of x.
    xs = pad1_ref[_sslice(1, Ho, stride), _sslice(1, Wo, stride), :]
    yt = jnp.dot(xs.reshape(Ho * Wo, Cin), wt_ref[...], preferred_element_type=f32)
    spike_t = (yt + bt_ref[...] >= v_th).astype(o_ref.dtype)

    # torch.cat([out, identity], dim=1)  (channels-last here).
    o_ref[0, :, 0:C2] = spike2
    o_ref[0, :, C2:C2 + Ct] = spike_t


def _fold_bn(w, b, gamma, beta, mean, var, eps):
    """Fold eval-mode BatchNorm (applied to the conv *input*, incl. a zero-padded border)
    into the conv weight and bias.  Exact algebra, done once on tiny arrays."""
    scale = gamma / jnp.sqrt(var + eps)          # (Cin,)
    shift = beta - mean * scale                  # (Cin,)
    w_f = w * scale[None, :, None, None]
    b_f = b + jnp.einsum("ocij,c->o", w, shift)  # constant-field contribution
    return w_f, b_f


def two_layers_res_cat_block(x,
                             bn1, conv1_w, conv1_b,
                             bn2, conv2_w, conv2_b,
                             bnt, convt_w, convt_b,
                             *, stride=1, eps=1e-5, v_th=1.0):
    """x: (N, Cin, H, W).  bn* = (gamma, beta, running_mean, running_var).
    Returns (N, planes + planes//2, Ho, Wo) with Ho = Wo = (H-1)//stride + 1."""
    N, Cin, H, W = x.shape
    C1 = conv1_w.shape[0]           # == Cin
    C2 = conv2_w.shape[0]           # planes
    Ct = convt_w.shape[0]           # planes // 2
    Ctot = C2 + Ct
    Ho = (H - 1) // stride + 1
    Wo = (W - 1) // stride + 1

    # Fold BatchNorms into the convs (pre-cast in the wrapper; no in-kernel casts of weights).
    w1f, b1f = _fold_bn(conv1_w, conv1_b, *bn1, eps)
    w2f, b2f = _fold_bn(conv2_w, conv2_b, *bn2, eps)
    wtf, btf = _fold_bn(convt_w, convt_b, *bnt, eps)

    # (O, C, 3, 3) -> (9, C, O): tap-major for in-kernel shifted matmuls.
    w1k = jnp.transpose(w1f, (2, 3, 1, 0)).reshape(9, Cin, C1).astype(jnp.float32)
    w2k = jnp.transpose(w2f, (2, 3, 1, 0)).reshape(9, C1, C2).astype(jnp.float32)
    wtk = wtf.reshape(Ct, Cin).T.astype(jnp.float32)
    b1k = b1f.reshape(1, C1).astype(jnp.float32)
    b2k = b2f.reshape(1, C2).astype(jnp.float32)
    btk = btf.reshape(1, Ct).astype(jnp.float32)

    # Single layout pass NCHW -> NHWC (channels last -> channel matmuls in the kernel).
    x_nhwc = jnp.transpose(x, (0, 2, 3, 1))

    kernel = functools.partial(_rescat_kernel, stride=stride, v_th=v_th,
                               H=H, W=W, Ho=Ho, Wo=Wo)

    out_flat = pl.pallas_call(
        kernel,
        out_shape=jax.ShapeDtypeStruct((N, Ho * Wo, Ctot), x.dtype),
        grid_spec=pltpu.PrefetchScalarGridSpec(
            num_scalar_prefetch=0,
            grid=(N,),
            in_specs=[
                pl.BlockSpec((1, H, W, Cin), lambda n: (n, 0, 0, 0)),   # x (per image)
                pl.BlockSpec((9, Cin, C1), lambda n: (0, 0, 0)),        # w1 (grid-invariant)
                pl.BlockSpec((1, C1), lambda n: (0, 0)),                # b1
                pl.BlockSpec((9, C1, C2), lambda n: (0, 0, 0)),         # w2
                pl.BlockSpec((1, C2), lambda n: (0, 0)),                # b2
                pl.BlockSpec((Cin, Ct), lambda n: (0, 0)),              # w_trans
                pl.BlockSpec((1, Ct), lambda n: (0, 0)),                # b_trans
            ],
            out_specs=pl.BlockSpec((1, Ho * Wo, Ctot), lambda n: (n, 0, 0)),
            scratch_shapes=[
                pltpu.VMEM((H + 2, W + 2, Cin), jnp.float32),   # zero-padded x
                pltpu.VMEM((H + 2, W + 2, C1), jnp.float32),    # zero-padded spike1
            ],
        ),
        compiler_params=pltpu.CompilerParams(
            dimension_semantics=("parallel",)),
    )(x_nhwc, w1k, b1k, w2k, b2k, wtk, btk)

    # Back to NCHW.
    return out_flat.reshape(N, Ho, Wo, Ctot).transpose(0, 3, 1, 2)


def _reference(x, bn1, w1, b1, bn2, w2, b2, bnt, wt, bt, *, stride, eps=1e-5, v_th=1.0):
    """Pure-JAX transliteration of the PyTorch forward (eval-mode BN, IF neuron)."""
    def bn(y, p):
        g, be, m, v = p
        s = g / jnp.sqrt(v + eps)
        return y * s[None, :, None, None] + (be - m * s)[None, :, None, None]

    def conv(y, w, b, s):
        o = jax.lax.conv_general_dilated(
            y, w, window_strides=(s, s), padding="VALID",
            dimension_numbers=("NCHW", "OIHW", "NCHW"))
        return o + b[None, :, None, None]

    def spike(v):
        return (v >= v_th).astype(x.dtype)

    pad = lambda y: jnp.pad(y, ((0, 0), (0, 0), (1, 1), (1, 1)))

    identity = spike(conv(bn(x, bnt), wt, bt, stride))
    out = spike(conv(bn(pad(x), bn1), w1, b1, 1))
    out = spike(conv(bn(pad(out), bn2), w2, b2, stride))
    return jnp.concatenate([out, identity], axis=1)


if __name__ == "__main__":
    key = jax.random.PRNGKey(0)
    N, Cin, H, W = 2, 4, 16, 16
    planes, stride = 8, 2

    ks = jax.random.split(key, 19)

    def bn_p(idx, C):
        return (jax.random.normal(ks[idx], (C,), jnp.float32) * 0.1 + 1.0,
                jax.random.normal(ks[idx + 1], (C,), jnp.float32) * 0.1,
                jax.random.normal(ks[idx + 2], (C,), jnp.float32) * 0.1,
                jnp.abs(jax.random.normal(ks[idx + 3], (C,), jnp.float32)) + 0.5)

    x = jax.random.normal(ks[0], (N, Cin, H, W), jnp.float32)
    bn1 = bn_p(1, Cin)
    w1 = jax.random.normal(ks[5], (Cin, Cin, 3, 3), jnp.float32) * 0.3
    b1 = jax.random.normal(ks[6], (Cin,), jnp.float32) * 0.1
    bn2 = bn_p(7, Cin)
    w2 = jax.random.normal(ks[11], (planes, Cin, 3, 3), jnp.float32) * 0.3
    b2 = jax.random.normal(ks[12], (planes,), jnp.float32) * 0.1
    bnt = bn_p(13, Cin)
    wt = jax.random.normal(ks[17], (planes // 2, Cin, 1, 1), jnp.float32) * 0.5
    bt = jax.random.normal(ks[18], (planes // 2,), jnp.float32) * 0.1

    # stride = 2 (down-sampling block)
    out = two_layers_res_cat_block(x, bn1, w1, b1, bn2, w2, b2, bnt, wt, bt,
                                   stride=stride)
    out = jax.block_until_ready(out)
    ref = _reference(x, bn1, w1, b1, bn2, w2, b2, bnt, wt, bt, stride=stride)
    Ho, Wo = (H - 1) // stride + 1, (W - 1) // stride + 1
    assert out.shape == (N, planes + planes // 2, Ho, Wo), out.shape
    assert jnp.array_equal(out, ref), "mismatch vs reference (stride=2)"

    # stride = 1 (same-resolution block)
    out1 = jax.block_until_ready(
        two_layers_res_cat_block(x, bn1, w1, b1, bn2, w2, b2, bnt, wt, bt, stride=1))
    ref1 = _reference(x, bn1, w1, b1, bn2, w2, b2, bnt, wt, bt, stride=1)
    assert out1.shape == (N, planes + planes // 2, H, W), out1.shape
    assert jnp.array_equal(out1, ref1), "mismatch vs reference (stride=1)"

    print("KERNEL_OK")
</pallas_src>

<mosaic_0001>
module attributes {stable_mosaic.version = 11 : i64} {
  func.func @_rescat_kernel(%arg0: i32, %arg1: memref<1x16x16x4xf32, #tpu.memory_space<vmem>>, %arg2: memref<9x4x4xf32, #tpu.memory_space<vmem>>, %arg3: memref<1x4xf32, #tpu.memory_space<vmem>>, %arg4: memref<9x4x8xf32, #tpu.memory_space<vmem>>, %arg5: memref<1x8xf32, #tpu.memory_space<vmem>>, %arg6: memref<4x4xf32, #tpu.memory_space<vmem>>, %arg7: memref<1x4xf32, #tpu.memory_space<vmem>>, %arg8: memref<1x64x12xf32, #tpu.memory_space<vmem>>, %arg9: memref<18x18x4xf32, #tpu.memory_space<vmem>>, %arg10: memref<18x18x4xf32, #tpu.memory_space<vmem>>) attributes {dimension_semantics = [#tpu.dimension_semantics<parallel>], iteration_bounds = array<i64: 2>, scalar_prefetch = 0 : i64, scratch_operands = 2 : i64, tpu.core_type = #tpu.core_type<tc>, window_params = [{transform_indices = @transform_0, window_bounds = array<i64: 1, 16, 16, 4>}, {pipeline_mode = #tpu.pipeline_mode<synchronous>, transform_indices = @transform_1, window_bounds = array<i64: 9, 4, 4>}, {pipeline_mode = #tpu.pipeline_mode<synchronous>, transform_indices = @transform_2, window_bounds = array<i64: 1, 4>}, {pipeline_mode = #tpu.pipeline_mode<synchronous>, transform_indices = @transform_3, window_bounds = array<i64: 9, 4, 8>}, {pipeline_mode = #tpu.pipeline_mode<synchronous>, transform_indices = @transform_4, window_bounds = array<i64: 1, 8>}, {pipeline_mode = #tpu.pipeline_mode<synchronous>, transform_indices = @transform_5, window_bounds = array<i64: 4, 4>}, {pipeline_mode = #tpu.pipeline_mode<synchronous>, transform_indices = @transform_6, window_bounds = array<i64: 1, 4>}, {transform_indices = @transform_7, window_bounds = array<i64: 1, 64, 12>}]} {
    %cst = arith.constant 0.000000e+00 : f32
    %0 = vector.broadcast %cst : f32 to vector<18x18x4xf32>
    %c0 = arith.constant 0 : index
    %c0_0 = arith.constant 0 : index
    %c0_1 = arith.constant 0 : index
    %1 = vector.load %arg9[%c0, %c0_0, %c0_1] : memref<18x18x4xf32, #tpu.memory_space<vmem>>, vector<18x18x4xf32>
    tpu.vector_store %arg9[%c0, %c0_0, %c0_1], %0 {strides = array<i32>} : memref<18x18x4xf32, #tpu.memory_space<vmem>>, vector<18x18x4xf32>,
    %c0_2 = arith.constant 0 : index
    %c0_3 = arith.constant 0 : index
    %c0_4 = arith.constant 0 : index
    %c0_5 = arith.constant 0 : index
    %2 = vector.load %arg1[%c0_2, %c0_3, %c0_4, %c0_5] : memref<1x16x16x4xf32, #tpu.memory_space<vmem>>, vector<1x16x16x4xf32>
    %3 = vector.shape_cast %2 : vector<1x16x16x4xf32> to vector<16x16x4xf32>
    %c1 = arith.constant 1 : index
    %c1_6 = arith.constant 1 : index
    %c0_7 = arith.constant 0 : index
    %4 = vector.load %arg9[%c1, %c1_6, %c0_7] : memref<18x18x4xf32, #tpu.memory_space<vmem>>, vector<16x16x4xf32>
    tpu.vector_store %arg9[%c1, %c1_6, %c0_7], %3 {strides = array<i32>} : memref<18x18x4xf32, #tpu.memory_space<vmem>>, vector<16x16x4xf32>,
    %cst_8 = arith.constant 0.000000e+00 : f32
    %5 = vector.broadcast %cst_8 : f32 to vector<256x4xf32>
    %c0_9 = arith.constant 0 : index
    %c0_10 = arith.constant 0 : index
    %c0_11 = arith.constant 0 : index
    %6 = vector.load %arg9[%c0_9, %c0_10, %c0_11] : memref<18x18x4xf32, #tpu.memory_space<vmem>>, vector<16x16x4xf32>
    %7 = vector.shape_cast %6 : vector<16x16x4xf32> to vector<256x4xf32>
    %c0_12 = arith.constant 0 : index
    %c0_13 = arith.constant 0 : index
    %c0_14 = arith.constant 0 : index
    %8 = vector.load %arg2[%c0_12, %c0_13, %c0_14] : memref<9x4x4xf32, #tpu.memory_space<vmem>>, vector<1x4x4xf32>
    %9 = vector.shape_cast %8 : vector<1x4x4xf32> to vector<4x4xf32>
    %cst_15 = arith.constant dense<0.000000e+00> : vector<256x4xf32>
    %10 = tpu.matmul %7, %9, %cst_15 {dimension_numbers = #tpu.dot_dimension_numbers<[1], [0], [0], [1], [0, 0, 1, 1], [], []>} : vector<256x4xf32>, vector<4x4xf32>, vector<256x4xf32> -> vector<256x4xf32>
    %11 = arith.addf %5, %10 : vector<256x4xf32>
    %c0_16 = arith.constant 0 : index
    %c1_17 = arith.constant 1 : index
    %c0_18 = arith.constant 0 : index
    %12 = vector.load %arg9[%c0_16, %c1_17, %c0_18] : memref<18x18x4xf32, #tpu.memory_space<vmem>>, vector<16x16x4xf32>
    %13 = vector.shape_cast %12 : vector<16x16x4xf32> to vector<256x4xf32>
    %c1_19 = arith.constant 1 : index
    %c0_20 = arith.constant 0 : index
    %c0_21 = arith.constant 0 : index
    %14 = vector.load %arg2[%c1_19, %c0_20, %c0_21] : memref<9x4x4xf32, #tpu.memory_space<vmem>>, vector<1x4x4xf32>
    %15 = vector.shape_cast %14 : vector<1x4x4xf32> to vector<4x4xf32>
    %cst_22 = arith.constant dense<0.000000e+00> : vector<256x4xf32>
    %16 = tpu.matmul %13, %15, %cst_22 {dimension_numbers = #tpu.dot_dimension_numbers<[1], [0], [0], [1], [0, 0, 1, 1], [], []>} : vector<256x4xf32>, vector<4x4xf32>, vector<256x4xf32> -> vector<256x4xf32>
    %17 = arith.addf %11, %16 : vector<256x4xf32>
    %c0_23 = arith.constant 0 : index
    %c2 = arith.constant 2 : index
    %c0_24 = arith.constant 0 : index
    %18 = vector.load %arg9[%c0_23, %c2, %c0_24] : memref<18x18x4xf32, #tpu.memory_space<vmem>>, vector<16x16x4xf32>
    %19 = vector.shape_cast %18 : vector<16x16x4xf32> to vector<256x4xf32>
    %c2_25 = arith.constant 2 : index
    %c0_26 = arith.constant 0 : index
    %c0_27 = arith.constant 0 : index
    %20 = vector.load %arg2[%c2_25, %c0_26, %c0_27] : memref<9x4x4xf32, #tpu.memory_space<vmem>>, vector<1x4x4xf32>
    %21 = vector.shape_cast %20 : vector<1x4x4xf32> to vector<4x4xf32>
    %cst_28 = arith.constant dense<0.000000e+00> : vector<256x4xf32>
    %22 = tpu.matmul %19, %21, %cst_28 {dimension_numbers = #tpu.dot_dimension_numbers<[1], [0], [0], [1], [0, 0, 1, 1], [], []>} : vector<256x4xf32>, vector<4x4xf32>, vector<256x4xf32> -> vector<256x4xf32>
    %23 = arith.addf %17, %22 : vector<256x4xf32>
    %c1_29 = arith.constant 1 : index
    %c0_30 = arith.constant 0 : index
    %c0_31 = arith.constant 0 : index
    %24 = vector.load %arg9[%c1_29, %c0_30, %c0_31] : memref<18x18x4xf32, #tpu.memory_space<vmem>>, vector<16x16x4xf32>
    %25 = vector.shape_cast %24 : vector<16x16x4xf32> to vector<256x4xf32>
    %c3 = arith.constant 3 : index
    %c0_32 = arith.constant 0 : index
    %c0_33 = arith.constant 0 : index
    %26 = vector.load %arg2[%c3, %c0_32, %c0_33] : memref<9x4x4xf32, #tpu.memory_space<vmem>>, vector<1x4x4xf32>
    %27 = vector.shape_cast %26 : vector<1x4x4xf32> to vector<4x4xf32>
    %cst_34 = arith.constant dense<0.000000e+00> : vector<256x4xf32>
    %28 = tpu.matmul %25, %27, %cst_34 {dimension_numbers = #tpu.dot_dimension_numbers<[1], [0], [0], [1], [0, 0, 1, 1], [], []>} : vector<256x4xf32>, vector<4x4xf32>, vector<256x4xf32> -> vector<256x4xf32>
    %29 = arith.addf %23, %28 : vector<256x4xf32>
    %c1_35 = arith.constant 1 : index
    %c1_36 = arith.constant 1 : index
    %c0_37 = arith.constant 0 : index
    %30 = vector.load %arg9[%c1_35, %c1_36, %c0_37] : memref<18x18x4xf32, #tpu.memory_space<vmem>>, vector<16x16x4xf32>
    %31 = vector.shape_cast %30 : vector<16x16x4xf32> to vector<256x4xf32>
    %c4 = arith.constant 4 : index
    %c0_38 = arith.constant 0 : index
    %c0_39 = arith.constant 0 : index
    %32 = vector.load %arg2[%c4, %c0_38, %c0_39] : memref<9x4x4xf32, #tpu.memory_space<vmem>>, vector<1x4x4xf32>
    %33 = vector.shape_cast %32 : vector<1x4x4xf32> to vector<4x4xf32>
    %cst_40 = arith.constant dense<0.000000e+00> : vector<256x4xf32>
    %34 = tpu.matmul %31, %33, %cst_40 {dimension_numbers = #tpu.dot_dimension_numbers<[1], [0], [0], [1], [0, 0, 1, 1], [], []>} : vector<256x4xf32>, vector<4x4xf32>, vector<256x4xf32> -> vector<256x4xf32>
    %35 = arith.addf %29, %34 : vector<256x4xf32>
    %c1_41 = arith.constant 1 : index
    %c2_42 = arith.constant 2 : index
    %c0_43 = arith.constant 0 : index
    %36 = vector.load %arg9[%c1_41, %c2_42, %c0_43] : memref<18x18x4xf32, #tpu.memory_space<vmem>>, vector<16x16x4xf32>
    %37 = vector.shape_cast %36 : vector<16x16x4xf32> to vector<256x4xf32>
    %c5 = arith.constant 5 : index
    %c0_44 = arith.constant 0 : index
    %c0_45 = arith.constant 0 : index
    %38 = vector.load %arg2[%c5, %c0_44, %c0_45] : memref<9x4x4xf32, #tpu.memory_space<vmem>>, vector<1x4x4xf32>
    %39 = vector.shape_cast %38 : vector<1x4x4xf32> to vector<4x4xf32>
    %cst_46 = arith.constant dense<0.000000e+00> : vector<256x4xf32>
    %40 = tpu.matmul %37, %39, %cst_46 {dimension_numbers = #tpu.dot_dimension_numbers<[1], [0], [0], [1], [0, 0, 1, 1], [], []>} : vector<256x4xf32>, vector<4x4xf32>, vector<256x4xf32> -> vector<256x4xf32>
    %41 = arith.addf %35, %40 : vector<256x4xf32>
    %c2_47 = arith.constant 2 : index
    %c0_48 = arith.constant 0 : index
    %c0_49 = arith.constant 0 : index
    %42 = vector.load %arg9[%c2_47, %c0_48, %c0_49] : memref<18x18x4xf32, #tpu.memory_space<vmem>>, vector<16x16x4xf32>
    %43 = vector.shape_cast %42 : vector<16x16x4xf32> to vector<256x4xf32>
    %c6 = arith.constant 6 : index
    %c0_50 = arith.constant 0 : index
    %c0_51 = arith.constant 0 : index
    %44 = vector.load %arg2[%c6, %c0_50, %c0_51] : memref<9x4x4xf32, #tpu.memory_space<vmem>>, vector<1x4x4xf32>
    %45 = vector.shape_cast %44 : vector<1x4x4xf32> to vector<4x4xf32>
    %cst_52 = arith.constant dense<0.000000e+00> : vector<256x4xf32>
    %46 = tpu.matmul %43, %45, %cst_52 {dimension_numbers = #tpu.dot_dimension_numbers<[1], [0], [0], [1], [0, 0, 1, 1], [], []>} : vector<256x4xf32>, vector<4x4xf32>, vector<256x4xf32> -> vector<256x4xf32>
    %47 = arith.addf %41, %46 : vector<256x4xf32>
    %c2_53 = arith.constant 2 : index
    %c1_54 = arith.constant 1 : index
    %c0_55 = arith.constant 0 : index
    %48 = vector.load %arg9[%c2_53, %c1_54, %c0_55] : memref<18x18x4xf32, #tpu.memory_space<vmem>>, vector<16x16x4xf32>
    %49 = vector.shape_cast %48 : vector<16x16x4xf32> to vector<256x4xf32>
    %c7 = arith.constant 7 : index
    %c0_56 = arith.constant 0 : index
    %c0_57 = arith.constant 0 : index
    %50 = vector.load %arg2[%c7, %c0_56, %c0_57] : memref<9x4x4xf32, #tpu.memory_space<vmem>>, vector<1x4x4xf32>
    %51 = vector.shape_cast %50 : vector<1x4x4xf32> to vector<4x4xf32>
    %cst_58 = arith.constant dense<0.000000e+00> : vector<256x4xf32>
    %52 = tpu.matmul %49, %51, %cst_58 {dimension_numbers = #tpu.dot_dimension_numbers<[1], [0], [0], [1], [0, 0, 1, 1], [], []>} : vector<256x4xf32>, vector<4x4xf32>, vector<256x4xf32> -> vector<256x4xf32>
    %53 = arith.addf %47, %52 : vector<256x4xf32>
    %c2_59 = arith.constant 2 : index
    %c2_60 = arith.constant 2 : index
    %c0_61 = arith.constant 0 : index
    %54 = vector.load %arg9[%c2_59, %c2_60, %c0_61] : memref<18x18x4xf32, #tpu.memory_space<vmem>>, vector<16x16x4xf32>
    %55 = vector.shape_cast %54 : vector<16x16x4xf32> to vector<256x4xf32>
    %c8 = arith.constant 8 : index
    %c0_62 = arith.constant 0 : index
    %c0_63 = arith.constant 0 : index
    %56 = vector.load %arg2[%c8, %c0_62, %c0_63] : memref<9x4x4xf32, #tpu.memory_space<vmem>>, vector<1x4x4xf32>
    %57 = vector.shape_cast %56 : vector<1x4x4xf32> to vector<4x4xf32>
    %cst_64 = arith.constant dense<0.000000e+00> : vector<256x4xf32>
    %58 = tpu.matmul %55, %57, %cst_64 {dimension_numbers = #tpu.dot_dimension_numbers<[1], [0], [0], [1], [0, 0, 1, 1], [], []>} : vector<256x4xf32>, vector<4x4xf32>, vector<256x4xf32> -> vector<256x4xf32>
    %59 = arith.addf %53, %58 : vector<256x4xf32>
    %c0_65 = arith.constant 0 : index
    %c0_66 = arith.constant 0 : index
    %60 = vector.load %arg3[%c0_65, %c0_66] : memref<1x4xf32, #tpu.memory_space<vmem>>, vector<1x4xf32>
    %61 = vector.broadcast %60 : vector<1x4xf32> to vector<256x4xf32>
    %62 = arith.addf %59, %61 : vector<256x4xf32>
    %cst_67 = arith.constant 1.000000e+00 : f32
    %63 = vector.broadcast %cst_67 : f32 to vector<256x4xf32>
    %64 = arith.cmpf oge, %62, %63 : vector<256x4xf32>
    %65 = arith.extui %64 : vector<256x4xi1> to vector<256x4xi32>
    %66 = arith.sitofp %65 : vector<256x4xi32> to vector<256x4xf32>
    %cst_68 = arith.constant 0.000000e+00 : f32
    %67 = vector.broadcast %cst_68 : f32 to vector<18x18x4xf32>
    %c0_69 = arith.constant 0 : index
    %c0_70 = arith.constant 0 : index
    %c0_71 = arith.constant 0 : index
    %68 = vector.load %arg10[%c0_69, %c0_70, %c0_71] : memref<18x18x4xf32, #tpu.memory_space<vmem>>, vector<18x18x4xf32>
    tpu.vector_store %arg10[%c0_69, %c0_70, %c0_71], %67 {strides = array<i32>} : memref<18x18x4xf32, #tpu.memory_space<vmem>>, vector<18x18x4xf32>,
    %69 = vector.shape_cast %66 : vector<256x4xf32> to vector<16x16x4xf32>
    %c1_72 = arith.constant 1 : index
    %c1_73 = arith.constant 1 : index
    %c0_74 = arith.constant 0 : index
    %70 = vector.load %arg10[%c1_72, %c1_73, %c0_74] : memref<18x18x4xf32, #tpu.memory_space<vmem>>, vector<16x16x4xf32>
    tpu.vector_store %arg10[%c1_72, %c1_73, %c0_74], %69 {strides = array<i32>} : memref<18x18x4xf32, #tpu.memory_space<vmem>>, vector<16x16x4xf32>,
    %cst_75 = arith.constant 0.000000e+00 : f32
    %71 = vector.broadcast %cst_75 : f32 to vector<64x8xf32>
    %c0_76 = arith.constant 0 : index
    %c0_77 = arith.constant 0 : index
    %c0_78 = arith.constant 0 : index
    %72 = tpu.strided_load %arg10[%c0_76, %c0_77, %c0_78] {strides = array<i32: 2, 2, 1>} : memref<18x18x4xf32, #tpu.memory_space<vmem>>, vector<8x8x4xf32>
    %73 = vector.shape_cast %72 : vector<8x8x4xf32> to vector<64x4xf32>
    %c0_79 = arith.constant 0 : index
    %c0_80 = arith.constant 0 : index
    %c0_81 = arith.constant 0 : index
    %74 = vector.load %arg4[%c0_79, %c0_80, %c0_81] : memref<9x4x8xf32, #tpu.memory_space<vmem>>, vector<1x4x8xf32>
    %75 = vector.shape_cast %74 : vector<1x4x8xf32> to vector<4x8xf32>
    %cst_82 = arith.constant dense<0.000000e+00> : vector<64x8xf32>
    %76 = tpu.matmul %73, %75, %cst_82 {dimension_numbers = #tpu.dot_dimension_numbers<[1], [0], [0], [1], [0, 0, 1, 1], [], []>} : vector<64x4xf32>, vector<4x8xf32>, vector<64x8xf32> -> vector<64x8xf32>
    %77 = arith.addf %71, %76 : vector<64x8xf32>
    %c0_83 = arith.constant 0 : index
    %c1_84 = arith.constant 1 : index
    %c0_85 = arith.constant 0 : index
    %78 = tpu.strided_load %arg10[%c0_83, %c1_84, %c0_85] {strides = array<i32: 2, 2, 1>} : memref<18x18x4xf32, #tpu.memory_space<vmem>>, vector<8x8x4xf32>
    %79 = vector.shape_cast %78 : vector<8x8x4xf32> to vector<64x4xf32>
    %c1_86 = arith.constant 1 : index
    %c0_87 = arith.constant 0 : index
    %c0_88 = arith.constant 0 : index
    %80 = vector.load %arg4[%c1_86, %c0_87, %c0_88] : memref<9x4x8xf32, #tpu.memory_space<vmem>>, vector<1x4x8xf32>
    %81 = vector.shape_cast %80 : vector<1x4x8xf32> to vector<4x8xf32>
    %cst_89 = arith.constant dense<0.000000e+00> : vector<64x8xf32>
    %82 = tpu.matmul %79, %81, %cst_89 {dimension_numbers = #tpu.dot_dimension_numbers<[1], [0], [0], [1], [0, 0, 1, 1], [], []>} : vector<64x4xf32>, vector<4x8xf32>, vector<64x8xf32> -> vector<64x8xf32>
    %83 = arith.addf %77, %82 : vector<64x8xf32>
    %c0_90 = arith.constant 0 : index
    %c2_91 = arith.constant 2 : index
    %c0_92 = arith.constant 0 : index
    %84 = tpu.strided_load %arg10[%c0_90, %c2_91, %c0_92] {strides = array<i32: 2, 2, 1>} : memref<18x18x4xf32, #tpu.memory_space<vmem>>, vector<8x8x4xf32>
    %85 = vector.shape_cast %84 : vector<8x8x4xf32> to vector<64x4xf32>
    %c2_93 = arith.constant 2 : index
    %c0_94 = arith.constant 0 : index
    %c0_95 = arith.constant 0 : index
    %86 = vector.load %arg4[%c2_93, %c0_94, %c0_95] : memref<9x4x8xf32, #tpu.memory_space<vmem>>, vector<1x4x8xf32>
    %87 = vector.shape_cast %86 : vector<1x4x8xf32> to vector<4x8xf32>
    %cst_96 = arith.constant dense<0.000000e+00> : vector<64x8xf32>
    %88 = tpu.matmul %85, %87, %cst_96 {dimension_numbers = #tpu.dot_dimension_numbers<[1], [0], [0], [1], [0, 0, 1, 1], [], []>} : vector<64x4xf32>, vector<4x8xf32>, vector<64x8xf32> -> vector<64x8xf32>
    %89 = arith.addf %83, %88 : vector<64x8xf32>
    %c1_97 = arith.constant 1 : index
    %c0_98 = arith.constant 0 : index
    %c0_99 = arith.constant 0 : index
    %90 = tpu.strided_load %arg10[%c1_97, %c0_98, %c0_99] {strides = array<i32: 2, 2, 1>} : memref<18x18x4xf32, #tpu.memory_space<vmem>>, vector<8x8x4xf32>
    %91 = vector.shape_cast %90 : vector<8x8x4xf32> to vector<64x4xf32>
    %c3_100 = arith.constant 3 : index
    %c0_101 = arith.constant 0 : index
    %c0_102 = arith.constant 0 : index
    %92 = vector.load %arg4[%c3_100, %c0_101, %c0_102] : memref<9x4x8xf32, #tpu.memory_space<vmem>>, vector<1x4x8xf32>
    %93 = vector.shape_cast %92 : vector<1x4x8xf32> to vector<4x8xf32>
    %cst_103 = arith.constant dense<0.000000e+00> : vector<64x8xf32>
    %94 = tpu.matmul %91, %93, %cst_103 {dimension_numbers = #tpu.dot_dimension_numbers<[1], [0], [0], [1], [0, 0, 1, 1], [], []>} : vector<64x4xf32>, vector<4x8xf32>, vector<64x8xf32> -> vector<64x8xf32>
    %95 = arith.addf %89, %94 : vector<64x8xf32>
    %c1_104 = arith.constant 1 : index
    %c1_105 = arith.constant 1 : index
    %c0_106 = arith.constant 0 : index
    %96 = tpu.strided_load %arg10[%c1_104, %c1_105, %c0_106] {strides = array<i32: 2, 2, 1>} : memref<18x18x4xf32, #tpu.memory_space<vmem>>, vector<8x8x4xf32>
    %97 = vector.shape_cast %96 : vector<8x8x4xf32> to vector<64x4xf32>
    %c4_107 = arith.constant 4 : index
    %c0_108 = arith.constant 0 : index
    %c0_109 = arith.constant 0 : index
    %98 = vector.load %arg4[%c4_107, %c0_108, %c0_109] : memref<9x4x8xf32, #tpu.memory_space<vmem>>, vector<1x4x8xf32>
    %99 = vector.shape_cast %98 : vector<1x4x8xf32> to vector<4x8xf32>
    %cst_110 = arith.constant dense<0.000000e+00> : vector<64x8xf32>
    %100 = tpu.matmul %97, %99, %cst_110 {dimension_numbers = #tpu.dot_dimension_numbers<[1], [0], [0], [1], [0, 0, 1, 1], [], []>} : vector<64x4xf32>, vector<4x8xf32>, vector<64x8xf32> -> vector<64x8xf32>
    %101 = arith.addf %95, %100 : vector<64x8xf32>
    %c1_111 = arith.constant 1 : index
    %c2_112 = arith.constant 2 : index
    %c0_113 = arith.constant 0 : index
    %102 = tpu.strided_load %arg10[%c1_111, %c2_112, %c0_113] {strides = array<i32: 2, 2, 1>} : memref<18x18x4xf32, #tpu.memory_space<vmem>>, vector<8x8x4xf32>
    %103 = vector.shape_cast %102 : vector<8x8x4xf32> to vector<64x4xf32>
    %c5_114 = arith.constant 5 : index
    %c0_115 = arith.constant 0 : index
    %c0_116 = arith.constant 0 : index
    %104 = vector.load %arg4[%c5_114, %c0_115, %c0_116] : memref<9x4x8xf32, #tpu.memory_space<vmem>>, vector<1x4x8xf32>
    %105 = vector.shape_cast %104 : vector<1x4x8xf32> to vector<4x8xf32>
    %cst_117 = arith.constant dense<0.000000e+00> : vector<64x8xf32>
    %106 = tpu.matmul %103, %105, %cst_117 {dimension_numbers = #tpu.dot_dimension_numbers<[1], [0], [0], [1], [0, 0, 1, 1], [], []>} : vector<64x4xf32>, vector<4x8xf32>, vector<64x8xf32> -> vector<64x8xf32>
    %107 = arith.addf %101, %106 : vector<64x8xf32>
    %c2_118 = arith.constant 2 : index
    %c0_119 = arith.constant 0 : index
    %c0_120 = arith.constant 0 : index
    %108 = tpu.strided_load %arg10[%c2_118, %c0_119, %c0_120] {strides = array<i32: 2, 2, 1>} : memref<18x18x4xf32, #tpu.memory_space<vmem>>, vector<8x8x4xf32>
    %109 = vector.shape_cast %108 : vector<8x8x4xf32> to vector<64x4xf32>
    %c6_121 = arith.constant 6 : index
    %c0_122 = arith.constant 0 : index
    %c0_123 = arith.constant 0 : index
    %110 = vector.load %arg4[%c6_121, %c0_122, %c0_123] : memref<9x4x8xf32, #tpu.memory_space<vmem>>, vector<1x4x8xf32>
    %111 = vector.shape_cast %110 : vector<1x4x8xf32> to vector<4x8xf32>
    %cst_124 = arith.constant dense<0.000000e+00> : vector<64x8xf32>
    %112 = tpu.matmul %109, %111, %cst_124 {dimension_numbers = #tpu.dot_dimension_numbers<[1], [0], [0], [1], [0, 0, 1, 1], [], []>} : vector<64x4xf32>, vector<4x8xf32>, vector<64x8xf32> -> vector<64x8xf32>
    %113 = arith.addf %107, %112 : vector<64x8xf32>
    %c2_125 = arith.constant 2 : index
    %c1_126 = arith.constant 1 : index
    %c0_127 = arith.constant 0 : index
    %114 = tpu.strided_load %arg10[%c2_125, %c1_126, %c0_127] {strides = array<i32: 2, 2, 1>} : memref<18x18x4xf32, #tpu.memory_space<vmem>>, vector<8x8x4xf32>
    %115 = vector.shape_cast %114 : vector<8x8x4xf32> to vector<64x4xf32>
    %c7_128 = arith.constant 7 : index
    %c0_129 = arith.constant 0 : index
    %c0_130 = arith.constant 0 : index
    %116 = vector.load %arg4[%c7_128, %c0_129, %c0_130] : memref<9x4x8xf32, #tpu.memory_space<vmem>>, vector<1x4x8xf32>
    %117 = vector.shape_cast %116 : vector<1x4x8xf32> to vector<4x8xf32>
    %cst_131 = arith.constant dense<0.000000e+00> : vector<64x8xf32>
    %118 = tpu.matmul %115, %117, %cst_131 {dimension_numbers = #tpu.dot_dimension_numbers<[1], [0], [0], [1], [0, 0, 1, 1], [], []>} : vector<64x4xf32>, vector<4x8xf32>, vector<64x8xf32> -> vector<64x8xf32>
    %119 = arith.addf %113, %118 : vector<64x8xf32>
    %c2_132 = arith.constant 2 : index
    %c2_133 = arith.constant 2 : index
    %c0_134 = arith.constant 0 : index
    %120 = tpu.strided_load %arg10[%c2_132, %c2_133, %c0_134] {strides = array<i32: 2, 2, 1>} : memref<18x18x4xf32, #tpu.memory_space<vmem>>, vector<8x8x4xf32>
    %121 = vector.shape_cast %120 : vector<8x8x4xf32> to vector<64x4xf32>
    %c8_135 = arith.constant 8 : index
    %c0_136 = arith.constant 0 : index
    %c0_137 = arith.constant 0 : index
    %122 = vector.load %arg4[%c8_135, %c0_136, %c0_137] : memref<9x4x8xf32, #tpu.memory_space<vmem>>, vector<1x4x8xf32>
    %123 = vector.shape_cast %122 : vector<1x4x8xf32> to vector<4x8xf32>
    %cst_138 = arith.constant dense<0.000000e+00> : vector<64x8xf32>
    %124 = tpu.matmul %121, %123, %cst_138 {dimension_numbers = #tpu.dot_dimension_numbers<[1], [0], [0], [1], [0, 0, 1, 1], [], []>} : vector<64x4xf32>, vector<4x8xf32>, vector<64x8xf32> -> vector<64x8xf32>
    %125 = arith.addf %119, %124 : vector<64x8xf32>
    %c0_139 = arith.constant 0 : index
    %c0_140 = arith.constant 0 : index
    %126 = vector.load %arg5[%c0_139, %c0_140] : memref<1x8xf32, #tpu.memory_space<vmem>>, vector<1x8xf32>
    %127 = vector.broadcast %126 : vector<1x8xf32> to vector<64x8xf32>
    %128 = arith.addf %125, %127 : vector<64x8xf32>
    %cst_141 = arith.constant 1.000000e+00 : f32
    %129 = vector.broadcast %cst_141 : f32 to vector<64x8xf32>
    %130 = arith.cmpf oge, %128, %129 : vector<64x8xf32>
    %131 = arith.extui %130 : vector<64x8xi1> to vector<64x8xi32>
    %132 = arith.sitofp %131 : vector<64x8xi32> to vector<64x8xf32>
    %c1_142 = arith.constant 1 : index
    %c1_143 = arith.constant 1 : index
    %c0_144 = arith.constant 0 : index
    %133 = tpu.strided_load %arg9[%c1_142, %c1_143, %c0_144] {strides = array<i32: 2, 2, 1>} : memref<18x18x4xf32, #tpu.memory_space<vmem>>, vector<8x8x4xf32>
    %134 = vector.shape_cast %133 : vector<8x8x4xf32> to vector<64x4xf32>
    %c0_145 = arith.constant 0 : index
    %c0_146 = arith.constant 0 : index
    %135 = vector.load %arg6[%c0_145, %c0_146] : memref<4x4xf32, #tpu.memory_space<vmem>>, vector<4x4xf32>
    %cst_147 = arith.constant dense<0.000000e+00> : vector<64x4xf32>
    %136 = tpu.matmul %134, %135, %cst_147 {dimension_numbers = #tpu.dot_dimension_numbers<[1], [0], [0], [1], [0, 0, 1, 1], [], []>} : vector<64x4xf32>, vector<4x4xf32>, vector<64x4xf32> -> vector<64x4xf32>
    %c0_148 = arith.constant 0 : index
    %c0_149 = arith.constant 0 : index
    %137 = vector.load %arg7[%c0_148, %c0_149] : memref<1x4xf32, #tpu.memory_space<vmem>>, vector<1x4xf32>
    %138 = vector.broadcast %137 : vector<1x4xf32> to vector<64x4xf32>
    %139 = arith.addf %136, %138 : vector<64x4xf32>
    %cst_150 = arith.constant 1.000000e+00 : f32
    %140 = vector.broadcast %cst_150 : f32 to vector<64x4xf32>
    %141 = arith.cmpf oge, %139, %140 : vector<64x4xf32>
    %142 = arith.extui %141 : vector<64x4xi1> to vector<64x4xi32>
    %143 = arith.sitofp %142 : vector<64x4xi32> to vector<64x4xf32>
    %c0_151 = arith.constant 0 : index
    %c0_152 = arith.constant 0 : index
    %c0_153 = arith.constant 0 : index
    %144 = vector.load %arg8[%c0_151, %c0_152, %c0_153] : memref<1x64x12xf32, #tpu.memory_space<vmem>>, vector<1x64x8xf32>
    %145 = vector.shape_cast %144 : vector<1x64x8xf32> to vector<64x8xf32>
    %146 = vector.shape_cast %132 : vector<64x8xf32> to vector<1x64x8xf32>
    tpu.vector_store %arg8[%c0_151, %c0_152, %c0_153], %146 {strides = array<i32>} : memref<1x64x12xf32, #tpu.memory_space<vmem>>, vector<1x64x8xf32>,
    %c0_154 = arith.constant 0 : index
    %c0_155 = arith.constant 0 : index
    %c8_156 = arith.constant 8 : index
    %147 = vector.load %arg8[%c0_154, %c0_155, %c8_156] : memref<1x64x12xf32, #tpu.memory_space<vmem>>, vector<1x64x4xf32>
    %148 = vector.shape_cast %147 : vector<1x64x4xf32> to vector<64x4xf32>
    %149 = vector.shape_cast %143 : vector<64x4xf32> to vector<1x64x4xf32>
    tpu.vector_store %arg8[%c0_154, %c0_155, %c8_156], %149 {strides = array<i32>} : memref<1x64x12xf32, #tpu.memory_space<vmem>>, vector<1x64x4xf32>,
    return
  }
  func.func @transform_0(%arg0: i32) -> (i32, i32, i32, i32) {
    %c0_i32 = arith.constant 0 : i32
    %c0_i32_0 = arith.constant 0 : i32
    %c0_i32_1 = arith.constant 0 : i32
    %c0_i32_2 = arith.constant 0 : i32
    return %arg0, %c0_i32, %c0_i32_0, %c0_i32_1 : i32, i32, i32, i32
  }
  func.func @transform_1(%arg0: i32) -> (i32, i32, i32) {
    %c0_i32 = arith.constant 0 : i32
    %c0_i32_0 = arith.constant 0 : i32
    %c0_i32_1 = arith.constant 0 : i32
    %c0_i32_2 = arith.constant 0 : i32
    return %c0_i32, %c0_i32_0, %c0_i32_1 : i32, i32, i32
  }
  func.func @transform_2(%arg0: i32) -> (i32, i32) {
    %c0_i32 = arith.constant 0 : i32
    %c0_i32_0 = arith.constant 0 : i32
    %c0_i32_1 = arith.constant 0 : i32
    return %c0_i32, %c0_i32_0 : i32, i32
  }
  func.func @transform_3(%arg0: i32) -> (i32, i32, i32) {
    %c0_i32 = arith.constant 0 : i32
    %c0_i32_0 = arith.constant 0 : i32
    %c0_i32_1 = arith.constant 0 : i32
    %c0_i32_2 = arith.constant 0 : i32
    return %c0_i32, %c0_i32_0, %c0_i32_1 : i32, i32, i32
  }
  func.func @transform_4(%arg0: i32) -> (i32, i32) {
    %c0_i32 = arith.constant 0 : i32
    %c0_i32_0 = arith.constant 0 : i32
    %c0_i32_1 = arith.constant 0 : i32
    return %c0_i32, %c0_i32_0 : i32, i32
  }
  func.func @transform_5(%arg0: i32) -> (i32, i32) {
    %c0_i32 = arith.constant 0 : i32
    %c0_i32_0 = arith.constant 0 : i32
    %c0_i32_1 = arith.constant 0 : i32
    return %c0_i32, %c0_i32_0 : i32, i32
  }
  func.func @transform_6(%arg0: i32) -> (i32, i32) {
    %c0_i32 = arith.constant 0 : i32
    %c0_i32_0 = arith.constant 0 : i32
    %c0_i32_1 = arith.constant 0 : i32
    return %c0_i32, %c0_i32_0 : i32, i32
  }
  func.func @transform_7(%arg0: i32) -> (i32, i32, i32) {
    %c0_i32 = arith.constant 0 : i32
    %c0_i32_0 = arith.constant 0 : i32
    %c0_i32_1 = arith.constant 0 : i32
    return %arg0, %c0_i32, %c0_i32_0 : i32, i32, i32
  }
}

</mosaic_0001>

<bundles_post_ra>
// kernel: tpu_custom_call.1
= control target key start
LH: loop header
LB: loop body
LE: loop exit
PB: predicated region body
PF: predicated region fallthrough
CT: control target
= control target key end

     0   :  { %s7374_s24 = smov 0   ;;  %s9484_s0 = inlined_call_operand.vmem [shape: f32[2,16,16,4], index: 0, kind: input, shape index: {}]   ;;  %s9485_s1 = inlined_call_operand.vmem [shape: f32[9,4,4], index: 1, kind: input, shape index: {}]   ;;  %s9486_s2 = inlined_call_operand.vmem [shape: f32[1,4], index: 2, kind: input, shape index: {}]   ;;  %s9487_s3 = inlined_call_operand.vmem [shape: f32[9,4,8], index: 3, kind: input, shape index: {}]   ;;  %s9488_s4 = inlined_call_operand.vmem [shape: f32[1,8], index: 4, kind: input, shape index: {}]   ;;  %s9489_s5 = inlined_call_operand.vmem [shape: f32[4,4], index: 5, kind: input, shape index: {}]   ;;  %s9490_s6 = inlined_call_operand.vmem [shape: f32[1,4], index: 6, kind: input, shape index: {}]   ;;  %s9491_s7 = inlined_call_operand.vmem [shape: f32[2,64,12], index: 7, kind: output, shape index: {}]  }
   0x1 LB: > { %s5850_s25 = sadd.s32 4294967295, %s7330_s24   ;;  %p5854_p0 = scmp.ge.s32.totalorder %s7330_s24, 1  ;;  %s7330_s24 = sphi %s7374_s24, %s17_s24  }
   0x2   : > { %p237_p1 = scmp.lt.s32.totalorder %s7330_s24, 3 }
   0x4   : > { %p238_p2 = pnand %p5854_p0, %p237_p1 }
   0x6   : > { %241 = sbr.rel (%p238_p2) target bundleno = 1003 (0x3eb), region = 48 }
   0xb   : > { %v5859_v0 = vld [vmem:[%s9485_s1 + $0x4] sm:$0xf]  ;;  %vm563_vm0 = vcmask 1043456   ;;  %v7388_v1 = vld [vmem:[%s9485_s1] sm:$0xf]  ;;  %vm279_vm1 = vcmask 31744  }
   0xc   : > { %6704 = vmatprep.subr.msk.mxu0 %vm563_vm0, %v5859_v0  ;;  %6754 = vmatprep.subr.msk.mxu1 %vm563_vm0, %v7388_v1  ;;  %vm282_vm2 = vcmask 25600   ;;  %v7396_v2 = vld [vmem:[%s9485_s1 + $0x8] sm:$0xf]  ;;  %p7400_p3 = scmp.lt.s32.totalorder %s5850_s25, 1  ;;  %v9492_v3 = vmov 0.0   ;;  %s7333_s13 = smov 8  }
   0xd   : > { %6705 = vmatpush3.msk.msra.mxu0 %vm563_vm0, %v5859_v0  ;;  %280 = vst.msk [vmem:[#allocation2] sm:$0xff] %vm279_vm1, %v9492_v3  ;;  %281 = vst.msk [vmem:[#allocation2 + $0x8] sm:$0xff] %vm279_vm1, %v9492_v3  ;;  %6755 = vmatpush3.msk.msra.mxu1 %vm563_vm0, %v7388_v1  ;;  %v5960_v4 = vld [vmem:[%s9485_s1 + $0xc] sm:$0xf]  ;;  %v7647_v11 = vld [vmem:[%s9485_s1 + $0x10] sm:$0xf] }
   0xe   : > { %284 = vst.msk [vmem:[#allocation2 + $0x18] sm:$0xff] %vm279_vm1, %v9492_v3  ;;  %285 = vst.msk [vmem:[#allocation2 + $0x20] sm:$0xff] %vm279_vm1, %v9492_v3  ;;  %6804 = vmatprep.subr.msk.mxu0 %vm563_vm0, %v7396_v2  ;;  %s9757_s25 = smov (!%p7400_p3, %s5850_s25), 1  ;;  %6854 = vmatprep.subr.msk.mxu1 %vm563_vm0, %v5960_v4 }
   0xf   : > { %287 = vst.msk [vmem:[#allocation2 + $0x30] sm:$0xff] %vm279_vm1, %v9492_v3  ;;  %288 = vst.msk [vmem:[#allocation2 + $0x38] sm:$0xff] %vm279_vm1, %v9492_v3  ;;  %s6315_s12 = sshll.u32 %s9757_s25, 8  ;;  %s6316_s8 = sshll.u32 %s9757_s25, 6 }
  0x10   : > { %290 = vst.msk [vmem:[#allocation2 + $0x48] sm:$0xff] %vm279_vm1, %v9492_v3  ;;  %291 = vst.msk [vmem:[#allocation2 + $0x50] sm:$0xff] %vm279_vm1, %v9492_v3  ;;  %s7633_s15 = scalar_lea.vmem %s9484_s0, %s6315_s12  ;;  %s9417_s10 = scalar_lea.vmem %s9491_s7, %s6316_s8 }
  0x11   : > { %293 = vst.msk [vmem:[#allocation2 + $0x60] sm:$0xff] %vm279_vm1, %v9492_v3  ;;  %294 = vst.msk [vmem:[#allocation2 + $0x68] sm:$0xff] %vm279_vm1, %v9492_v3  ;;  %v335_v5 = vld [vmem:[%s7633_s15] sm:$0xff]  ;;  %v336_v6 = vld [vmem:[%s7633_s15 + $0x8] sm:$0xff] }
  0x12   : > { %296 = vst.msk [vmem:[#allocation2 + $0x78] sm:$0xff] %vm279_vm1, %v9492_v3  ;;  %297 = vst.msk [vmem:[#allocation2 + $0x80] sm:$0xff] %vm279_vm1, %v9492_v3  ;;  %v337_v7 = vld [vmem:[%s7633_s15 + $0x10] sm:$0xff]  ;;  %v338_v8 = vld [vmem:[%s7633_s15 + $0x18] sm:$0xff] }
  0x13   : > { %299 = vst.msk [vmem:[#allocation2 + $0x90] sm:$0xff] %vm279_vm1, %v9492_v3  ;;  %300 = vst.msk [vmem:[#allocation2 + $0x98] sm:$0xff] %vm279_vm1, %v9492_v3  ;;  %v339_v9 = vld [vmem:[%s7633_s15 + $0x20] sm:$0xff]  ;;  %v340_v10 = vld [vmem:[%s7633_s15 + $0x28] sm:$0xff] }
  0x14   : > { %302 = vst.msk [vmem:[#allocation2 + $0xa8] sm:$0xff] %vm279_vm1, %v9492_v3  ;;  %303 = vst.msk [vmem:[#allocation2 + $0xb0] sm:$0xff] %vm279_vm1, %v9492_v3  ;;  %v433_v12 = vld [vmem:[#allocation2 + $0x1] sm:$0xff]  ;;  %v341_v16 = vld [vmem:[%s7633_s15 + $0x30] sm:$0xff] }
  0x15   : > { %305 = vst.msk [vmem:[#allocation2 + $0xc0] sm:$0xff] %vm279_vm1, %v9492_v3  ;;  %306 = vst.msk [vmem:[#allocation2 + $0xc8] sm:$0xff] %vm279_vm1, %v9492_v3  ;;  %v400_v13 = vld [vmem:[#allocation2] sm:$0xff]  ;;  %6706 = vmatprep.mubr.msk.f32.mxu0 %vm279_vm1, %v433_v12  ;;  %v401_v15 = vld [vmem:[#allocation2 + $0x8] sm:$0xff] }
  0x16   : > { %308 = vst.msk [vmem:[#allocation2 + $0xd8] sm:$0xff] %vm279_vm1, %v9492_v3  ;;  %309 = vst.msk [vmem:[#allocation2 + $0xe0] sm:$0xff] %vm279_vm1, %v9492_v3  ;;  %6756 = vmatprep.mubr.msk.f32.mxu1 %vm279_vm1, %v400_v13  ;;  %v342_v17 = vld [vmem:[%s7633_s15 + $0x38] sm:$0xff]  ;;  %v343_v18 = vld [vmem:[%s7633_s15 + $0x40] sm:$0xff] }
  0x17   : > { %311 = vst.msk [vmem:[#allocation2 + $0xf0] sm:$0xff] %vm279_vm1, %v9492_v3  ;;  %312 = vst.msk [vmem:[#allocation2 + $0xf8] sm:$0xff] %vm279_vm1, %v9492_v3  ;;  %6757 = vmatmul.mubr.msk.f32.vlgmr.msra.gmra.mxu1 %vm279_vm1, %v401_v15  ;;  %v344_v19 = vld [vmem:[%s7633_s15 + $0x48] sm:$0xff]  ;;  %v345_v20 = vld [vmem:[%s7633_s15 + $0x50] sm:$0xff] }
  0x18   : > { %314 = vst.msk [vmem:[#allocation2 + $0x108] sm:$0xff] %vm279_vm1, %v9492_v3  ;;  %315 = vst.msk [vmem:[#allocation2 + $0x110] sm:$0xff] %vm279_vm1, %v9492_v3  ;;  %v346_v21 = vld [vmem:[%s7633_s15 + $0x58] sm:$0xff]  ;;  %v347_v22 = vld [vmem:[%s7633_s15 + $0x60] sm:$0xff]  ;;  %6855 = vmatpush3.msk.msra.mxu1 %vm563_vm0, %v5960_v4 }
  0x19   : > { %317 = vst.msk [vmem:[#allocation2 + $0x120] sm:$0xff] %vm279_vm1, %v9492_v3  ;;  %318 = vst.msk [vmem:[#allocation2 + $0x128] sm:$0xff] %vm279_vm1, %v9492_v3  ;;  %v348_v23 = vld [vmem:[%s7633_s15 + $0x68] sm:$0xff]  ;;  %v349_v24 = vld [vmem:[%s7633_s15 + $0x70] sm:$0xff] }
  0x1a   : > { %320 = vst.msk [vmem:[#allocation2 + $0x138] sm:$0xff] %vm279_vm1, %v9492_v3  ;;  %321 = vst.msk [vmem:[#allocation2 + $0x140] sm:$0xff] %vm279_vm1, %v9492_v3  ;;  %v350_v25 = vld [vmem:[%s7633_s15 + $0x78] sm:$0xff]  ;;  %v351_v26 = vld [vmem:[%s7633_s15 + $0x80] sm:$0xff] }
  0x1b   : > { %323 = vst.msk [vmem:[#allocation2 + $0x150] sm:$0xff] %vm279_vm1, %v9492_v3  ;;  %324 = vst.msk [vmem:[#allocation2 + $0x158] sm:$0xff] %vm279_vm1, %v9492_v3  ;;  %v352_v27 = vld [vmem:[%s7633_s15 + $0x88] sm:$0xff]  ;;  %v353_v28 = vld [vmem:[%s7633_s15 + $0x90] sm:$0xff] }
  0x1c   : > { %326 = vst.msk [vmem:[#allocation2 + $0x168] sm:$0xff] %vm279_vm1, %v9492_v3  ;;  %327 = vst.msk [vmem:[#allocation2 + $0x170] sm:$0xff] %vm279_vm1, %v9492_v3  ;;  %v354_v29 = vld [vmem:[%s7633_s15 + $0x98] sm:$0xff]  ;;  %v355_v50 = vld [vmem:[%s7633_s15 + $0xa0] sm:$0xff] }
  0x1d   : > { %329 = vst.msk [vmem:[#allocation2 + $0x180] sm:$0xff] %vm279_vm1, %v9492_v3  ;;  %330 = vst.msk [vmem:[#allocation2 + $0x188] sm:$0xff] %vm279_vm1, %v9492_v3  ;;  %v356_v51 = vld [vmem:[%s7633_s15 + $0xa8] sm:$0xff]  ;;  %v357_v53 = vld [vmem:[%s7633_s15 + $0xb0] sm:$0xff] }
  0x1e   : > { %332 = vst.msk [vmem:[#allocation2 + $0x198] sm:$0xff] %vm279_vm1, %v9492_v3  ;;  %333 = vst.msk [vmem:[#allocation2 + $0x1a0] sm:$0xff] %vm279_vm1, %v9492_v3  ;;  %v358_v54 = vld [vmem:[%s7633_s15 + $0xb8] sm:$0xff]  ;;  %v359_v55 = vld [vmem:[%s7633_s15 + $0xc0] sm:$0xff] }
  0x1f   : > { %3982 = vst.msk [vmem:[#allocation3] sm:$0xff] %vm279_vm1, %v9492_v3  ;;  %3983 = vst.msk [vmem:[#allocation3 + $0x8] sm:$0xff] %vm279_vm1, %v9492_v3  ;;  %v360_v56 = vld [vmem:[%s7633_s15 + $0xc8] sm:$0xff]  ;;  %v361_v57 = vld [vmem:[%s7633_s15 + $0xd0] sm:$0xff] }
  0x20   : > { %3985 = vst.msk [vmem:[#allocation3 + $0x18] sm:$0xff] %vm279_vm1, %v9492_v3  ;;  %3986 = vst.msk [vmem:[#allocation3 + $0x20] sm:$0xff] %vm279_vm1, %v9492_v3  ;;  %v362_v58 = vld [vmem:[%s7633_s15 + $0xd8] sm:$0xff]  ;;  %v363_v60 = vld [vmem:[%s7633_s15 + $0xe0] sm:$0xff] }
  0x21   : > { %3988 = vst.msk [vmem:[#allocation3 + $0x30] sm:$0xff] %vm279_vm1, %v9492_v3  ;;  %3989 = vst.msk [vmem:[#allocation3 + $0x38] sm:$0xff] %vm279_vm1, %v9492_v3  ;;  %v364_v61 = vld [vmem:[%s7633_s15 + $0xe8] sm:$0xff] }
  0x22   : > { %3991 = vst.msk [vmem:[#allocation3 + $0x48] sm:$0xff] %vm279_vm1, %v9492_v3  ;;  %3992 = vst.msk [vmem:[#allocation3 + $0x50] sm:$0xff] %vm279_vm1, %v9492_v3 }
  0x23   : > { %3994 = vst.msk [vmem:[#allocation3 + $0x60] sm:$0xff] %vm279_vm1, %v9492_v3  ;;  %3995 = vst.msk [vmem:[#allocation3 + $0x68] sm:$0xff] %vm279_vm1, %v9492_v3 }
  0x24   : > { %3997 = vst.msk [vmem:[#allocation3 + $0x78] sm:$0xff] %vm279_vm1, %v9492_v3  ;;  %3998 = vst.msk [vmem:[#allocation3 + $0x80] sm:$0xff] %vm279_vm1, %v9492_v3 }
  0x25   : > { %4000 = vst.msk [vmem:[#allocation3 + $0x90] sm:$0xff] %vm279_vm1, %v9492_v3  ;;  %4001 = vst.msk [vmem:[#allocation3 + $0x98] sm:$0xff] %vm279_vm1, %v9492_v3 }
  0x26   : > { %4003 = vst.msk [vmem:[#allocation3 + $0xa8] sm:$0xff] %vm279_vm1, %v9492_v3  ;;  %4004 = vst.msk [vmem:[#allocation3 + $0xb0] sm:$0xff] %vm279_vm1, %v9492_v3 }
  0x27   : > { %4006 = vst.msk [vmem:[#allocation3 + $0xc0] sm:$0xff] %vm279_vm1, %v9492_v3  ;;  %4007 = vst.msk [vmem:[#allocation3 + $0xc8] sm:$0xff] %vm279_vm1, %v9492_v3 }
  0x28   : > { %4009 = vst.msk [vmem:[#allocation3 + $0xd8] sm:$0xff] %vm279_vm1, %v9492_v3  ;;  %4010 = vst.msk [vmem:[#allocation3 + $0xe0] sm:$0xff] %vm279_vm1, %v9492_v3 }
  0x29   : > { %4012 = vst.msk [vmem:[#allocation3 + $0xf0] sm:$0xff] %vm279_vm1, %v9492_v3  ;;  %4013 = vst.msk [vmem:[#allocation3 + $0xf8] sm:$0xff] %vm279_vm1, %v9492_v3 }
  0x2a   : > { %4015 = vst.msk [vmem:[#allocation3 + $0x108] sm:$0xff] %vm279_vm1, %v9492_v3  ;;  %4016 = vst.msk [vmem:[#allocation3 + $0x110] sm:$0xff] %vm279_vm1, %v9492_v3 }
  0x2b   : > { %4018 = vst.msk [vmem:[#allocation3 + $0x120] sm:$0xff] %vm279_vm1, %v9492_v3  ;;  %4019 = vst.msk [vmem:[#allocation3 + $0x128] sm:$0xff] %vm279_vm1, %v9492_v3 }
  0x2c   : > { %4021 = vst.msk [vmem:[#allocation3 + $0x138] sm:$0xff] %vm279_vm1, %v9492_v3  ;;  %4022 = vst.msk [vmem:[#allocation3 + $0x140] sm:$0xff] %vm279_vm1, %v9492_v3 }
  0x2d   : > { %4024 = vst.msk [vmem:[#allocation3 + $0x150] sm:$0xff] %vm279_vm1, %v9492_v3  ;;  %4025 = vst.msk [vmem:[#allocation3 + $0x158] sm:$0xff] %vm279_vm1, %v9492_v3 }
  0x2e   : > { %4027 = vst.msk [vmem:[#allocation3 + $0x168] sm:$0xff] %vm279_vm1, %v9492_v3  ;;  %4028 = vst.msk [vmem:[#allocation3 + $0x170] sm:$0xff] %vm279_vm1, %v9492_v3 }
  0x2f   : > { %4030 = vst.msk [vmem:[#allocation3 + $0x180] sm:$0xff] %vm279_vm1, %v9492_v3  ;;  %4031 = vst.msk [vmem:[#allocation3 + $0x188] sm:$0xff] %vm279_vm1, %v9492_v3 }
  0x30   : > { %283 = vst.msk [vmem:[#allocation2 + $0x10] sm:$0x3] %vm282_vm2, %v9492_v3  ;;  %286 = vst.msk [vmem:[#allocation2 + $0x28] sm:$0x3] %vm282_vm2, %v9492_v3 }
  0x31   : > { %289 = vst.msk [vmem:[#allocation2 + $0x40] sm:$0x3] %vm282_vm2, %v9492_v3  ;;  %292 = vst.msk [vmem:[#allocation2 + $0x58] sm:$0x3] %vm282_vm2, %v9492_v3 }
  0x32   : > { %295 = vst.msk [vmem:[#allocation2 + $0x70] sm:$0x3] %vm282_vm2, %v9492_v3  ;;  %298 = vst.msk [vmem:[#allocation2 + $0x88] sm:$0x3] %vm282_vm2, %v9492_v3 }
  0x33   : > { %301 = vst.msk [vmem:[#allocation2 + $0xa0] sm:$0x3] %vm282_vm2, %v9492_v3  ;;  %304 = vst.msk [vmem:[#allocation2 + $0xb8] sm:$0x3] %vm282_vm2, %v9492_v3 }
  0x34   : > { %307 = vst.msk [vmem:[#allocation2 + $0xd0] sm:$0x3] %vm282_vm2, %v9492_v3  ;;  %310 = vst.msk [vmem:[#allocation2 + $0xe8] sm:$0x3] %vm282_vm2, %v9492_v3 }
  0x35   : > { %313 = vst.msk [vmem:[#allocation2 + $0x100] sm:$0x3] %vm282_vm2, %v9492_v3  ;;  %316 = vst.msk [vmem:[#allocation2 + $0x118] sm:$0x3] %vm282_vm2, %v9492_v3 }
  0x36   : > { %319 = vst.msk [vmem:[#allocation2 + $0x130] sm:$0x3] %vm282_vm2, %v9492_v3  ;;  %322 = vst.msk [vmem:[#allocation2 + $0x148] sm:$0x3] %vm282_vm2, %v9492_v3 }
  0x37   : > { %325 = vst.msk [vmem:[#allocation2 + $0x160] sm:$0x3] %vm282_vm2, %v9492_v3  ;;  %328 = vst.msk [vmem:[#allocation2 + $0x178] sm:$0x3] %vm282_vm2, %v9492_v3  ;;  %v434_v14 = vld [vmem:[#allocation2 + $0x9] sm:$0xff] }
  0x38   : > { %331 = vst.msk [vmem:[#allocation2 + $0x190] sm:$0x3] %vm282_vm2, %v9492_v3  ;;  %334 = vst.msk [vmem:[#allocation2 + $0x1a8] sm:$0x3] %vm282_vm2, %v9492_v3  ;;  %6707 = vmatmul.mubr.msk.f32.vlgmr.msra.gmra.mxu0 %vm279_vm1, %v434_v14 }
  0x39   : > { %3984 = vst.msk [vmem:[#allocation3 + $0x10] sm:$0x3] %vm282_vm2, %v9492_v3  ;;  %3987 = vst.msk [vmem:[#allocation3 + $0x28] sm:$0x3] %vm282_vm2, %v9492_v3  ;;  %6805 = vmatpush3.msk.msra.mxu0 %vm563_vm0, %v7396_v2 }
  0x3a   : > { %3990 = vst.msk [vmem:[#allocation3 + $0x40] sm:$0x3] %vm282_vm2, %v9492_v3  ;;  %3993 = vst.msk [vmem:[#allocation3 + $0x58] sm:$0x3] %vm282_vm2, %v9492_v3  ;;  %6904 = vmatprep.subr.msk.mxu0 %vm563_vm0, %v7647_v11 }
  0x3b   : > { %3996 = vst.msk [vmem:[#allocation3 + $0x70] sm:$0x3] %vm282_vm2, %v9492_v3  ;;  %3999 = vst.msk [vmem:[#allocation3 + $0x88] sm:$0x3] %vm282_vm2, %v9492_v3 }
  0x3c   : > { %4002 = vst.msk [vmem:[#allocation3 + $0xa0] sm:$0x3] %vm282_vm2, %v9492_v3  ;;  %4005 = vst.msk [vmem:[#allocation3 + $0xb8] sm:$0x3] %vm282_vm2, %v9492_v3 }
  0x3d   : > { %4008 = vst.msk [vmem:[#allocation3 + $0xd0] sm:$0x3] %vm282_vm2, %v9492_v3  ;;  %4011 = vst.msk [vmem:[#allocation3 + $0xe8] sm:$0x3] %vm282_vm2, %v9492_v3 }
  0x3e   : > { %4014 = vst.msk [vmem:[#allocation3 + $0x100] sm:$0x3] %vm282_vm2, %v9492_v3  ;;  %4017 = vst.msk [vmem:[#allocation3 + $0x118] sm:$0x3] %vm282_vm2, %v9492_v3 }
  0x3f   : > { %4020 = vst.msk [vmem:[#allocation3 + $0x130] sm:$0x3] %vm282_vm2, %v9492_v3  ;;  %4023 = vst.msk [vmem:[#allocation3 + $0x148] sm:$0x3] %vm282_vm2, %v9492_v3 }
  0x40   : > { %4026 = vst.msk [vmem:[#allocation3 + $0x160] sm:$0x3] %vm282_vm2, %v9492_v3  ;;  %4029 = vst.msk [vmem:[#allocation3 + $0x178] sm:$0x3] %vm282_vm2, %v9492_v3 }
  0x41   : > { %4032 = vst.msk [vmem:[#allocation3 + $0x190] sm:$0x3] %vm282_vm2, %v9492_v3  ;;  %v1117_v3 = vld [vmem:[#allocation2 + $0xa] sm:$0xff] }
  0x42   : > { %368 = vst.msk [vmem:[#allocation2 + $0x19] sm:$0xff] %vm279_vm1, %v335_v5  ;;  %369 = vst.msk [vmem:[#allocation2 + $0x21] sm:$0xff] %vm279_vm1, %v336_v6 }
  0x43   : > { %370 = vst.msk [vmem:[#allocation2 + $0x31] sm:$0xff] %vm279_vm1, %v337_v7  ;;  %371 = vst.msk [vmem:[#allocation2 + $0x39] sm:$0xff] %vm279_vm1, %v338_v8 }
  0x44   : > { %372 = vst.msk [vmem:[#allocation2 + $0x49] sm:$0xff] %vm279_vm1, %v339_v9  ;;  %373 = vst.msk [vmem:[#allocation2 + $0x51] sm:$0xff] %vm279_vm1, %v340_v10 }
  0x45   : > { %374 = vst.msk [vmem:[#allocation2 + $0x61] sm:$0xff] %vm279_vm1, %v341_v16  ;;  %375 = vst.msk [vmem:[#allocation2 + $0x69] sm:$0xff] %vm279_vm1, %v342_v17  ;;  %v365_v16 = vld [vmem:[%s7633_s15 + $0xf0] sm:$0xff] }
  0x46   : > { %376 = vst.msk [vmem:[#allocation2 + $0x79] sm:$0xff] %vm279_vm1, %v343_v18  ;;  %377 = vst.msk [vmem:[#allocation2 + $0x81] sm:$0xff] %vm279_vm1, %v344_v19  ;;  %v7861_v17 = vld [vmem:[%s9485_s1 + $0x14] sm:$0xf]  ;;  %v366_v18 = vld [vmem:[%s7633_s15 + $0xf8] sm:$0xff] }
  0x47   : > { %378 = vst.msk [vmem:[#allocation2 + $0x91] sm:$0xff] %vm279_vm1, %v345_v20  ;;  %379 = vst.msk [vmem:[#allocation2 + $0x99] sm:$0xff] %vm279_vm1, %v346_v21  ;;  %6954 = vmatprep.subr.msk.mxu1 %vm563_vm0, %v7861_v17 }
  0x48   : > { %380 = vst.msk [vmem:[#allocation2 + $0xa9] sm:$0xff] %vm279_vm1, %v347_v22  ;;  %381 = vst.msk [vmem:[#allocation2 + $0xb1] sm:$0xff] %vm279_vm1, %v348_v23 }
  0x49   : > { %382 = vst.msk [vmem:[#allocation2 + $0xc1] sm:$0xff] %vm279_vm1, %v349_v24  ;;  %383 = vst.msk [vmem:[#allocation2 + $0xc9] sm:$0xff] %vm279_vm1, %v350_v25  ;;  %v7686_v30 = vld [vmem:[#allocation2 + $0x19] sm:$0xff]  ;;  %v7690_v32 = vld [vmem:[#allocation2 + $0x21] sm:$0xff] }
  0x4a   : > { %384 = vst.msk [vmem:[#allocation2 + $0xd9] sm:$0xff] %vm279_vm1, %v351_v26  ;;  %v7688_v31 = vld [vmem:[#allocation2 + $0x18] sm:$0xff]  ;;  %385 = vst.msk [vmem:[#allocation2 + $0xe1] sm:$0xff] %vm279_vm1, %v352_v27  ;;  %6709 = vmatprep.mubr.msk.f32.mxu0 %vm279_vm1, %v7686_v30  ;;  %v7699_v33 = vld [vmem:[#allocation2 + $0x20] sm:$0xff] }
  0x4b   : > { %386 = vst.msk [vmem:[#allocation2 + $0xf1] sm:$0xff] %vm279_vm1, %v353_v28  ;;  %387 = vst.msk [vmem:[#allocation2 + $0xf9] sm:$0xff] %vm279_vm1, %v354_v29  ;;  %6759 = vmatprep.mubr.msk.f32.mxu1 %vm279_vm1, %v7688_v31  ;;  %v7701_v34 = vld [vmem:[#allocation2 + $0x31] sm:$0xff]  ;;  %6710 = vmatmul.mubr.msk.f32.gmra.mxu0 %vm279_vm1, %v7690_v32  ;;  %v7713_v36 = vld [vmem:[#allocation2 + $0x39] sm:$0xff] }
  0x4c   : > { %v7703_v35 = vld [vmem:[#allocation2 + $0x30] sm:$0xff]  ;;  %6760 = vmatmul.mubr.msk.f32.gmra.mxu1 %vm279_vm1, %v7699_v33  ;;  %6712 = vmatprep.mubr.msk.f32.mxu0 %vm279_vm1, %v7701_v34  ;;  %v7715_v37 = vld [vmem:[#allocation2 + $0x38] sm:$0xff]  ;;  %v7719_v39 = vld [vmem:[#allocation2 + $0x48] sm:$0xff]  ;;  %388 = vst.msk [vmem:[#allocation2 + $0x109] sm:$0xff] %vm279_vm1, %v355_v50 }
  0x4d   : > { %9528 = vst [vmem:[#allocation4_spill] sm:$0xff] %v7703_v35  ;;  %6762 = vmatprep.mubr.msk.f32.mxu1 %vm279_vm1, %v7703_v35  ;;  %9529 = vst [vmem:[#allocation5_spill] sm:$0xff] %v7715_v37  ;;  %v7717_v38 = vld [vmem:[#allocation2 + $0x49] sm:$0xff]  ;;  %v7729_v40 = vld [vmem:[#allocation2 + $0x51] sm:$0xff] }
  0x4e   : > { %9530 = vst [vmem:[#allocation6_spill] sm:$0xff] %v7719_v39  ;;  %v7731_v41 = vld [vmem:[#allocation2 + $0x50] sm:$0xff]  ;;  %v7733_v42 = vld [vmem:[#allocation2 + $0x61] sm:$0xff]  ;;  %v7749_v46 = vld [vmem:[#allocation2 + $0x79] sm:$0xff] }
  0x4f   : > { %6713 = vmatmul.mubr.msk.f32.gmra.mxu0 %vm279_vm1, %v7713_v36  ;;  %9531 = vst [vmem:[#allocation7_spill] sm:$0xff] %v7731_v41  ;;  %v7735_v43 = vld [vmem:[#allocation2 + $0x60] sm:$0xff]  ;;  %v7745_v44 = vld [vmem:[#allocation2 + $0x69] sm:$0xff]  ;;  %v7751_v47 = vld [vmem:[#allocation2 + $0x78] sm:$0xff] }
  0x50   : > { %6763 = vmatmul.mubr.msk.f32.gmra.mxu1 %vm279_vm1, %v7715_v37  ;;  %6715 = vmatprep.mubr.msk.f32.mxu0 %vm279_vm1, %v7717_v38  ;;  %9532 = vst [vmem:[#allocation8_spill] sm:$0xff] %v7735_v43  ;;  %v7747_v45 = vld [vmem:[#allocation2 + $0x68] sm:$0xff]  ;;  %9534 = vst [vmem:[#allocation10_spill] sm:$0xff] %v7751_v47  ;;  %v7755_v49 = vld [vmem:[#allocation2 + $0x80] sm:$0xff] }
  0x51   : > { %6765 = vmatprep.mubr.msk.f32.mxu1 %vm279_vm1, %v7719_v39  ;;  %9533 = vst [vmem:[#allocation9_spill] sm:$0xff] %v7747_v45  ;;  %v7753_v48 = vld [vmem:[#allocation2 + $0x81] sm:$0xff]  ;;  %9535 = vst [vmem:[#allocation11_spill] sm:$0xff] %v7755_v49  ;;  %v7763_v52 = vld [vmem:[#allocation2 + $0x91] sm:$0xff] }
  0x52   : > { %389 = vst.msk [vmem:[#allocation2 + $0x111] sm:$0xff] %vm279_vm1, %v356_v51  ;;  %390 = vst.msk [vmem:[#allocation2 + $0x121] sm:$0xff] %vm279_vm1, %v357_v53  ;;  %v7780_v59 = vld [vmem:[#allocation2 + $0x90] sm:$0xff]  ;;  %v7797_v62 = vld [vmem:[#allocation2 + $0x99] sm:$0xff] }
  0x53   : > { %6716 = vmatmul.mubr.msk.f32.gmra.mxu0 %vm279_vm1, %v7729_v40  ;;  %391 = vst.msk [vmem:[#allocation2 + $0x129] sm:$0xff] %vm279_vm1, %v358_v54  ;;  %392 = vst.msk [vmem:[#allocation2 + $0x139] sm:$0xff] %vm279_vm1, %v359_v55  ;;  %v7799_v63 = vld [vmem:[#allocation2 + $0x98] sm:$0xff]  ;;  %v7801_v0 = vld [vmem:[#allocation2 + $0xa9] sm:$0xff] }
  0x54   : > { %6766 = vmatmul.mubr.msk.f32.gmra.mxu1 %vm279_vm1, %v7731_v41  ;;  %6718 = vmatprep.mubr.msk.f32.mxu0 %vm279_vm1, %v7733_v42  ;;  %9536 = vst [vmem:[#allocation12_spill] sm:$0xff] %v7780_v59  ;;  %393 = vst.msk [vmem:[#allocation2 + $0x141] sm:$0xff] %vm279_vm1, %v360_v56  ;;  %v7803_v1 = vld [vmem:[#allocation2 + $0xa8] sm:$0xff]  ;;  %v7813_v2 = vld [vmem:[#allocation2 + $0xb1] sm:$0xff] }
  0x55   : > { %6768 = vmatprep.mubr.msk.f32.mxu1 %vm279_vm1, %v7735_v43  ;;  %394 = vst.msk [vmem:[#allocation2 + $0x151] sm:$0xff] %vm279_vm1, %v361_v57  ;;  %395 = vst.msk [vmem:[#allocation2 + $0x159] sm:$0xff] %vm279_vm1, %v362_v58  ;;  %v7815_v4 = vld [vmem:[#allocation2 + $0xb0] sm:$0xff]  ;;  %v7817_v5 = vld [vmem:[#allocation2 + $0xc1] sm:$0xff] }
  0x56   : > { %396 = vst.msk [vmem:[#allocation2 + $0x169] sm:$0xff] %vm279_vm1, %v363_v60  ;;  %397 = vst.msk [vmem:[#allocation2 + $0x171] sm:$0xff] %vm279_vm1, %v364_v61  ;;  %v7819_v6 = vld [vmem:[#allocation2 + $0xc0] sm:$0xff]  ;;  %v7829_v7 = vld [vmem:[#allocation2 + $0xc9] sm:$0xff] }
  0x57   : > { %6719 = vmatmul.mubr.msk.f32.gmra.mxu0 %vm279_vm1, %v7745_v44  ;;  %9537 = vst [vmem:[#allocation13_spill] sm:$0xff] %v7799_v63  ;;  %9538 = vst [vmem:[#allocation14_spill] sm:$0xff] %v7803_v1  ;;  %v7831_v8 = vld [vmem:[#allocation2 + $0xc8] sm:$0xff]  ;;  %v7833_v9 = vld [vmem:[#allocation2 + $0xd9] sm:$0xff] }
  0x58   : > { %6769 = vmatmul.mubr.msk.f32.gmra.mxu1 %vm279_vm1, %v7747_v45  ;;  %6721 = vmatprep.mubr.msk.f32.mxu0 %vm279_vm1, %v7749_v46  ;;  %9539 = vst [vmem:[#allocation15_spill] sm:$0xff] %v7815_v4  ;;  %9540 = vst [vmem:[#allocation16_spill] sm:$0xff] %v7819_v6  ;;  %v7835_v10 = vld [vmem:[#allocation2 + $0xd8] sm:$0xff]  ;;  %v7845_v12 = vld [vmem:[#allocation2 + $0xe1] sm:$0xff] }
  0x59   : > { %6771 = vmatprep.mubr.msk.f32.mxu1 %vm279_vm1, %v7751_v47  ;;  %9541 = vst [vmem:[#allocation17_spill] sm:$0xff] %v7831_v8  ;;  %9542 = vst [vmem:[#allocation18_spill] sm:$0xff] %v7835_v10  ;;  %v7847_v13 = vld [vmem:[#allocation2 + $0xe0] sm:$0xff]  ;;  %v7849_v14 = vld [vmem:[#allocation2 + $0xf1] sm:$0xff] }
  0x5a   : > { %9543 = vst [vmem:[#allocation19_spill] sm:$0xff] %v7847_v13  ;;  %v7851_v15 = vld [vmem:[#allocation2 + $0xf0] sm:$0xff]  ;;  %v7868_v19 = vld [vmem:[#allocation2 + $0xf9] sm:$0xff]  ;;  %398 = vst.msk [vmem:[#allocation2 + $0x181] sm:$0xff] %vm279_vm1, %v365_v16 }
  0x5b   : > { %6722 = vmatmul.mubr.msk.f32.gmra.mxu0 %vm279_vm1, %v7753_v48  ;;  %9544 = vst [vmem:[#allocation20_spill] sm:$0xff] %v7851_v15  ;;  %v7870_v20 = vld [vmem:[#allocation2 + $0xf8] sm:$0xff]  ;;  %399 = vst.msk [vmem:[#allocation2 + $0x189] sm:$0xff] %vm279_vm1, %v366_v18  ;;  %v7874_v21 = vld [vmem:[#allocation2 + $0x109] sm:$0xff] }
  0x5c   : > { %6772 = vmatmul.mubr.msk.f32.gmra.mxu1 %vm279_vm1, %v7755_v49  ;;  %6724 = vmatprep.mubr.msk.f32.mxu0 %vm279_vm1, %v7763_v52  ;;  %9545 = vst [vmem:[#allocation21_spill] sm:$0xff] %v7870_v20  ;;  %v7876_v22 = vld [vmem:[#allocation2 + $0x108] sm:$0xff]  ;;  %v7888_v23 = vld [vmem:[#allocation2 + $0x111] sm:$0xff]  ;;  %v7894_v26 = vld [vmem:[#allocation2 + $0x120] sm:$0xff] }
  0x5d   : > { %6774 = vmatprep.mubr.msk.f32.mxu1 %vm279_vm1, %v7780_v59  ;;  %9546 = vst [vmem:[#allocation22_spill] sm:$0xff] %v7876_v22  ;;  %v7890_v24 = vld [vmem:[#allocation2 + $0x110] sm:$0xff]  ;;  %v7892_v25 = vld [vmem:[#allocation2 + $0x121] sm:$0xff]  ;;  %9548 = vst [vmem:[#allocation24_spill] sm:$0xff] %v7894_v26 }
  0x5e   : > { %9547 = vst [vmem:[#allocation23_spill] sm:$0xff] %v7890_v24  ;;  %v7904_v27 = vld [vmem:[#allocation2 + $0x129] sm:$0xff]  ;;  %v7908_v29 = vld [vmem:[#allocation2 + $0x139] sm:$0xff]  ;;  %v7920_v51 = vld [vmem:[#allocation2 + $0x141] sm:$0xff] }
  0x5f   : > { %6725 = vmatmul.mubr.msk.f32.gmra.mxu0 %vm279_vm1, %v7797_v62  ;;  %v7906_v28 = vld [vmem:[#allocation2 + $0x128] sm:$0xff]  ;;  %v7910_v50 = vld [vmem:[#allocation2 + $0x138] sm:$0xff]  ;;  %v7922_v53 = vld [vmem:[#allocation2 + $0x140] sm:$0xff] }
  0x60   : > { %6775 = vmatmul.mubr.msk.f32.gmra.mxu1 %vm279_vm1, %v7799_v63  ;;  %6727 = vmatprep.mubr.msk.f32.mxu0 %vm279_vm1, %v7801_v0  ;;  %9549 = vst [vmem:[#allocation25_spill] sm:$0xff] %v7906_v28  ;;  %9550 = vst [vmem:[#allocation26_spill] sm:$0xff] %v7910_v50  ;;  %v7924_v54 = vld [vmem:[#allocation2 + $0x151] sm:$0xff]  ;;  %v7936_v56 = vld [vmem:[#allocation2 + $0x159] sm:$0xff] }
  0x61   : > { %6777 = vmatprep.mubr.msk.f32.mxu1 %vm279_vm1, %v7803_v1  ;;  %9551 = vst [vmem:[#allocation27_spill] sm:$0xff] %v7922_v53  ;;  %v7926_v55 = vld [vmem:[#allocation2 + $0x150] sm:$0xff]  ;;  %v7938_v57 = vld [vmem:[#allocation2 + $0x158] sm:$0xff]  ;;  %v7942_v60 = vld [vmem:[#allocation2 + $0x168] sm:$0xff] }
  0x62   : > { %9552 = vst [vmem:[#allocation28_spill] sm:$0xff] %v7926_v55  ;;  %9553 = vst [vmem:[#allocation29_spill] sm:$0xff] %v7938_v57  ;;  %v7940_v58 = vld [vmem:[#allocation2 + $0x169] sm:$0xff]  ;;  %v7952_v61 = vld [vmem:[#allocation2 + $0x171] sm:$0xff] }
  0x63   : > { %6728 = vmatmul.mubr.msk.f32.gmra.mxu0 %vm279_vm1, %v7813_v2  ;;  %9554 = vst [vmem:[#allocation30_spill] sm:$0xff] %v7940_v58  ;;  %9555 = vst [vmem:[#allocation31_spill] sm:$0xff] %v7952_v61  ;;  %v7954_v16 = vld [vmem:[#allocation2 + $0x170] sm:$0xff]  ;;  %v1116_v18 = vld [vmem:[#allocation2 + $0x2] sm:$0xff] }
  0x64   : > { %6778 = vmatmul.mubr.msk.f32.gmra.mxu1 %vm279_vm1, %v7815_v4  ;;  %6730 = vmatprep.mubr.msk.f32.mxu0 %vm279_vm1, %v7817_v5 }
  0x65   : > { %6780 = vmatprep.mubr.msk.f32.mxu1 %vm279_vm1, %v7819_v6 }
  0x67   : > { %6731 = vmatmul.mubr.msk.f32.gmra.mxu0 %vm279_vm1, %v7829_v7 }
  0x68   : > { %6781 = vmatmul.mubr.msk.f32.gmra.mxu1 %vm279_vm1, %v7831_v8  ;;  %6733 = vmatprep.mubr.msk.f32.mxu0 %vm279_vm1, %v7833_v9 }
  0x69   : > { %6783 = vmatprep.mubr.msk.f32.mxu1 %vm279_vm1, %v7835_v10 }
  0x6b   : > { %6734 = vmatmul.mubr.msk.f32.gmra.mxu0 %vm279_vm1, %v7845_v12 }
  0x6c   : > { %6784 = vmatmul.mubr.msk.f32.gmra.mxu1 %vm279_vm1, %v7847_v13  ;;  %6736 = vmatprep.mubr.msk.f32.mxu0 %vm279_vm1, %v7849_v14 }
  0x6d   : > { %6786 = vmatprep.mubr.msk.f32.mxu1 %vm279_vm1, %v7851_v15 }
  0x6f   : > { %6737 = vmatmul.mubr.msk.f32.gmra.mxu0 %vm279_vm1, %v7868_v19 }
  0x70   : > { %6787 = vmatmul.mubr.msk.f32.gmra.mxu1 %vm279_vm1, %v7870_v20  ;;  %6739 = vmatprep.mubr.msk.f32.mxu0 %vm279_vm1, %v7874_v21 }
  0x71   : > { %6789 = vmatprep.mubr.msk.f32.mxu1 %vm279_vm1, %v7876_v22 }
  0x73   : > { %6740 = vmatmul.mubr.msk.f32.gmra.mxu0 %vm279_vm1, %v7888_v23 }
  0x74   : > { %6790 = vmatmul.mubr.msk.f32.gmra.mxu1 %vm279_vm1, %v7890_v24  ;;  %6742 = vmatprep.mubr.msk.f32.mxu0 %vm279_vm1, %v7892_v25 }
  0x75   : > { %6792 = vmatprep.mubr.msk.f32.mxu1 %vm279_vm1, %v7894_v26 }
  0x77   : > { %6743 = vmatmul.mubr.msk.f32.gmra.mxu0 %vm279_vm1, %v7904_v27 }
  0x78   : > { %6793 = vmatmul.mubr.msk.f32.gmra.mxu1 %vm279_vm1, %v7906_v28  ;;  %6745 = vmatprep.mubr.msk.f32.mxu0 %vm279_vm1, %v7908_v29 }
  0x79   : > { %6795 = vmatprep.mubr.msk.f32.mxu1 %vm279_vm1, %v7910_v50 }
  0x7b   : > { %6746 = vmatmul.mubr.msk.f32.gmra.mxu0 %vm279_vm1, %v7920_v51 }
  0x7c   : > { %6796 = vmatmul.mubr.msk.f32.gmra.mxu1 %vm279_vm1, %v7922_v53  ;;  %6748 = vmatprep.mubr.msk.f32.mxu0 %vm279_vm1, %v7924_v54 }
  0x7d   : > { %6798 = vmatprep.mubr.msk.f32.mxu1 %vm279_vm1, %v7926_v55 }
  0x7f   : > { %6749 = vmatmul.mubr.msk.f32.gmra.mxu0 %vm279_vm1, %v7936_v56 }
  0x80   : > { %6799 = vmatmul.mubr.msk.f32.gmra.mxu1 %vm279_vm1, %v7938_v57  ;;  %6751 = vmatprep.mubr.msk.f32.mxu0 %vm279_vm1, %v7940_v58  ;;  %v7963_v58 = vld [vmem:[#allocation2 + $0x1a] sm:$0xff] }
  0x81   : > { %6801 = vmatprep.mubr.msk.f32.mxu1 %vm279_vm1, %v7942_v60 }
  0x83   : > { %6752 = vmatmul.mubr.msk.f32.gmra.mxu0 %vm279_vm1, %v7952_v61  ;;  %v7971_v61 = vld [vmem:[%s9485_s1 + $0x18] sm:$0xf] }
  0x84   : > { %6802 = vmatmul.mubr.msk.f32.gmra.mxu1 %vm279_vm1, %v7954_v16  ;;  %6806 = vmatprep.mubr.msk.f32.mxu0 %vm279_vm1, %v1116_v18  ;;  %v7976_v18 = vld [vmem:[%s9485_s1 + $0x1c] sm:$0xf] }
  0x85   : > { %6856 = vmatprep.mubr.msk.f32.mxu1 %vm279_vm1, %v7688_v31  ;;  %v7986_v31 = vld [vmem:[#allocation2 + $0x32] sm:$0xff] }
  0x87   : > { %6807 = vmatmul.mubr.msk.f32.vlgmr.msra.gmra.mxu0 %vm279_vm1, %v1117_v3  ;;  %v7982_v3 = vld [vmem:[#allocation2 + $0x22] sm:$0xff] }
  0x88   : > { %6857 = vmatmul.mubr.msk.f32.vlgmr.msra.gmra.mxu1 %vm279_vm1, %v7699_v33  ;;  %6905 = vmatpush3.msk.msra.mxu0 %vm563_vm0, %v7647_v11  ;;  %v8000_v11 = vld [vmem:[#allocation2 + $0x3a] sm:$0xff]  ;;  %v8004_v33 = vld [vmem:[#allocation2 + $0x4a] sm:$0xff] }
  0x89   : > { %6809 = vmatprep.mubr.msk.f32.mxu0 %vm279_vm1, %v7963_v58  ;;  %6859 = vmatprep.mubr.msk.f32.mxu1 %vm279_vm1, %v7703_v35  ;;  %v8150_v35 = vld [vmem:[#allocation2 + $0x180] sm:$0xff] }
  0x8a   : > { %6955 = vmatpush3.msk.msra.mxu1 %vm563_vm0, %v7861_v17  ;;  %7004 = vmatprep.subr.msk.mxu0 %vm563_vm0, %v7971_v61  ;;  %v8012_v17 = vld [vmem:[#allocation2 + $0x52] sm:$0xff]  ;;  %9556 = vst [vmem:[#allocation32_spill] sm:$0xff] %v8150_v35 }
  0x8b   : > { %7054 = vmatprep.subr.msk.mxu1 %vm563_vm0, %v7976_v18  ;;  %6810 = vmatmul.mubr.msk.f32.gmra.mxu0 %vm279_vm1, %v7982_v3 }
  0x8c   : > { %6860 = vmatmul.mubr.msk.f32.gmra.mxu1 %vm279_vm1, %v7715_v37  ;;  %6812 = vmatprep.mubr.msk.f32.mxu0 %vm279_vm1, %v7986_v31  ;;  %v8016_v37 = vld [vmem:[#allocation2 + $0x62] sm:$0xff] }
  0x8d   : > { %6862 = vmatprep.mubr.msk.f32.mxu1 %vm279_vm1, %v7719_v39  ;;  %v8028_v39 = vld [vmem:[#allocation2 + $0x7a] sm:$0xff] }
  0x8f   : > { %6813 = vmatmul.mubr.msk.f32.gmra.mxu0 %vm279_vm1, %v8000_v11 }
  0x90   : > { %6863 = vmatmul.mubr.msk.f32.gmra.mxu1 %vm279_vm1, %v7731_v41  ;;  %6815 = vmatprep.mubr.msk.f32.mxu0 %vm279_vm1, %v8004_v33  ;;  %v8024_v41 = vld [vmem:[#allocation2 + $0x6a] sm:$0xff] }
  0x91   : > { %6865 = vmatprep.mubr.msk.f32.mxu1 %vm279_vm1, %v7735_v43  ;;  %v8040_v43 = vld [vmem:[#allocation2 + $0x92] sm:$0xff] }
  0x93   : > { %6816 = vmatmul.mubr.msk.f32.gmra.mxu0 %vm279_vm1, %v8012_v17 }
  0x94   : > { %6866 = vmatmul.mubr.msk.f32.gmra.mxu1 %vm279_vm1, %v7747_v45  ;;  %6818 = vmatprep.mubr.msk.f32.mxu0 %vm279_vm1, %v8016_v37  ;;  %v8036_v45 = vld [vmem:[#allocation2 + $0x82] sm:$0xff] }
  0x95   : > { %6868 = vmatprep.mubr.msk.f32.mxu1 %vm279_vm1, %v7751_v47  ;;  %v8052_v47 = vld [vmem:[#allocation2 + $0xaa] sm:$0xff] }
  0x97   : > { %6819 = vmatmul.mubr.msk.f32.gmra.mxu0 %vm279_vm1, %v8024_v41 }
  0x98   : > { %6869 = vmatmul.mubr.msk.f32.gmra.mxu1 %vm279_vm1, %v7755_v49  ;;  %6821 = vmatprep.mubr.msk.f32.mxu0 %vm279_vm1, %v8028_v39  ;;  %v8048_v49 = vld [vmem:[#allocation2 + $0x9a] sm:$0xff] }
  0x99   : > { %6871 = vmatprep.mubr.msk.f32.mxu1 %vm279_vm1, %v7780_v59  ;;  %v8064_v59 = vld [vmem:[#allocation2 + $0xc2] sm:$0xff] }
  0x9b   : > { %6822 = vmatmul.mubr.msk.f32.gmra.mxu0 %vm279_vm1, %v8036_v45 }
  0x9c   : > { %6872 = vmatmul.mubr.msk.f32.gmra.mxu1 %vm279_vm1, %v7799_v63  ;;  %6824 = vmatprep.mubr.msk.f32.mxu0 %vm279_vm1, %v8040_v43  ;;  %v8060_v63 = vld [vmem:[#allocation2 + $0xb2] sm:$0xff] }
  0x9d   : > { %6874 = vmatprep.mubr.msk.f32.mxu1 %vm279_vm1, %v7803_v1  ;;  %v8076_v1 = vld [vmem:[#allocation2 + $0xda] sm:$0xff] }
  0x9f   : > { %6825 = vmatmul.mubr.msk.f32.gmra.mxu0 %vm279_vm1, %v8048_v49 }
  0xa0   : > { %6875 = vmatmul.mubr.msk.f32.gmra.mxu1 %vm279_vm1, %v7815_v4  ;;  %6827 = vmatprep.mubr.msk.f32.mxu0 %vm279_vm1, %v8052_v47  ;;  %v8072_v4 = vld [vmem:[#allocation2 + $0xca] sm:$0xff] }
  0xa1   : > { %6877 = vmatprep.mubr.msk.f32.mxu1 %vm279_vm1, %v7819_v6  ;;  %v8088_v6 = vld [vmem:[#allocation2 + $0xf2] sm:$0xff] }
  0xa3   : > { %6828 = vmatmul.mubr.msk.f32.gmra.mxu0 %vm279_vm1, %v8060_v63 }
  0xa4   : > { %6878 = vmatmul.mubr.msk.f32.gmra.mxu1 %vm279_vm1, %v7831_v8  ;;  %6830 = vmatprep.mubr.msk.f32.mxu0 %vm279_vm1, %v8064_v59  ;;  %v8084_v8 = vld [vmem:[#allocation2 + $0xe2] sm:$0xff] }
  0xa5   : > { %6880 = vmatprep.mubr.msk.f32.mxu1 %vm279_vm1, %v7835_v10  ;;  %v8100_v10 = vld [vmem:[#allocation2 + $0x10a] sm:$0xff] }
  0xa7   : > { %6831 = vmatmul.mubr.msk.f32.gmra.mxu0 %vm279_vm1, %v8072_v4 }
  0xa8   : > { %6881 = vmatmul.mubr.msk.f32.gmra.mxu1 %vm279_vm1, %v7847_v13  ;;  %6833 = vmatprep.mubr.msk.f32.mxu0 %vm279_vm1, %v8076_v1  ;;  %v8096_v13 = vld [vmem:[#allocation2 + $0xfa] sm:$0xff] }
  0xa9   : > { %6883 = vmatprep.mubr.msk.f32.mxu1 %vm279_vm1, %v7851_v15  ;;  %v8112_v15 = vld [vmem:[#allocation2 + $0x122] sm:$0xff] }
  0xab   : > { %6834 = vmatmul.mubr.msk.f32.gmra.mxu0 %vm279_vm1, %v8084_v8 }
  0xac   : > { %6884 = vmatmul.mubr.msk.f32.gmra.mxu1 %vm279_vm1, %v7870_v20  ;;  %6836 = vmatprep.mubr.msk.f32.mxu0 %vm279_vm1, %v8088_v6  ;;  %v8108_v20 = vld [vmem:[#allocation2 + $0x112] sm:$0xff] }
  0xad   : > { %6886 = vmatprep.mubr.msk.f32.mxu1 %vm279_vm1, %v7876_v22  ;;  %v8124_v22 = vld [vmem:[#allocation2 + $0x13a] sm:$0xff] }
  0xaf   : > { %6837 = vmatmul.mubr.msk.f32.gmra.mxu0 %vm279_vm1, %v8096_v13 }
  0xb0   : > { %6887 = vmatmul.mubr.msk.f32.gmra.mxu1 %vm279_vm1, %v7890_v24  ;;  %6839 = vmatprep.mubr.msk.f32.mxu0 %vm279_vm1, %v8100_v10  ;;  %v8120_v24 = vld [vmem:[#allocation2 + $0x12a] sm:$0xff] }
  0xb1   : > { %6889 = vmatprep.mubr.msk.f32.mxu1 %vm279_vm1, %v7894_v26  ;;  %v8136_v26 = vld [vmem:[#allocation2 + $0x152] sm:$0xff] }
  0xb3   : > { %6840 = vmatmul.mubr.msk.f32.gmra.mxu0 %vm279_vm1, %v8108_v20 }
  0xb4   : > { %6890 = vmatmul.mubr.msk.f32.gmra.mxu1 %vm279_vm1, %v7906_v28  ;;  %6842 = vmatprep.mubr.msk.f32.mxu0 %vm279_vm1, %v8112_v15  ;;  %v8132_v28 = vld [vmem:[#allocation2 + $0x142] sm:$0xff] }
  0xb5   : > { %6892 = vmatprep.mubr.msk.f32.mxu1 %vm279_vm1, %v7910_v50  ;;  %v8148_v50 = vld [vmem:[#allocation2 + $0x16a] sm:$0xff] }
  0xb7   : > { %6843 = vmatmul.mubr.msk.f32.gmra.mxu0 %vm279_vm1, %v8120_v24 }
  0xb8   : > { %6893 = vmatmul.mubr.msk.f32.gmra.mxu1 %vm279_vm1, %v7922_v53  ;;  %6845 = vmatprep.mubr.msk.f32.mxu0 %vm279_vm1, %v8124_v22  ;;  %v8144_v53 = vld [vmem:[#allocation2 + $0x15a] sm:$0xff] }
  0xb9   : > { %6895 = vmatprep.mubr.msk.f32.mxu1 %vm279_vm1, %v7926_v55  ;;  %v8162_v55 = vld [vmem:[#allocation2 + $0x188] sm:$0xff] }
  0xbb   : > { %6846 = vmatmul.mubr.msk.f32.gmra.mxu0 %vm279_vm1, %v8132_v28 }
  0xbc   : > { %6896 = vmatmul.mubr.msk.f32.gmra.mxu1 %vm279_vm1, %v7938_v57  ;;  %6848 = vmatprep.mubr.msk.f32.mxu0 %vm279_vm1, %v8136_v26  ;;  %v8158_v57 = vld [vmem:[#allocation2 + $0x172] sm:$0xff] }
  0xbd   : > { %6898 = vmatprep.mubr.msk.f32.mxu1 %vm279_vm1, %v7942_v60 }
  0xbf   : > { %6849 = vmatmul.mubr.msk.f32.gmra.mxu0 %vm279_vm1, %v8144_v53 }
  0xc0   : > { %6899 = vmatmul.mubr.msk.f32.gmra.mxu1 %vm279_vm1, %v7954_v16  ;;  %6851 = vmatprep.mubr.msk.f32.mxu0 %vm279_vm1, %v8148_v50 }
  0xc1   : > { %6901 = vmatprep.mubr.msk.f32.mxu1 %vm279_vm1, %v8150_v35  ;;  %v8179_v35 = vld [vmem:[%s9485_s1 + $0x20] sm:$0xf] }
  0xc3   : > { %6852 = vmatmul.mubr.msk.f32.gmra.mxu0 %vm279_vm1, %v8158_v57 }
  0xc4   : > { %6902 = vmatmul.mubr.msk.f32.gmra.mxu1 %vm279_vm1, %v8162_v55  ;;  %6906 = vmatprep.mubr.msk.f32.mxu0 %vm279_vm1, %v7686_v30  ;;  %v9557_v30 = vld [vmem:[#allocation30_spill] sm:$0xff] }
  0xc5   : > { %6956 = vmatprep.mubr.msk.f32.mxu1 %vm279_vm1, %v7963_v58 }
  0xc7   : > { %6907 = vmatmul.mubr.msk.f32.vlgmr.msra.gmra.mxu0 %vm279_vm1, %v7690_v32  ;;  %v8295_v32 = vld [vmem:[#allocation2 + $0x181] sm:$0xff] }
  0xc8   : > { %6957 = vmatmul.mubr.msk.f32.vlgmr.msra.gmra.mxu1 %vm279_vm1, %v7982_v3  ;;  %7005 = vmatpush3.msk.msra.mxu0 %vm563_vm0, %v7971_v61  ;;  %v9561_v61 = vld [vmem:[#allocation6_spill] sm:$0xff]  ;;  %v9562_v3 = vld [vmem:[#allocation7_spill] sm:$0xff] }
  0xc9   : > { %6909 = vmatprep.mubr.msk.f32.mxu0 %vm279_vm1, %v7701_v34  ;;  %6959 = vmatprep.mubr.msk.f32.mxu1 %vm279_vm1, %v7986_v31 }
  0xca   : > { %7055 = vmatpush3.msk.msra.mxu1 %vm563_vm0, %v7976_v18  ;;  %7104 = vmatprep.subr.msk.mxu0 %vm563_vm0, %v8179_v35 }
  0xcb   : > { %6910 = vmatmul.mubr.msk.f32.gmra.mxu0 %vm279_vm1, %v7713_v36 }
  0xcc   : > { %6960 = vmatmul.mubr.msk.f32.gmra.mxu1 %vm279_vm1, %v8000_v11  ;;  %6912 = vmatprep.mubr.msk.f32.mxu0 %vm279_vm1, %v7717_v38 }
  0xcd   : > { %6962 = vmatprep.mubr.msk.f32.mxu1 %vm279_vm1, %v8004_v33 }
  0xcf   : > { %6913 = vmatmul.mubr.msk.f32.gmra.mxu0 %vm279_vm1, %v7729_v40 }
  0xd0   : > { %6963 = vmatmul.mubr.msk.f32.gmra.mxu1 %vm279_vm1, %v8012_v17  ;;  %6915 = vmatprep.mubr.msk.f32.mxu0 %vm279_vm1, %v7733_v42 }
  0xd1   : > { %6965 = vmatprep.mubr.msk.f32.mxu1 %vm279_vm1, %v8016_v37 }
  0xd3   : > { %6916 = vmatmul.mubr.msk.f32.gmra.mxu0 %vm279_vm1, %v7745_v44 }
  0xd4   : > { %6966 = vmatmul.mubr.msk.f32.gmra.mxu1 %vm279_vm1, %v8024_v41  ;;  %6918 = vmatprep.mubr.msk.f32.mxu0 %vm279_vm1, %v7749_v46 }
  0xd5   : > { %6968 = vmatprep.mubr.msk.f32.mxu1 %vm279_vm1, %v8028_v39 }
  0xd7   : > { %6919 = vmatmul.mubr.msk.f32.gmra.mxu0 %vm279_vm1, %v7753_v48 }
  0xd8   : > { %6969 = vmatmul.mubr.msk.f32.gmra.mxu1 %vm279_vm1, %v8036_v45  ;;  %6921 = vmatprep.mubr.msk.f32.mxu0 %vm279_vm1, %v7763_v52 }
  0xd9   : > { %6971 = vmatprep.mubr.msk.f32.mxu1 %vm279_vm1, %v8040_v43 }
  0xdb   : > { %6922 = vmatmul.mubr.msk.f32.gmra.mxu0 %vm279_vm1, %v7797_v62 }
  0xdc   : > { %6972 = vmatmul.mubr.msk.f32.gmra.mxu1 %vm279_vm1, %v8048_v49  ;;  %6924 = vmatprep.mubr.msk.f32.mxu0 %vm279_vm1, %v7801_v0 }
  0xdd   : > { %6974 = vmatprep.mubr.msk.f32.mxu1 %vm279_vm1, %v8052_v47 }
  0xdf   : > { %6925 = vmatmul.mubr.msk.f32.gmra.mxu0 %vm279_vm1, %v7813_v2 }
  0xe0   : > { %6975 = vmatmul.mubr.msk.f32.gmra.mxu1 %vm279_vm1, %v8060_v63  ;;  %6927 = vmatprep.mubr.msk.f32.mxu0 %vm279_vm1, %v7817_v5 }
  0xe1   : > { %6977 = vmatprep.mubr.msk.f32.mxu1 %vm279_vm1, %v8064_v59 }
  0xe3   : > { %6928 = vmatmul.mubr.msk.f32.gmra.mxu0 %vm279_vm1, %v7829_v7 }
  0xe4   : > { %6978 = vmatmul.mubr.msk.f32.gmra.mxu1 %vm279_vm1, %v8072_v4  ;;  %6930 = vmatprep.mubr.msk.f32.mxu0 %vm279_vm1, %v7833_v9 }
  0xe5   : > { %6980 = vmatprep.mubr.msk.f32.mxu1 %vm279_vm1, %v8076_v1 }
  0xe7   : > { %6931 = vmatmul.mubr.msk.f32.gmra.mxu0 %vm279_vm1, %v7845_v12 }
  0xe8   : > { %6981 = vmatmul.mubr.msk.f32.gmra.mxu1 %vm279_vm1, %v8084_v8  ;;  %6933 = vmatprep.mubr.msk.f32.mxu0 %vm279_vm1, %v7849_v14 }
  0xe9   : > { %6983 = vmatprep.mubr.msk.f32.mxu1 %vm279_vm1, %v8088_v6 }
  0xeb   : > { %6934 = vmatmul.mubr.msk.f32.gmra.mxu0 %vm279_vm1, %v7868_v19 }
  0xec   : > { %6984 = vmatmul.mubr.msk.f32.gmra.mxu1 %vm279_vm1, %v8096_v13  ;;  %6936 = vmatprep.mubr.msk.f32.mxu0 %vm279_vm1, %v7874_v21  ;;  %v9558_v13 = vld [vmem:[#allocation31_spill] sm:$0xff] }
  0xed   : > { %6986 = vmatprep.mubr.msk.f32.mxu1 %vm279_vm1, %v8100_v10  ;;  %v8297_v10 = vld [vmem:[#allocation2 + $0x182] sm:$0xff] }
  0xef   : > { %6937 = vmatmul.mubr.msk.f32.gmra.mxu0 %vm279_vm1, %v7888_v23 }
  0xf0   : > { %6987 = vmatmul.mubr.msk.f32.gmra.mxu1 %vm279_vm1, %v8108_v20  ;;  %6939 = vmatprep.mubr.msk.f32.mxu0 %vm279_vm1, %v7892_v25  ;;  %v8309_v20 = vld [vmem:[#allocation2 + $0x18a] sm:$0xff] }
  0xf1   : > { %6989 = vmatprep.mubr.msk.f32.mxu1 %vm279_vm1, %v8112_v15  ;;  %v8305_v15 = vld [vmem:[#allocation2 + $0x189] sm:$0xff] }
  0xf3   : > { %6940 = vmatmul.mubr.msk.f32.gmra.mxu0 %vm279_vm1, %v7904_v27 }
  0xf4   : > { %6990 = vmatmul.mubr.msk.f32.gmra.mxu1 %vm279_vm1, %v8120_v24  ;;  %6942 = vmatprep.mubr.msk.f32.mxu0 %vm279_vm1, %v7908_v29 }
  0xf5   : > { %6992 = vmatprep.mubr.msk.f32.mxu1 %vm279_vm1, %v8124_v22  ;;  %v9559_v22 = vld [vmem:[#allocation4_spill] sm:$0xff] }
  0xf7   : > { %6943 = vmatmul.mubr.msk.f32.gmra.mxu0 %vm279_vm1, %v7920_v51 }
  0xf8   : > { %6993 = vmatmul.mubr.msk.f32.gmra.mxu1 %vm279_vm1, %v8132_v28  ;;  %6945 = vmatprep.mubr.msk.f32.mxu0 %vm279_vm1, %v7924_v54  ;;  %v6708_v24 = vpop.f32.mrf.mxu0 }
  0xf9   : > { %6995 = vmatprep.mubr.msk.f32.mxu1 %vm279_vm1, %v8136_v26  ;;  %v6758_v26 = vpop.f32.mrf.mxu1 }
  0xfa   : > { %v8319_v28 = vadd.f32 %v6758_v26, %v6708_v24 }
  0xfb   : > { %6946 = vmatmul.mubr.msk.f32.gmra.mxu0 %vm279_vm1, %v7936_v56 }
  0xfc   : > { %6996 = vmatmul.mubr.msk.f32.gmra.mxu1 %vm279_vm1, %v8144_v53  ;;  %6948 = vmatprep.mubr.msk.f32.mxu0 %vm279_vm1, %v9557_v30  ;;  %v957_v53 = vpop.f32.mrf.mxu1 }
  0xfd   : > { %6998 = vmatprep.mubr.msk.f32.mxu1 %vm279_vm1, %v8148_v50  ;;  %v633_v50 = vpop.f32.mrf.mxu0 }
  0xfe   : > { %v8325_v58 = vadd.f32 %v957_v53, %v633_v50  ;;  %v9564_v53 = vld [vmem:[#allocation9_spill] sm:$0xff] }
  0xff   : > { %6949 = vmatmul.mubr.msk.f32.gmra.mxu0 %vm279_vm1, %v9558_v13 }
 0x100   : > { %6999 = vmatmul.mubr.msk.f32.gmra.mxu1 %vm279_vm1, %v8158_v57  ;;  %6951 = vmatprep.mubr.msk.f32.mxu0 %vm279_vm1, %v8295_v32  ;;  %v9560_v57 = vld [vmem:[#allocation5_spill] sm:$0xff] }
 0x101   : > { %7001 = vmatprep.mubr.msk.f32.mxu1 %vm279_vm1, %v8297_v10 }
 0x103   : > { %6952 = vmatmul.mubr.msk.f32.gmra.mxu0 %vm279_vm1, %v8305_v15 }
 0x104   : > { %7002 = vmatmul.mubr.msk.f32.gmra.mxu1 %vm279_vm1, %v8309_v20  ;;  %7006 = vmatprep.mubr.msk.f32.mxu0 %vm279_vm1, %v9559_v22  ;;  %v9563_v22 = vld [vmem:[#allocation8_spill] sm:$0xff] }
 0x105   : > { %7056 = vmatprep.mubr.msk.f32.mxu1 %vm279_vm1, %v7701_v34 }
 0x107   : > { %7007 = vmatmul.mubr.msk.f32.vlgmr.msra.gmra.mxu0 %vm279_vm1, %v9560_v57  ;;  %v9565_v57 = vld [vmem:[#allocation10_spill] sm:$0xff] }
 0x108   : > { %7057 = vmatmul.mubr.msk.f32.vlgmr.msra.gmra.mxu1 %vm279_vm1, %v7713_v36  ;;  %7105 = vmatpush3.msk.msra.mxu0 %vm563_vm0, %v8179_v35 }
 0x109   : > { %7009 = vmatprep.mubr.msk.f32.mxu0 %vm279_vm1, %v9561_v61  ;;  %7059 = vmatprep.mubr.msk.f32.mxu1 %vm279_vm1, %v7717_v38 }
 0x10b   : > { %v6711_v34 = vpop.f32.mrf.mxu0  ;;  %7010 = vmatmul.mubr.msk.f32.gmra.mxu0 %vm279_vm1, %v9562_v3 }
 0x10c   : > { %v6761_v18 = vpop.f32.mrf.mxu1  ;;  %7060 = vmatmul.mubr.msk.f32.gmra.mxu1 %vm279_vm1, %v7729_v40  ;;  %7012 = vmatprep.mubr.msk.f32.mxu0 %vm279_vm1, %v9563_v22  ;;  %v9566_v22 = vld [vmem:[#allocation11_spill] sm:$0xff] }
 0x10d   : > { %v8337_v36 = vadd.f32 %v6761_v18, %v6711_v34  ;;  %7062 = vmatprep.mubr.msk.f32.mxu1 %vm279_vm1, %v7733_v42  ;;  %v643_v35 = vpop.f32.mrf.mxu0 }
 0x10e   : > { %v967_v24 = vpop.f32.mrf.mxu1 }
 0x10f   : > { %v8343_v26 = vadd.f32 %v967_v24, %v643_v35  ;;  %v6714_v38 = vpop.f32.mrf.mxu0  ;;  %7013 = vmatmul.mubr.msk.f32.gmra.mxu0 %vm279_vm1, %v9564_v53  ;;  %v9567_v35 = vld [vmem:[#allocation12_spill] sm:$0xff] }
 0x110   : > { %v6764_v50 = vpop.f32.mrf.mxu1  ;;  %7063 = vmatmul.mubr.msk.f32.gmra.mxu1 %vm279_vm1, %v7745_v44  ;;  %7015 = vmatprep.mubr.msk.f32.mxu0 %vm279_vm1, %v9565_v57  ;;  %v9568_v57 = vld [vmem:[#allocation13_spill] sm:$0xff] }
 0x111   : > { %v8349_v40 = vadd.f32 %v6764_v50, %v6714_v38  ;;  %7065 = vmatprep.mubr.msk.f32.mxu1 %vm279_vm1, %v7749_v46  ;;  %v653_v42 = vpop.f32.mrf.mxu0 }
 0x112   : > { %v977_v61 = vpop.f32.mrf.mxu1 }
 0x113   : > { %v8355_v34 = vadd.f32 %v977_v61, %v653_v42  ;;  %v6717_v18 = vpop.f32.mrf.mxu0  ;;  %7016 = vmatmul.mubr.msk.f32.gmra.mxu0 %vm279_vm1, %v9566_v22  ;;  %v9569_v42 = vld [vmem:[#allocation14_spill] sm:$0xff] }
 0x114   : > { %v6767_v3 = vpop.f32.mrf.mxu1  ;;  %7066 = vmatmul.mubr.msk.f32.gmra.mxu1 %vm279_vm1, %v7753_v48  ;;  %7018 = vmatprep.mubr.msk.f32.mxu0 %vm279_vm1, %v9567_v35  ;;  %v9570_v35 = vld [vmem:[#allocation15_spill] sm:$0xff] }
 0x115   : > { %v8361_v44 = vadd.f32 %v6767_v3, %v6717_v18  ;;  %7068 = vmatprep.mubr.msk.f32.mxu1 %vm279_vm1, %v7763_v52  ;;  %v663_v46 = vpop.f32.mrf.mxu0 }
 0x116   : > { %v987_v24 = vpop.f32.mrf.mxu1 }
 0x117   : > { %v8367_v38 = vadd.f32 %v987_v24, %v663_v46  ;;  %v6720_v50 = vpop.f32.mrf.mxu0  ;;  %7019 = vmatmul.mubr.msk.f32.gmra.mxu0 %vm279_vm1, %v9568_v57  ;;  %v9571_v46 = vld [vmem:[#allocation16_spill] sm:$0xff] }
 0x118   : > { %v6770_v53 = vpop.f32.mrf.mxu1  ;;  %7069 = vmatmul.mubr.msk.f32.gmra.mxu1 %vm279_vm1, %v7797_v62  ;;  %7021 = vmatprep.mubr.msk.f32.mxu0 %vm279_vm1, %v9569_v42  ;;  %v9572_v42 = vld [vmem:[#allocation17_spill] sm:$0xff] }
 0x119   : > { %v8373_v48 = vadd.f32 %v6770_v53, %v6720_v50  ;;  %7071 = vmatprep.mubr.msk.f32.mxu1 %vm279_vm1, %v7801_v0  ;;  %v673_v52 = vpop.f32.mrf.mxu0 }
 0x11a   : > { %v997_v61 = vpop.f32.mrf.mxu1 }
 0x11b   : > { %v8379_v18 = vadd.f32 %v997_v61, %v673_v52  ;;  %v6723_v3 = vpop.f32.mrf.mxu0  ;;  %7022 = vmatmul.mubr.msk.f32.gmra.mxu0 %vm279_vm1, %v9570_v35  ;;  %v9573_v52 = vld [vmem:[#allocation18_spill] sm:$0xff] }
 0x11c   : > { %v6773_v22 = vpop.f32.mrf.mxu1  ;;  %7072 = vmatmul.mubr.msk.f32.gmra.mxu1 %vm279_vm1, %v7813_v2  ;;  %7024 = vmatprep.mubr.msk.f32.mxu0 %vm279_vm1, %v9571_v46  ;;  %v9574_v46 = vld [vmem:[#allocation19_spill] sm:$0xff] }
 0x11d   : > { %v8385_v62 = vadd.f32 %v6773_v22, %v6723_v3  ;;  %7074 = vmatprep.mubr.msk.f32.mxu1 %vm279_vm1, %v7817_v5  ;;  %v683_v0 = vpop.f32.mrf.mxu0 }
 0x11e   : > { %v1007_v24 = vpop.f32.mrf.mxu1 }
 0x11f   : > { %v8391_v50 = vadd.f32 %v1007_v24, %v683_v0  ;;  %v6726_v53 = vpop.f32.mrf.mxu0  ;;  %7025 = vmatmul.mubr.msk.f32.gmra.mxu0 %vm279_vm1, %v9572_v42  ;;  %v9575_v0 = vld [vmem:[#allocation20_spill] sm:$0xff] }
 0x120   : > { %v6776_v57 = vpop.f32.mrf.mxu1  ;;  %7075 = vmatmul.mubr.msk.f32.gmra.mxu1 %vm279_vm1, %v7829_v7  ;;  %7027 = vmatprep.mubr.msk.f32.mxu0 %vm279_vm1, %v9573_v52  ;;  %v9576_v52 = vld [vmem:[#allocation21_spill] sm:$0xff] }
 0x121   : > { %v8397_v2 = vadd.f32 %v6776_v57, %v6726_v53  ;;  %7077 = vmatprep.mubr.msk.f32.mxu1 %vm279_vm1, %v7833_v9  ;;  %v693_v5 = vpop.f32.mrf.mxu0 }
 0x122   : > { %v1017_v61 = vpop.f32.mrf.mxu1 }
 0x123   : > { %v8403_v3 = vadd.f32 %v1017_v61, %v693_v5  ;;  %v6729_v22 = vpop.f32.mrf.mxu0  ;;  %7028 = vmatmul.mubr.msk.f32.gmra.mxu0 %vm279_vm1, %v9574_v46  ;;  %v9577_v5 = vld [vmem:[#allocation22_spill] sm:$0xff]  ;;  %v9578_v46 = vld [vmem:[#allocation23_spill] sm:$0xff] }
 0x124   : > { %v6779_v35 = vpop.f32.mrf.mxu1  ;;  %7078 = vmatmul.mubr.msk.f32.gmra.mxu1 %vm279_vm1, %v7845_v12  ;;  %7030 = vmatprep.mubr.msk.f32.mxu0 %vm279_vm1, %v9575_v0  ;;  %v9579_v0 = vld [vmem:[#allocation24_spill] sm:$0xff] }
 0x125   : > { %v8409_v7 = vadd.f32 %v6779_v35, %v6729_v22  ;;  %7080 = vmatprep.mubr.msk.f32.mxu1 %vm279_vm1, %v7849_v14  ;;  %v703_v9 = vpop.f32.mrf.mxu0 }
 0x126   : > { %v1027_v24 = vpop.f32.mrf.mxu1 }
 0x127   : > { %v8415_v53 = vadd.f32 %v1027_v24, %v703_v9  ;;  %v6732_v57 = vpop.f32.mrf.mxu0  ;;  %7031 = vmatmul.mubr.msk.f32.gmra.mxu0 %vm279_vm1, %v9576_v52  ;;  %v9581_v52 = vld [vmem:[#allocation26_spill] sm:$0xff] }
 0x128   : > { %v6782_v42 = vpop.f32.mrf.mxu1  ;;  %7081 = vmatmul.mubr.msk.f32.gmra.mxu1 %vm279_vm1, %v7868_v19  ;;  %7033 = vmatprep.mubr.msk.f32.mxu0 %vm279_vm1, %v9577_v5 }
 0x129   : > { %v8421_v12 = vadd.f32 %v6782_v42, %v6732_v57  ;;  %7083 = vmatprep.mubr.msk.f32.mxu1 %vm279_vm1, %v7874_v21  ;;  %v8427_v14 = vpop.f32.mrf.mxu0  ;;  %v9580_v42 = vld [vmem:[#allocation25_spill] sm:$0xff] }
 0x12a   : > { %v8429_v61 = vpop.f32.mrf.mxu1 }
 0x12b   : > { %v6735_v22 = vpop.f32.mrf.mxu0  ;;  %7034 = vmatmul.mubr.msk.f32.gmra.mxu0 %vm279_vm1, %v9578_v46  ;;  %v9582_v46 = vld [vmem:[#allocation27_spill] sm:$0xff] }
 0x12c   : > { %v6785_v35 = vpop.f32.mrf.mxu1  ;;  %7084 = vmatmul.mubr.msk.f32.gmra.mxu1 %vm279_vm1, %v7888_v23  ;;  %7036 = vmatprep.mubr.msk.f32.mxu0 %vm279_vm1, %v9579_v0  ;;  %v9583_v0 = vld [vmem:[#allocation28_spill] sm:$0xff] }
 0x12d   : > { %v8435_v19 = vadd.f32 %v6785_v35, %v6735_v22  ;;  %7086 = vmatprep.mubr.msk.f32.mxu1 %vm279_vm1, %v7892_v25  ;;  %v8441_v21 = vpop.f32.mrf.mxu0 }
 0x12e   : > { %v8443_v9 = vpop.f32.mrf.mxu1 }
 0x12f   : > { %v6738_v24 = vpop.f32.mrf.mxu0  ;;  %7037 = vmatmul.mubr.msk.f32.gmra.mxu0 %vm279_vm1, %v9580_v42 }
 0x130   : > { %v6788_v57 = vpop.f32.mrf.mxu1  ;;  %7087 = vmatmul.mubr.msk.f32.gmra.mxu1 %vm279_vm1, %v7904_v27  ;;  %7039 = vmatprep.mubr.msk.f32.mxu0 %vm279_vm1, %v9581_v52  ;;  %v9584_v52 = vld [vmem:[#allocation29_spill] sm:$0xff] }
 0x131   : > { %v8449_v23 = vadd.f32 %v6788_v57, %v6738_v24  ;;  %7089 = vmatprep.mubr.msk.f32.mxu1 %vm279_vm1, %v7908_v29  ;;  %v8455_v25 = vpop.f32.mrf.mxu0 }
 0x132   : > { %v8457_v5 = vpop.f32.mrf.mxu1 }
 0x133   : > { %v6741_v22 = vpop.f32.mrf.mxu0  ;;  %7040 = vmatmul.mubr.msk.f32.gmra.mxu0 %vm279_vm1, %v9582_v46 }
 0x134   : > { %v6791_v35 = vpop.f32.mrf.mxu1  ;;  %7090 = vmatmul.mubr.msk.f32.gmra.mxu1 %vm279_vm1, %v7920_v51  ;;  %7042 = vmatprep.mubr.msk.f32.mxu0 %vm279_vm1, %v9583_v0  ;;  %v9586_v0 = vld [vmem:[#allocation32_spill] sm:$0xff] }
 0x135   : > { %v8463_v27 = vadd.f32 %v6791_v35, %v6741_v22  ;;  %7092 = vmatprep.mubr.msk.f32.mxu1 %vm279_vm1, %v7924_v54  ;;  %v8469_v29 = vpop.f32.mrf.mxu0 }
 0x136   : > { %v8471_v24 = vpop.f32.mrf.mxu1 }
 0x137   : > { %v6744_v57 = vpop.f32.mrf.mxu0  ;;  %7043 = vmatmul.mubr.msk.f32.gmra.mxu0 %vm279_vm1, %v9584_v52 }
 0x138   : > { %v6794_v42 = vpop.f32.mrf.mxu1  ;;  %7093 = vmatmul.mubr.msk.f32.gmra.mxu1 %vm279_vm1, %v7936_v56  ;;  %7045 = vmatprep.mubr.msk.f32.mxu0 %vm279_vm1, %v7942_v60 }
 0x139   : > { %v8477_v51 = vadd.f32 %v6794_v42, %v6744_v57  ;;  %7095 = vmatprep.mubr.msk.f32.mxu1 %vm279_vm1, %v9557_v30  ;;  %v8483_v54 = vpop.f32.mrf.mxu0  ;;  %v2707_v57 = vld [vmem:[#allocation2 + $0x198] sm:$0xff] }
 0x13a   : > { %v8485_v22 = vpop.f32.mrf.mxu1  ;;  %v3097_v42 = vld [vmem:[#allocation2 + $0x199] sm:$0xff] }
 0x13b   : > { %9585 = vst [vmem:[#allocation30_spill] sm:$0xff] %v8485_v22  ;;  %v6747_v35 = vpop.f32.mrf.mxu0  ;;  %7046 = vmatmul.mubr.msk.f32.gmra.mxu0 %vm279_vm1, %v7954_v16 }
 0x13c   : > { %v6797_v46 = vpop.f32.mrf.mxu1  ;;  %7096 = vmatmul.mubr.msk.f32.gmra.mxu1 %vm279_vm1, %v9558_v13  ;;  %7048 = vmatprep.mubr.msk.f32.mxu0 %vm279_vm1, %v9586_v0  ;;  %v2708_v13 = vld [vmem:[#allocation2 + $0x1a0] sm:$0xff] }
 0x13d   : > { %v8491_v56 = vadd.f32 %v6797_v46, %v6747_v35  ;;  %7098 = vmatprep.mubr.msk.f32.mxu1 %vm279_vm1, %v8295_v32  ;;  %v8497_v60 = vpop.f32.mrf.mxu0  ;;  %v3098_v32 = vld [vmem:[#allocation2 + $0x1a1] sm:$0xff] }
 0x13e   : > { %v8499_v30 = vpop.f32.mrf.mxu1 }
 0x13f   : > { %9587 = vst [vmem:[#allocation31_spill] sm:$0xff] %v8499_v30  ;;  %v6750_v52 = vpop.f32.mrf.mxu0  ;;  %7049 = vmatmul.mubr.msk.f32.gmra.mxu0 %vm279_vm1, %v8162_v55 }
 0x140   : > { %v6800_v22 = vpop.f32.mrf.mxu1  ;;  %7099 = vmatmul.mubr.msk.f32.gmra.mxu1 %vm279_vm1, %v8305_v15  ;;  %7051 = vmatprep.mubr.msk.f32.mxu0 %vm279_vm1, %v2707_v57 }
 0x141   : > { %v8505_v16 = vadd.f32 %v6800_v22, %v6750_v52  ;;  %7101 = vmatprep.mubr.msk.f32.mxu1 %vm279_vm1, %v3097_v42  ;;  %v8509_v35 = vpop.f32.mrf.mxu0 }
 0x142   : > { %v8511_v46 = vpop.f32.mrf.mxu1 }
 0x143   : > { %v6753_v0 = vpop.f32.mrf.mxu0  ;;  %7052 = vmatmul.mubr.msk.f32.gmra.mxu0 %vm279_vm1, %v2708_v13 }
 0x144   : > { %v6803_v30 = vpop.f32.mrf.mxu1  ;;  %7102 = vmatmul.mubr.msk.f32.gmra.mxu1 %vm279_vm1, %v3098_v32  ;;  %7106 = vmatprep.mubr.msk.f32.mxu0 %vm279_vm1, %v7986_v31 }
 0x145   : > { %v8515_v55 = vadd.f32 %v6803_v30, %v6753_v0  ;;  %v8519_v15 = vpop.f32.mrf.mxu0 }
 0x146   : > { %v8521_v22 = vpop.f32.mrf.mxu1 }
 0x147   : > { %9588 = vst [vmem:[#allocation4_spill] sm:$0xff] %v8521_v22  ;;  %v6808_v57 = vpop.f32.mrf.mxu0  ;;  %7107 = vmatmul.mubr.msk.f32.vlgmr.msra.gmra.mxu0 %vm279_vm1, %v8000_v11 }
 0x148   : > { %v6858_v42 = vpop.f32.mrf.mxu1  ;;  %v1475_v52 = vadd.f32 %v6808_v57, %v8319_v28  ;;  %7109 = vmatprep.mubr.msk.f32.mxu0 %vm279_vm1, %v8004_v33 }
 0x149   : > { %v1315_v13 = vpop.f32.mrf.mxu0 }
 0x14a   : > { %v8528_v30 = vpop.f32.mrf.mxu1  ;;  %v8531_v32 = vadd.f32 %v1315_v13, %v8325_v58  ;;  %v8533_v31 = vadd.f32 %v6858_v42, %v1475_v52 }
 0x14b   : > { %9589 = vst [vmem:[#allocation5_spill] sm:$0xff] %v8528_v30  ;;  %v6811_v0 = vpop.f32.mrf.mxu0  ;;  %7110 = vmatmul.mubr.msk.f32.gmra.mxu0 %vm279_vm1, %v8012_v17 }
 0x14c   : > { %9590 = vst [vmem:[#allocation6_spill] sm:$0xff] %v8531_v32  ;;  %v6861_v22 = vpop.f32.mrf.mxu1  ;;  %v1477_v11 = vadd.f32 %v6811_v0, %v8337_v36  ;;  %7112 = vmatprep.mubr.msk.f32.mxu0 %vm279_vm1, %v8016_v37 }
 0x14d   : > { %v1325_v28 = vpop.f32.mrf.mxu0 }
 0x14e   : > { %v8540_v33 = vpop.f32.mrf.mxu1  ;;  %v8543_v57 = vadd.f32 %v1325_v28, %v8343_v26  ;;  %v8545_v58 = vadd.f32 %v6861_v22, %v1477_v11 }
 0x14f   : > { %9591 = vst [vmem:[#allocation7_spill] sm:$0xff] %v8540_v33  ;;  %v6814_v42 = vpop.f32.mrf.mxu0  ;;  %7113 = vmatmul.mubr.msk.f32.gmra.mxu0 %vm279_vm1, %v8024_v41 }
 0x150   : > { %9592 = vst [vmem:[#allocation8_spill] sm:$0xff] %v8543_v57  ;;  %v6864_v52 = vpop.f32.mrf.mxu1  ;;  %v1479_v17 = vadd.f32 %v6814_v42, %v8349_v40  ;;  %7115 = vmatprep.mubr.msk.f32.mxu0 %vm279_vm1, %v8028_v39 }
 0x151   : > { %v1335_v36 = vpop.f32.mrf.mxu0 }
 0x152   : > { %v8552_v37 = vpop.f32.mrf.mxu1  ;;  %v8555_v13 = vadd.f32 %v1335_v36, %v8355_v34  ;;  %v8557_v26 = vadd.f32 %v6864_v52, %v1479_v17 }
 0x153   : > { %9593 = vst [vmem:[#allocation9_spill] sm:$0xff] %v8552_v37  ;;  %v6817_v22 = vpop.f32.mrf.mxu0  ;;  %7116 = vmatmul.mubr.msk.f32.gmra.mxu0 %vm279_vm1, %v8036_v45 }
 0x154   : > { %9594 = vst [vmem:[#allocation10_spill] sm:$0xff] %v8555_v13  ;;  %v6867_v0 = vpop.f32.mrf.mxu1  ;;  %v1481_v41 = vadd.f32 %v6817_v22, %v8361_v44  ;;  %7118 = vmatprep.mubr.msk.f32.mxu0 %vm279_vm1, %v8040_v43 }
 0x155   : > { %v1345_v40 = vpop.f32.mrf.mxu0 }
 0x156   : > { %v8564_v39 = vpop.f32.mrf.mxu1  ;;  %v8567_v11 = vadd.f32 %v1345_v40, %v8367_v38  ;;  %v8569_v34 = vadd.f32 %v6867_v0, %v1481_v41 }
 0x157   : > { %9595 = vst [vmem:[#allocation11_spill] sm:$0xff] %v8564_v39  ;;  %v6820_v28 = vpop.f32.mrf.mxu0  ;;  %7119 = vmatmul.mubr.msk.f32.gmra.mxu0 %vm279_vm1, %v8048_v49 }
 0x158   : > { %9596 = vst [vmem:[#allocation12_spill] sm:$0xff] %v8567_v11  ;;  %v6870_v42 = vpop.f32.mrf.mxu1  ;;  %v1483_v45 = vadd.f32 %v6820_v28, %v8373_v48  ;;  %7121 = vmatprep.mubr.msk.f32.mxu0 %vm279_vm1, %v8052_v47 }
 0x159   : > { %v1355_v44 = vpop.f32.mrf.mxu0 }
 0x15a   : > { %v8576_v43 = vpop.f32.mrf.mxu1  ;;  %v8579_v52 = vadd.f32 %v1355_v44, %v8379_v18  ;;  %v8581_v38 = vadd.f32 %v6870_v42, %v1483_v45  ;;  %v3475_v44 = vld [vmem:[#allocation2 + $0x10a] sm:$0xff] }
 0x15b   : > { %v6823_v17 = vpop.f32.mrf.mxu0  ;;  %7122 = vmatmul.mubr.msk.f32.gmra.mxu0 %vm279_vm1, %v8060_v63 }
 0x15c   : > { %v6873_v36 = vpop.f32.mrf.mxu1  ;;  %v1485_v49 = vadd.f32 %v6823_v17, %v8385_v62  ;;  %7124 = vmatprep.mubr.msk.f32.mxu0 %vm279_vm1, %v8064_v59 }
 0x15d   : > { %v1365_v48 = vpop.f32.mrf.mxu0 }
 0x15e   : > { %v8588_v47 = vpop.f32.mrf.mxu1  ;;  %v8591_v22 = vadd.f32 %v1365_v48, %v8391_v50  ;;  %v8593_v18 = vadd.f32 %v6873_v36, %v1485_v49 }
 0x15f   : > { %v6826_v0 = vpop.f32.mrf.mxu0  ;;  %7125 = vmatmul.mubr.msk.f32.gmra.mxu0 %vm279_vm1, %v8072_v4 }
 0x160   : > { %v6876_v41 = vpop.f32.mrf.mxu1  ;;  %v1487_v63 = vadd.f32 %v6826_v0, %v8397_v2  ;;  %7127 = vmatprep.mubr.msk.f32.mxu0 %vm279_vm1, %v8076_v1  ;;  %v3474_v2 = vld [vmem:[#allocation2 + $0xfa] sm:$0xff]  ;;  %v3477_v0 = vld [vmem:[#allocation2 + $0x122] sm:$0xff] }
 0x161   : > { %v1375_v62 = vpop.f32.mrf.mxu0 }
 0x162   : > { %v8600_v59 = vpop.f32.mrf.mxu1  ;;  %v8603_v40 = vadd.f32 %v1375_v62, %v8403_v3  ;;  %v8605_v50 = vadd.f32 %v6876_v41, %v1487_v63 }
 0x163   : > { %v6829_v28 = vpop.f32.mrf.mxu0  ;;  %7128 = vmatmul.mubr.msk.f32.gmra.mxu0 %vm279_vm1, %v8084_v8 }
 0x164   : > { %v6879_v42 = vpop.f32.mrf.mxu1  ;;  %v1489_v4 = vadd.f32 %v6829_v28, %v8409_v7  ;;  %7130 = vmatprep.mubr.msk.f32.mxu0 %vm279_vm1, %v8088_v6  ;;  %v3476_v7 = vld [vmem:[#allocation2 + $0x112] sm:$0xff]  ;;  %v3478_v28 = vld [vmem:[#allocation2 + $0x12a] sm:$0xff] }
 0x165   : > { %v1385_v1 = vpop.f32.mrf.mxu0 }
 0x166   : > { %v8612_v45 = vpop.f32.mrf.mxu1  ;;  %v8615_v3 = vadd.f32 %v1385_v1, %v8415_v53  ;;  %v8617_v17 = vadd.f32 %v6879_v42, %v1489_v4  ;;  %v3479_v4 = vld [vmem:[#allocation2 + $0x13a] sm:$0xff] }
 0x167   : > { %v6832_v36 = vpop.f32.mrf.mxu0  ;;  %7131 = vmatmul.mubr.msk.f32.gmra.mxu0 %vm279_vm1, %v3474_v2 }
 0x168   : > { %v6882_v8 = vpop.f32.mrf.mxu1  ;;  %v1491_v49 = vadd.f32 %v6832_v36, %v8421_v12  ;;  %7133 = vmatprep.mubr.msk.f32.mxu0 %vm279_vm1, %v3475_v44 }
 0x169   : > { %v8622_v6 = vpop.f32.mrf.mxu0 }
 0x16a   : > { %v8624_v48 = vpop.f32.mrf.mxu1  ;;  %v8626_v41 = vadd.f32 %v6882_v8, %v1491_v49  ;;  %v3480_v8 = vld [vmem:[#allocation2 + $0x142] sm:$0xff] }
 0x16b   : > { %v6835_v53 = vpop.f32.mrf.mxu0  ;;  %7134 = vmatmul.mubr.msk.f32.gmra.mxu0 %vm279_vm1, %v3476_v7  ;;  %v3481_v7 = vld [vmem:[#allocation2 + $0x152] sm:$0xff] }
 0x16c   : > { %v6885_v63 = vpop.f32.mrf.mxu1  ;;  %v1493_v62 = vadd.f32 %v6835_v53, %v8435_v19  ;;  %7136 = vmatprep.mubr.msk.f32.mxu0 %vm279_vm1, %v3477_v0 }
 0x16d   : > { %v8631_v12 = vpop.f32.mrf.mxu0 }
 0x16e   : > { %v8633_v42 = vpop.f32.mrf.mxu1  ;;  %v8635_v2 = vadd.f32 %v6885_v63, %v1493_v62 }
 0x16f   : > { %v6838_v1 = vpop.f32.mrf.mxu0  ;;  %7137 = vmatmul.mubr.msk.f32.gmra.mxu0 %vm279_vm1, %v3478_v28  ;;  %v3482_v28 = vld [vmem:[#allocation2 + $0x15a] sm:$0xff] }
 0x170   : > { %v6888_v44 = vpop.f32.mrf.mxu1  ;;  %v1495_v36 = vadd.f32 %v6838_v1, %v8449_v23  ;;  %7139 = vmatprep.mubr.msk.f32.mxu0 %vm279_vm1, %v3479_v4  ;;  %v3483_v1 = vld [vmem:[#allocation2 + $0x16a] sm:$0xff] }
 0x171   : > { %v8640_v19 = vpop.f32.mrf.mxu0 }
 0x172   : > { %v8642_v49 = vpop.f32.mrf.mxu1  ;;  %v8644_v0 = vadd.f32 %v6888_v44, %v1495_v36 }
 0x173   : > { %v6841_v53 = vpop.f32.mrf.mxu0  ;;  %7140 = vmatmul.mubr.msk.f32.gmra.mxu0 %vm279_vm1, %v3480_v8  ;;  %v3484_v8 = vld [vmem:[#allocation2 + $0x172] sm:$0xff] }
 0x174   : > { %v6891_v63 = vpop.f32.mrf.mxu1  ;;  %v1497_v62 = vadd.f32 %v6841_v53, %v8463_v27  ;;  %7142 = vmatprep.mubr.msk.f32.mxu0 %vm279_vm1, %v3481_v7 }
 0x175   : > { %v8649_v23 = vpop.f32.mrf.mxu0 }
 0x176   : > { %v8651_v4 = vpop.f32.mrf.mxu1  ;;  %v8653_v39 = vadd.f32 %v6891_v63, %v1497_v62 }
 0x177   : > { %v6844_v11 = vpop.f32.mrf.mxu0  ;;  %7143 = vmatmul.mubr.msk.f32.gmra.mxu0 %vm279_vm1, %v3482_v28 }
 0x178   : > { %v6894_v44 = vpop.f32.mrf.mxu1  ;;  %v1499_v36 = vadd.f32 %v6844_v11, %v8477_v51  ;;  %7145 = vmatprep.mubr.msk.f32.mxu0 %vm279_vm1, %v3483_v1  ;;  %v3487_v11 = vld [vmem:[#allocation2 + $0x19a] sm:$0xff] }
 0x179   : > { %v8658_v27 = vpop.f32.mrf.mxu0 }
 0x17a   : > { %v8660_v7 = vpop.f32.mrf.mxu1  ;;  %v8662_v53 = vadd.f32 %v6894_v44, %v1499_v36 }
 0x17b   : > { %v6847_v37 = vpop.f32.mrf.mxu0  ;;  %7146 = vmatmul.mubr.msk.f32.gmra.mxu0 %vm279_vm1, %v3484_v8 }
 0x17c   : > { %v6897_v63 = vpop.f32.mrf.mxu1  ;;  %v1501_v62 = vadd.f32 %v6847_v37, %v8491_v56  ;;  %7148 = vmatprep.mubr.msk.f32.mxu0 %vm279_vm1, %v8297_v10  ;;  %v3488_v56 = vld [vmem:[#allocation2 + $0x1a2] sm:$0xff] }
 0x17d   : > { %v8668_v28 = vpop.f32.mrf.mxu0  ;;  %v6197_v10 = vld [vmem:[%s9487_s3 + $0x4] sm:$0xf] }
 0x17e   : > { %v8670_v51 = vpop.f32.mrf.mxu1  ;;  %v8672_v1 = vadd.f32 %v6897_v63, %v1501_v62  ;;  %7154 = vmatprep.subr.msk.mxu1 %vm563_vm0, %v6197_v10 }
 0x17f   : > { %v6850_v13 = vpop.f32.mrf.mxu0  ;;  %7149 = vmatmul.mubr.msk.f32.gmra.mxu0 %vm279_vm1, %v8309_v20  ;;  %7155 = vmatpush3.msk.msra.mxu1 %vm563_vm0, %v6197_v10 }
 0x180   : > { %v6900_v44 = vpop.f32.mrf.mxu1  ;;  %v1503_v36 = vadd.f32 %v6850_v13, %v8505_v16  ;;  %7151 = vmatprep.mubr.msk.f32.mxu0 %vm279_vm1, %v3487_v11 }
 0x181   : > { %v8681_v37 = vpop.f32.mrf.mxu0 }
 0x182   : > { %v8683_v8 = vpop.f32.mrf.mxu1  ;;  %v8686_v63 = vadd.f32 %v6900_v44, %v1503_v36 }
 0x183   : > { %v6853_v20 = vpop.f32.mrf.mxu0  ;;  %7152 = vmatmul.mubr.msk.f32.gmra.mxu0 %vm279_vm1, %v3488_v56 }
 0x184   : > { %v6903_v16 = vpop.f32.mrf.mxu1  ;;  %v1505_v13 = vadd.f32 %v6853_v20, %v8515_v55 }
 0x185   : > { %v8691_v62 = vpop.f32.mrf.mxu0 }
 0x186   : > { %v8693_v11 = vpop.f32.mrf.mxu1  ;;  %v8695_v33 = vadd.f32 %v6903_v16, %v1505_v13 }
 0x187   : > { %v6908_v57 = vpop.f32.mrf.mxu0 }
 0x188   : > { %9597 = vst [vmem:[#allocation13_spill] sm:$0xff] %v8695_v33  ;;  %v8697_v30 = vpop.f32.mrf.mxu1  ;;  %v8700_v44 = vadd.f32 %v6908_v57, %v8533_v31 }
 0x189   : > { %9598 = vst [vmem:[#allocation14_spill] sm:$0xff] %v8697_v30  ;;  %v8702_v36 = vpop.f32.mrf.mxu0 }
 0x18a   : > { %9599 = vst [vmem:[#allocation15_spill] sm:$0xff] %v8700_v44  ;;  %v8704_v10 = vpop.f32.mrf.mxu1 }
 0x18b   : > { %9600 = vst [vmem:[#allocation16_spill] sm:$0xff] %v8704_v10  ;;  %v6911_v56 = vpop.f32.mrf.mxu0 }
 0x18c   : > { %v8706_v32 = vpop.f32.mrf.mxu1  ;;  %v8709_v55 = vadd.f32 %v6911_v56, %v8545_v58 }
 0x18d   : > { %9601 = vst [vmem:[#allocation17_spill] sm:$0xff] %v8706_v32  ;;  %v8711_v20 = vpop.f32.mrf.mxu0 }
 0x18e   : > { %9602 = vst [vmem:[#allocation18_spill] sm:$0xff] %v8709_v55  ;;  %v8713_v16 = vpop.f32.mrf.mxu1 }
 0x18f   : > { %9603 = vst [vmem:[#allocation19_spill] sm:$0xff] %v8713_v16  ;;  %v6914_v13 = vpop.f32.mrf.mxu0 }
 0x190   : > { %v8715_v33 = vpop.f32.mrf.mxu1  ;;  %v8718_v31 = vadd.f32 %v6914_v13, %v8557_v26  ;;  %v1872_v26 = vadd.f32 %v8576_v43, %v8579_v52 }
 0x191   : > { %9604 = vst [vmem:[#allocation20_spill] sm:$0xff] %v8715_v33  ;;  %v8720_v57 = vpop.f32.mrf.mxu0 }
 0x192   : > { %v8722_v30 = vpop.f32.mrf.mxu1 }
 0x193   : > { %9605 = vst [vmem:[#allocation21_spill] sm:$0xff] %v8722_v30  ;;  %v6917_v10 = vpop.f32.mrf.mxu0 }
 0x194   : > { %v8724_v44 = vpop.f32.mrf.mxu1  ;;  %v8727_v58 = vadd.f32 %v6917_v10, %v8569_v34  ;;  %v4086_v34 = vld [vmem:[#allocation3 + $0x1] ss:$2 sm:$0xff] }
 0x195   : > { %9606 = vst [vmem:[#allocation22_spill] sm:$0xff] %v8724_v44  ;;  %v8729_v56 = vpop.f32.mrf.mxu0  ;;  %7156 = vmatprep.mubr.msk.f32.mxu1 %vm279_vm1, %v4086_v34 }
 0x196   : > { %9607 = vst [vmem:[#allocation23_spill] sm:$0xff] %v8727_v58  ;;  %v8731_v32 = vpop.f32.mrf.mxu1 }
 0x197   : > { %9608 = vst [vmem:[#allocation24_spill] sm:$0xff] %v8731_v32  ;;  %v6920_v16 = vpop.f32.mrf.mxu0 }
 0x198   : > { %v8733_v55 = vpop.f32.mrf.mxu1  ;;  %v8738_v13 = vadd.f32 %v6920_v16, %v8581_v38 }
 0x199   : > { %9609 = vst [vmem:[#allocation25_spill] sm:$0xff] %v8733_v55  ;;  %v2135_v30 = vpop.f32.mrf.mxu0  ;;  %v1874_v55 = vadd.f32 %v8588_v47, %v8591_v22  ;;  %v1876_v47 = vadd.f32 %v8600_v59, %v8603_v40 }
 0x19a   : > { %v8740_v33 = vpop.f32.mrf.mxu1  ;;  %v8742_v44 = vadd.f32 %v2135_v30, %v1872_v26  ;;  %v6236_v30 = vld [vmem:[%s9487_s3 + $0x10] sm:$0xf] }
 0x19b   : > { %v6923_v10 = vpop.f32.mrf.mxu0  ;;  %7210 = vmatprep.subr.msk.mxu0 %vm563_vm0, %v6236_v30 }
 0x19c   : > { %v8744_v58 = vpop.f32.mrf.mxu1  ;;  %v8750_v32 = vadd.f32 %v6923_v10, %v8593_v18  ;;  %7211 = vmatpush3.msk.msra.mxu0 %vm563_vm0, %v6236_v30  ;;  %v1878_v30 = vadd.f32 %v8612_v45, %v8615_v3 }
 0x19d   : > { %v2145_v43 = vpop.f32.mrf.mxu0 }
 0x19e   : > { %v8752_v52 = vpop.f32.mrf.mxu1  ;;  %v8757_v38 = vadd.f32 %v2145_v43, %v1874_v55  ;;  %v1038_v55 = vadd.f32 %v8429_v61, %v8427_v14 }
 0x19f   : > { %9610 = vst [vmem:[#allocation26_spill] sm:$0xff] %v8752_v52  ;;  %v6926_v16 = vpop.f32.mrf.mxu0 }
 0x1a0   : > { %v8760_v26 = vpop.f32.mrf.mxu1  ;;  %v8766_v22 = vadd.f32 %v6926_v16, %v8605_v50  ;;  %v1048_v16 = vadd.f32 %v8443_v9, %v8441_v21 }
 0x1a1   : > { %9611 = vst [vmem:[#allocation27_spill] sm:$0xff] %v8760_v26  ;;  %v2155_v18 = vpop.f32.mrf.mxu0  ;;  %v1490_v26 = vadd.f32 %v8622_v6, %v1038_v55  ;;  %v1058_v55 = vadd.f32 %v8457_v5, %v8455_v25 }
 0x1a2   : > { %v8768_v34 = vpop.f32.mrf.mxu1  ;;  %v8772_v10 = vadd.f32 %v2155_v18, %v1876_v47  ;;  %v1492_v45 = vadd.f32 %v8631_v12, %v1048_v16 }
 0x1a3   : > { %v6929_v43 = vpop.f32.mrf.mxu0  ;;  %v1880_v18 = vadd.f32 %v8624_v48, %v1490_v26  ;;  %v1494_v48 = vadd.f32 %v8640_v19, %v1058_v55 }
 0x1a4   : > { %v8774_v52 = vpop.f32.mrf.mxu1  ;;  %v8780_v59 = vadd.f32 %v6929_v43, %v8617_v17 }
 0x1a5   : > { %v2165_v40 = vpop.f32.mrf.mxu0 }
 0x1a6   : > { %v8782_v50 = vpop.f32.mrf.mxu1  ;;  %v8786_v14 = vadd.f32 %v2165_v40, %v1878_v30  ;;  %v1882_v30 = vadd.f32 %v8633_v42, %v1492_v45  ;;  %v1068_v40 = vadd.f32 %v8471_v24, %v8469_v29  ;;  %v9623_v45 = vld [vmem:[#allocation30_spill] sm:$0xff] }
 0x1a7   : > { %v6932_v61 = vpop.f32.mrf.mxu0 }
 0x1a8   : > { %v8788_v47 = vpop.f32.mrf.mxu1  ;;  %v8793_v3 = vadd.f32 %v6932_v61, %v8626_v41  ;;  %v1884_v61 = vadd.f32 %v8642_v49, %v1494_v48  ;;  %v1496_v42 = vadd.f32 %v8649_v23, %v1068_v40  ;;  %v9628_v48 = vld [vmem:[#allocation31_spill] sm:$0xff] }
 0x1a9   : > { %9612 = vst [vmem:[#allocation28_spill] sm:$0xff] %v8788_v47  ;;  %v2175_v17 = vpop.f32.mrf.mxu0  ;;  %v9674_v47 = vld [vmem:[#allocation16_spill] sm:$0xff] }
 0x1aa   : > { %9613 = vst [vmem:[#allocation29_spill] sm:$0xff] %v8793_v3  ;;  %v8795_v6 = vpop.f32.mrf.mxu1  ;;  %v8799_v43 = vadd.f32 %v2175_v17, %v1880_v18  ;;  %v1078_v17 = vadd.f32 %v9623_v45, %v8483_v54  ;;  %v9676_v3 = vld [vmem:[#allocation9_spill] sm:$0xff] }
 0x1ab   : > { %9614 = vst [vmem:[#allocation32_spill] sm:$0xff] %v8795_v6  ;;  %v6935_v21 = vpop.f32.mrf.mxu0  ;;  %v9669_v6 = vld [vmem:[#allocation7_spill] sm:$0xff] }
 0x1ac   : > { %9615 = vst [vmem:[#allocation33_spill] sm:$0xff] %v8799_v43  ;;  %v8801_v9 = vpop.f32.mrf.mxu1  ;;  %v8806_v12 = vadd.f32 %v6935_v21, %v8635_v2  ;;  %v1886_v21 = vadd.f32 %v8651_v4, %v1496_v42  ;;  %v1498_v49 = vadd.f32 %v8658_v27, %v1078_v17  ;;  %v9670_v43 = vld [vmem:[#allocation15_spill] sm:$0xff] }
 0x1ad   : > { %9616 = vst [vmem:[#allocation34_spill] sm:$0xff] %v8801_v9  ;;  %v2185_v41 = vpop.f32.mrf.mxu0 }
 0x1ae   : > { %9617 = vst [vmem:[#allocation35_spill] sm:$0xff] %v8806_v12  ;;  %v8808_v26 = vpop.f32.mrf.mxu1  ;;  %v8812_v16 = vadd.f32 %v2185_v41, %v1882_v30  ;;  %v1088_v41 = vadd.f32 %v9628_v48, %v8497_v60 }
 0x1af   : > { %9618 = vst [vmem:[#allocation36_spill] sm:$0xff] %v8808_v26  ;;  %v6938_v25 = vpop.f32.mrf.mxu0 }
 0x1b0   : > { %9619 = vst [vmem:[#allocation37_spill] sm:$0xff] %v8812_v16  ;;  %v8814_v5 = vpop.f32.mrf.mxu1  ;;  %v8819_v19 = vadd.f32 %v6938_v25, %v8644_v0  ;;  %v1500_v4 = vadd.f32 %v8668_v28, %v1088_v41 }
 0x1b1   : > { %9620 = vst [vmem:[#allocation38_spill] sm:$0xff] %v8814_v5  ;;  %v2195_v2 = vpop.f32.mrf.mxu0 }
 0x1b2   : > { %9621 = vst [vmem:[#allocation39_spill] sm:$0xff] %v8819_v19  ;;  %v8821_v18 = vpop.f32.mrf.mxu1  ;;  %v8825_v55 = vadd.f32 %v2195_v2, %v1884_v61  ;;  %v1888_v61 = vadd.f32 %v8660_v7, %v1498_v49  ;;  %v1098_v2 = vadd.f32 %v8511_v46, %v8509_v35  ;;  %v9637_v49 = vld [vmem:[#allocation4_spill] sm:$0xff] }
 0x1b3   : > { %9622 = vst [vmem:[#allocation40_spill] sm:$0xff] %v8821_v18  ;;  %v6941_v29 = vpop.f32.mrf.mxu0 }
 0x1b4   : > { %9624 = vst [vmem:[#allocation30_spill] sm:$0xff] %v8825_v55  ;;  %v8827_v24 = vpop.f32.mrf.mxu1  ;;  %v8832_v23 = vadd.f32 %v6941_v29, %v8653_v39  ;;  %v1890_v29 = vadd.f32 %v8670_v51, %v1500_v4  ;;  %v1502_v7 = vadd.f32 %v8681_v37, %v1098_v2  ;;  %v9644_v2 = vld [vmem:[#allocation13_spill] sm:$0xff] }
 0x1b5   : > { %9625 = vst [vmem:[#allocation41_spill] sm:$0xff] %v8827_v24  ;;  %v2205_v0 = vpop.f32.mrf.mxu0 }
 0x1b6   : > { %9626 = vst [vmem:[#allocation42_spill] sm:$0xff] %v8832_v23  ;;  %v8834_v30 = vpop.f32.mrf.mxu1  ;;  %v8838_v40 = vadd.f32 %v2205_v0, %v1886_v21  ;;  %v1108_v0 = vadd.f32 %v9637_v49, %v8519_v15  ;;  %v1892_v41 = vadd.f32 %v8683_v8, %v1502_v7 }
 0x1b7   : > { %9627 = vst [vmem:[#allocation43_spill] sm:$0xff] %v8834_v30  ;;  %v6944_v54 = vpop.f32.mrf.mxu0 }
 0x1b8   : > { %9629 = vst [vmem:[#allocation31_spill] sm:$0xff] %v8838_v40  ;;  %v8840_v25 = vpop.f32.mrf.mxu1  ;;  %v8845_v27 = vadd.f32 %v6944_v54, %v8662_v53  ;;  %v1504_v51 = vadd.f32 %v8691_v62, %v1108_v0 }
 0x1b9   : > { %9630 = vst [vmem:[#allocation44_spill] sm:$0xff] %v8840_v25  ;;  %v2215_v39 = vpop.f32.mrf.mxu0 }
 0x1ba   : > { %9631 = vst [vmem:[#allocation45_spill] sm:$0xff] %v8845_v27  ;;  %v8847_v42 = vpop.f32.mrf.mxu1  ;;  %v8851_v45 = vadd.f32 %v2215_v39, %v1888_v61  ;;  %v1894_v15 = vadd.f32 %v8693_v11, %v1504_v51 }
 0x1bb   : > { %9632 = vst [vmem:[#allocation46_spill] sm:$0xff] %v8847_v42  ;;  %v6947_v60 = vpop.f32.mrf.mxu0 }
 0x1bc   : > { %9633 = vst [vmem:[#allocation47_spill] sm:$0xff] %v8851_v45  ;;  %v8853_v17 = vpop.f32.mrf.mxu1  ;;  %v8858_v28 = vadd.f32 %v6947_v60, %v8672_v1 }
 0x1bd   : > { %9634 = vst [vmem:[#allocation48_spill] sm:$0xff] %v8853_v17  ;;  %v2225_v53 = vpop.f32.mrf.mxu0 }
 0x1be   : > { %9635 = vst [vmem:[#allocation49_spill] sm:$0xff] %v8858_v28  ;;  %v8860_v21 = vpop.f32.mrf.mxu1  ;;  %v8864_v48 = vadd.f32 %v2225_v53, %v1890_v29 }
 0x1bf   : > { %9636 = vst [vmem:[#allocation50_spill] sm:$0xff] %v8860_v21  ;;  %v6950_v35 = vpop.f32.mrf.mxu0 }
 0x1c0   : > { %9638 = vst [vmem:[#allocation4_spill] sm:$0xff] %v8864_v48  ;;  %v8866_v46 = vpop.f32.mrf.mxu1  ;;  %v8871_v37 = vadd.f32 %v6950_v35, %v8686_v63  ;;  %v8890_v63 = vld [vmem:[%s9487_s3] sm:$0xf] }
 0x1c1   : > { %9639 = vst [vmem:[#allocation51_spill] sm:$0xff] %v8866_v46  ;;  %v2235_v1 = vpop.f32.mrf.mxu0  ;;  %7168 = vmatprep.subr.msk.mxu1 %vm563_vm0, %v8890_v63 }
 0x1c2   : > { %9640 = vst [vmem:[#allocation52_spill] sm:$0xff] %v8871_v37  ;;  %v8873_v54 = vpop.f32.mrf.mxu1  ;;  %v8875_v61 = vadd.f32 %v2235_v1, %v1892_v41 }
 0x1c3   : > { %9641 = vst [vmem:[#allocation53_spill] sm:$0xff] %v8873_v54  ;;  %v6953_v4 = vpop.f32.mrf.mxu0 }
 0x1c4   : > { %9642 = vst [vmem:[#allocation54_spill] sm:$0xff] %v8875_v61  ;;  %v8877_v39 = vpop.f32.mrf.mxu1  ;;  %v8881_v60 = vadd.f32 %v6953_v4, %v9644_v2 }
 0x1c5   : > { %9643 = vst [vmem:[#allocation55_spill] sm:$0xff] %v8877_v39  ;;  %v2245_v29 = vpop.f32.mrf.mxu0 }
 0x1c6   : > { %9645 = vst [vmem:[#allocation13_spill] sm:$0xff] %v8881_v60  ;;  %v8883_v8 = vpop.f32.mrf.mxu1  ;;  %v8885_v62 = vadd.f32 %v2245_v29, %v1894_v15  ;;  %v8911_v15 = vld [vmem:[%s9487_s3 + $0x18] sm:$0xf] }
 0x1c7   : > { %9646 = vst [vmem:[#allocation56_spill] sm:$0xff] %v8883_v8  ;;  %v7008_v7 = vpop.f32.mrf.mxu0  ;;  %9648 = vst [vmem:[#allocation58_spill] sm:$0xff] %v8911_v15  ;;  %7238 = vmatprep.subr.msk.mxu0 %vm563_vm0, %v8911_v15 }
 0x1c8   : > { %9647 = vst [vmem:[#allocation57_spill] sm:$0xff] %v8885_v62  ;;  %v8892_v53 = vpop.f32.mrf.mxu1 }
 0x1c9   : > { %v2876_v11 = vpop.f32.mrf.mxu0 }
 0x1ca   : > { %v8896_v49 = vpop.f32.mrf.mxu1 }
 0x1cb   : > { %v7011_v0 = vpop.f32.mrf.mxu0 }
 0x1cc   : > { %v8900_v41 = vpop.f32.mrf.mxu1 }
 0x1cd   : > { %v8898_v35 = vpop.f32.mrf.mxu0 }
 0x1ce   : > { %v8904_v1 = vpop.f32.mrf.mxu1 }
 0x1cf   : > { %v8902_v51 = vpop.f32.mrf.mxu0 }
 0x1d0   : > { %v8917_v29 = vpop.f32.mrf.mxu1 }
 0x1d1   : > { %v8906_v4 = vpop.f32.mrf.mxu0 }
 0x1d2   : > { %v8923_v39 = vpop.f32.mrf.mxu1 }
 0x1d3   : > { %v8913_v2 = vpop.f32.mrf.mxu0 }
 0x1d4   : > { %v8929_v61 = vpop.f32.mrf.mxu1 }
 0x1d5   : > { %v8919_v8 = vpop.f32.mrf.mxu0 }
 0x1d6   : > { %v8935_v21 = vpop.f32.mrf.mxu1 }
 0x1d7   : > { %v8921_v62 = vpop.f32.mrf.mxu0 }
 0x1d8   : > { %v8941_v28 = vpop.f32.mrf.mxu1 }
 0x1d9   : > { %v8925_v60 = vpop.f32.mrf.mxu0 }
 0x1da   : > { %v8947_v25 = vpop.f32.mrf.mxu1 }
 0x1db   : > { %v8927_v54 = vpop.f32.mrf.mxu0 }
 0x1dc   : > { %v8953_v40 = vpop.f32.mrf.mxu1 }
 0x1dd   : > { %v8931_v46 = vpop.f32.mrf.mxu0 }
 0x1de   : > { %v8959_v18 = vpop.f32.mrf.mxu1 }
 0x1df   : > { %v8933_v37 = vpop.f32.mrf.mxu0 }
 0x1e0   : > { %v8965_v19 = vpop.f32.mrf.mxu1 }
 0x1e1   : > { %v8937_v48 = vpop.f32.mrf.mxu0 }
 0x1e3   : > { %v8939_v17 = vpop.f32.mrf.mxu0 }
 0x1e4   : > { %9649 = vst [vmem:[#allocation59_spill] sm:$0xff] %v8939_v17  ;;  %v9679_v17 = vld [vmem:[#allocation17_spill] sm:$0xff] }
 0x1e5   : > { %v8943_v42 = vpop.f32.mrf.mxu0 }
 0x1e6   : > { %9650 = vst [vmem:[#allocation60_spill] sm:$0xff] %v8943_v42  ;;  %v9671_v42 = vld [vmem:[#allocation14_spill] sm:$0xff] }
 0x1e7   : > { %v8945_v45 = vpop.f32.mrf.mxu0 }
 0x1e8   : > { %9651 = vst [vmem:[#allocation61_spill] sm:$0xff] %v8945_v45 }
 0x1e9   : > { %v8949_v27 = vpop.f32.mrf.mxu0 }
 0x1ea   : > { %9652 = vst [vmem:[#allocation62_spill] sm:$0xff] %v8949_v27  ;;  %v8971_v27 = vpop.f32.mrf.mxu1 }
 0x1eb   : > { %v8951_v30 = vpop.f32.mrf.mxu0  ;;  %9660 = vst [vmem:[#allocation70_spill] sm:$0xff] %v8971_v27  ;;  %v2645_v27 = vadd.f32 %v9671_v42, %v9670_v43 }
 0x1ec   : > { %9653 = vst [vmem:[#allocation63_spill] sm:$0xff] %v8951_v30  ;;  %v8979_v15 = vpop.f32.mrf.mxu1 }
 0x1ed   : > { %v8955_v24 = vpop.f32.mrf.mxu0 }
 0x1ee   : > { %9654 = vst [vmem:[#allocation64_spill] sm:$0xff] %v8955_v24  ;;  %v9663_v24 = vld [vmem:[#allocation6_spill] sm:$0xff] }
 0x1ef   : > { %v8957_v23 = vpop.f32.mrf.mxu0  ;;  %9665 = vst [vmem:[#allocation6_spill] sm:$0xff] %v8979_v15  ;;  %v3036_v15 = vadd.f32 %v7008_v7, %v2645_v27  ;;  %v9682_v27 = vld [vmem:[#allocation11_spill] sm:$0xff] }
 0x1f0   : > { %9655 = vst [vmem:[#allocation65_spill] sm:$0xff] %v8957_v23  ;;  %v9664_v23 = vld [vmem:[#allocation5_spill] sm:$0xff] }
 0x1f1   : > { %v8961_v55 = vpop.f32.mrf.mxu0  ;;  %v1864_v12 = vadd.f32 %v9664_v23, %v9663_v24 }
 0x1f2   : > { %9656 = vst [vmem:[#allocation66_spill] sm:$0xff] %v8961_v55 }
 0x1f3   : > { %v8963_v5 = vpop.f32.mrf.mxu0 }
 0x1f4   : > { %9657 = vst [vmem:[#allocation67_spill] sm:$0xff] %v8963_v5  ;;  %v2254_v5 = vadd.f32 %v8702_v36, %v1864_v12 }
 0x1f5   : > { %v8967_v26 = vpop.f32.mrf.mxu0 }
 0x1f6   : > { %9658 = vst [vmem:[#allocation68_spill] sm:$0xff] %v8967_v26  ;;  %v9668_v26 = vld [vmem:[#allocation8_spill] sm:$0xff]  ;;  %v2644_v24 = vadd.f32 %v9674_v47, %v2254_v5 }
 0x1f7   : > { %v8969_v16 = vpop.f32.mrf.mxu0  ;;  %v9681_v5 = vld [vmem:[#allocation12_spill] sm:$0xff] }
 0x1f8   : > { %9659 = vst [vmem:[#allocation69_spill] sm:$0xff] %v8969_v16  ;;  %v1866_v16 = vadd.f32 %v9669_v6, %v9668_v26  ;;  %v3035_v26 = vadd.f32 %v2876_v11, %v2644_v24  ;;  %v9684_v11 = vld [vmem:[#allocation21_spill] sm:$0xff] }
 0x1f9   : > { %v8973_v30 = vpop.f32.mrf.mxu0 }
 0x1fa   : > { %9661 = vst [vmem:[#allocation71_spill] sm:$0xff] %v8973_v30  ;;  %v8990_v30 = vpop.f32.mrf.mxu1  ;;  %v2256_v23 = vadd.f32 %v8711_v20, %v1866_v16  ;;  %v3426_v20 = vadd.f32 %v8892_v53, %v3036_v15 }
 0x1fb   : > { %v8975_v9 = vpop.f32.mrf.mxu0  ;;  %9672 = vst [vmem:[#allocation8_spill] sm:$0xff] %v8990_v30 }
 0x1fc   : > { %9662 = vst [vmem:[#allocation72_spill] sm:$0xff] %v8975_v9  ;;  %v9003_v42 = vpop.f32.mrf.mxu1 }
 0x1fd   : > { %v8981_v55 = vpop.f32.mrf.mxu0 }
 0x1fe   : > { %9666 = vst [vmem:[#allocation5_spill] sm:$0xff] %v8981_v55  ;;  %v9675_v55 = vld [vmem:[#allocation10_spill] sm:$0xff]  ;;  %v9023_v24 = vpop.f32.mrf.mxu1 }
 0x1ff   : > { %v8984_v45 = vpop.f32.mrf.mxu0  ;;  %v1868_v36 = vadd.f32 %v9676_v3, %v9675_v55  ;;  %v1870_v3 = vadd.f32 %v9682_v27, %v9681_v5  ;;  %v9683_v55 = vld [vmem:[#allocation20_spill] sm:$0xff]  ;;  %v9685_v5 = vld [vmem:[#allocation23_spill] sm:$0xff]  ;;  %v9686_v27 = vld [vmem:[#allocation22_spill] sm:$0xff] }
 0x200   : > { %9667 = vst [vmem:[#allocation73_spill] sm:$0xff] %v8984_v45  ;;  %v9678_v45 = vld [vmem:[#allocation18_spill] sm:$0xff]  ;;  %v2649_v7 = vadd.f32 %v9683_v55, %v8718_v31 }
 0x201   : > { %v8992_v9 = vpop.f32.mrf.mxu0  ;;  %v2647_v6 = vadd.f32 %v9679_v17, %v9678_v45  ;;  %v2258_v43 = vadd.f32 %v8720_v57, %v1868_v36  ;;  %v9016_v57 = vld [vmem:[%s9486_s2] ss:$0 sm:$0xff]  ;;  %v3425_v45 = vadd.f32 %v8896_v49, %v3035_v26  ;;  %v2651_v49 = vadd.f32 %v9686_v27, %v9685_v5 }
 0x202   : > { %9673 = vst [vmem:[#allocation7_spill] sm:$0xff] %v8992_v9  ;;  %v9680_v9 = vld [vmem:[#allocation19_spill] sm:$0xff]  ;;  %v3040_v15 = vadd.f32 %v8902_v51, %v2649_v7  ;;  %v2655_v5 = vadd.f32 %v8744_v58, %v8750_v32 }
 0x203   : > { %v8998_v12 = vpop.f32.mrf.mxu0  ;;  %v2646_v47 = vadd.f32 %v9680_v9, %v2256_v23  ;;  %v3038_v16 = vadd.f32 %v7011_v0, %v2647_v6  ;;  %v2648_v53 = vadd.f32 %v9684_v11, %v2258_v43  ;;  %v2260_v0 = vadd.f32 %v8729_v56, %v1870_v3  ;;  %v9687_v43 = vld [vmem:[#allocation24_spill] sm:$0xff] }
 0x204   : > { %9677 = vst [vmem:[#allocation15_spill] sm:$0xff] %v8998_v12  ;;  %v3042_v7 = vadd.f32 %v8913_v2, %v2651_v49 }
 0x205   : > { %v9005_v30 = vpop.f32.mrf.mxu0  ;;  %v3037_v17 = vadd.f32 %v8898_v35, %v2646_v47  ;;  %v3428_v23 = vadd.f32 %v8900_v41, %v3038_v16  ;;  %v3039_v35 = vadd.f32 %v8906_v4, %v2648_v53  ;;  %v2650_v47 = vadd.f32 %v9687_v43, %v2260_v0  ;;  %v9034_v41 = vpop.f32.mrf.mxu1  ;;  %v9691_v43 = vld [vmem:[#allocation27_spill] sm:$0xff] }
 0x206   : > { %v9688_v16 = vmov 0.0  }
 0x207   : > { %v7108_v12 = vpop.f32.mrf.mxu0  ;;  %v3427_v26 = vadd.f32 %v8904_v1, %v3037_v17  ;;  %v3041_v53 = vadd.f32 %v8919_v8, %v2650_v47  ;;  %v2657_v47 = vadd.f32 %v9691_v43, %v8766_v22  ;;  %v9700_v43 = vld [vmem:[#allocation58_spill] sm:$0xff] }
 0x208   : > { %v3816_v9 = vadd.f32 %v7108_v12, %v3426_v20  ;;  %v3430_v20 = vadd.f32 %v8917_v29, %v3040_v15  ;;  %v2652_v15 = vadd.f32 %v8740_v33, %v8742_v44 }
 0x209   : > { %v3656_v31 = vpop.f32.mrf.mxu0  ;;  %v3431_v27 = vadd.f32 %v8935_v21, %v3041_v53  ;;  %v3048_v22 = vadd.f32 %v8933_v37, %v2657_v47  ;;  %v9096_v53 = vld [vmem:[%s9487_s3 + $0x8] sm:$0xf]  ;;  %v9701_v47 = vld [vmem:[#allocation6_spill] sm:$0xff] }
 0x20a   : > { %v3855_v36 = vadd.f32 %v9016_v57, %v3816_v9  ;;  %v3815_v6 = vadd.f32 %v3656_v31, %v3425_v45  ;;  %v9689_v45 = vld [vmem:[#allocation25_spill] sm:$0xff]  ;;  %v3429_v9 = vadd.f32 %v8923_v39, %v3039_v35  ;;  %v3043_v33 = vadd.f32 %v8925_v60, %v2652_v15  ;;  %v9690_v35 = vld [vmem:[#allocation26_spill] sm:$0xff] }
 0x20b   : > { %v7111_v12 = vpop.f32.mrf.mxu0  ;;  %v2653_v17 = vadd.f32 %v9689_v45, %v8738_v13  ;;  %v3046_v60 = vadd.f32 %v8927_v54, %v2655_v5 }
 0x20c   : > { %vm3887_vm3 = vcmp.ge.f32.partialorder %v3855_v36, 1.0  ;;  %v3854_v56 = vadd.f32 %v9016_v57, %v3815_v6  ;;  %v3818_v51 = vadd.f32 %v7111_v12, %v3428_v23  ;;  %v9050_v23 = vpop.f32.mrf.mxu1  ;;  %v3432_v36 = vadd.f32 %v8929_v61, %v3042_v7 }
 0x20d   : > { %v6166_v3 = vsel %vm3887_vm3, 1.0, %v9688_v16  ;;  %v3666_v55 = vpop.f32.mrf.mxu0  ;;  %v3044_v31 = vadd.f32 %v8921_v62, %v2653_v17  ;;  %v2654_v12 = vadd.f32 %v9690_v35, %v8757_v38  ;;  %v3433_v38 = vadd.f32 %v8947_v25, %v3043_v33  ;;  %v9697_v35 = vld [vmem:[#allocation33_spill] sm:$0xff] }
 0x20e   : > { %4038 = vst.msk [vmem:[#allocation3 + $0x21] sm:$0xff] %vm279_vm1, %v6166_v3  ;;  %vm3886_vm4 = vcmp.ge.f32.partialorder %v3854_v56, 1.0  ;;  %v3857_v1 = vadd.f32 %v9016_v57, %v3818_v51  ;;  %v3817_v4 = vadd.f32 %v3666_v55, %v3427_v26  ;;  %v9066_v56 = vpop.f32.mrf.mxu1 }
 0x20f   : > { %v6165_v29 = vsel %vm3886_vm4, 1.0, %v9688_v16  ;;  %v7114_v11 = vpop.f32.mrf.mxu0  ;;  %v3434_v26 = vadd.f32 %v8941_v28, %v3044_v31  ;;  %v3045_v55 = vadd.f32 %v8931_v46, %v2654_v12  ;;  %v3436_v46 = vadd.f32 %v8953_v40, %v3046_v60  ;;  %v9698_v12 = vld [vmem:[#allocation32_spill] sm:$0xff] }
 0x210   : > { %4037 = vst.msk [vmem:[#allocation3 + $0x19] sm:$0xff] %vm279_vm1, %v6165_v29  ;;  %vm3889_vm5 = vcmp.ge.f32.partialorder %v3857_v1, 1.0  ;;  %v3856_v2 = vadd.f32 %v9016_v57, %v3817_v4  ;;  %v3820_v0 = vadd.f32 %v7114_v11, %v3430_v20  ;;  %v2656_v1 = vadd.f32 %v8768_v34, %v8772_v10  ;;  %v9083_v25 = vpop.f32.mrf.mxu1 }
 0x211   : > { %v6168_v13 = vsel %vm3889_vm5, 1.0, %v9688_v16  ;;  %v3676_v39 = vpop.f32.mrf.mxu0  ;;  %v2659_v29 = vadd.f32 %v8774_v52, %v8780_v59  ;;  %v3435_v40 = vadd.f32 %v8959_v18, %v3045_v55  ;;  %v2658_v52 = vadd.f32 %v8782_v50, %v8786_v14  ;;  %v9692_v18 = vld [vmem:[#allocation59_spill] sm:$0xff]  ;;  %v9693_v50 = vld [vmem:[#allocation29_spill] sm:$0xff]  ;;  %v9694_v14 = vld [vmem:[#allocation28_spill] sm:$0xff] }
 0x212   : > { %4040 = vst.msk [vmem:[#allocation3 + $0x39] sm:$0xff] %vm279_vm1, %v6168_v13  ;;  %vm3888_vm6 = vcmp.ge.f32.partialorder %v3856_v2, 1.0  ;;  %v3859_v8 = vadd.f32 %v9016_v57, %v3820_v0  ;;  %v3819_v6 = vadd.f32 %v3676_v39, %v3429_v9  ;;  %v3047_v34 = vadd.f32 %v8937_v48, %v2656_v1  ;;  %v9105_v48 = vpop.f32.mrf.mxu1  ;;  %v9703_v55 = vld [vmem:[#allocation34_spill] sm:$0xff] }
 0x213   : > { %v6167_v44 = vsel %vm3888_vm6, 1.0, %v9688_v16  ;;  %v7117_v62 = vpop.f32.mrf.mxu0  ;;  %v3438_v59 = vadd.f32 %v8965_v19, %v3048_v22  ;;  %v3050_v13 = vadd.f32 %v9692_v18, %v2659_v29  ;;  %v2661_v19 = vadd.f32 %v9694_v14, %v9693_v50  ;;  %v9709_v18 = vld [vmem:[#allocation39_spill] sm:$0xff] }
 0x214   : > { %4039 = vst.msk [vmem:[#allocation3 + $0x31] sm:$0xff] %vm279_vm1, %v6167_v44  ;;  %vm3891_vm7 = vcmp.ge.f32.partialorder %v3859_v8, 1.0  ;;  %v3858_v61 = vadd.f32 %v9016_v57, %v3819_v6  ;;  %v3822_v49 = vadd.f32 %v7117_v62, %v3432_v36  ;;  %v9695_v8 = vld [vmem:[#allocation70_spill] sm:$0xff]  ;;  %v9122_v44 = vld [vmem:[%s9487_s3 + $0x20] sm:$0xf]  ;;  %v9131_v60 = vpop.f32.mrf.mxu1 }
 0x215   : > { %v6170_v32 = vsel %vm3891_vm7, 1.0, %v9688_v16  ;;  %v3686_v58 = vpop.f32.mrf.mxu0  ;;  %v3437_v6 = vadd.f32 %v9695_v8, %v3047_v34  ;;  %v9696_v62 = vld [vmem:[#allocation60_spill] sm:$0xff]  ;;  %v9706_v34 = vld [vmem:[#allocation37_spill] sm:$0xff] }
 0x216   : > { %4042 = vst.msk [vmem:[#allocation3 + $0x51] sm:$0xff] %vm279_vm1, %v6170_v32  ;;  %vm3890_vm8 = vcmp.ge.f32.partialorder %v3858_v61, 1.0  ;;  %v3861_v21 = vadd.f32 %v9016_v57, %v3822_v49  ;;  %v3821_v51 = vadd.f32 %v3686_v58, %v3431_v27  ;;  %v3049_v27 = vadd.f32 %v9696_v62, %v2658_v52  ;;  %v9699_v32 = vld [vmem:[#allocation61_spill] sm:$0xff]  ;;  %v9708_v52 = vld [vmem:[#allocation63_spill] sm:$0xff] }
 0x217   : > { %v6169_v28 = vsel %vm3890_vm8, 1.0, %v9688_v16  ;;  %v7120_v20 = vpop.f32.mrf.mxu0  ;;  %v4683_v3 = vld [vmem:[#allocation3 + $0x19] ss:$2 sm:$0xff]  ;;  %v3052_v58 = vadd.f32 %v9699_v32, %v2661_v19  ;;  %v9711_v19 = vld [vmem:[#allocation64_spill] sm:$0xff] }
 0x218   : > { %4041 = vst.msk [vmem:[#allocation3 + $0x49] sm:$0xff] %vm279_vm1, %v6169_v28  ;;  %vm3893_vm9 = vcmp.ge.f32.partialorder %v3861_v21, 1.0  ;;  %v3860_v54 = vadd.f32 %v9016_v57, %v3821_v51  ;;  %v3824_v7 = vadd.f32 %v7120_v20, %v3434_v26  ;;  %7212 = vmatprep.mubr.msk.f32.mxu0 %vm279_vm1, %v4683_v3  ;;  %v2660_v26 = vadd.f32 %v9698_v12, %v9697_v35  ;;  %v9702_v3 = vld [vmem:[#allocation35_spill] sm:$0xff] }
 0x219   : > { %v6172_v4 = vsel %vm3893_vm9, 1.0, %v9688_v16  ;;  %v3696_v45 = vpop.f32.mrf.mxu0 }
 0x21a   : > { %4044 = vst.msk [vmem:[#allocation3 + $0x69] sm:$0xff] %vm279_vm1, %v6172_v4  ;;  %vm3892_vm10 = vcmp.ge.f32.partialorder %v3860_v54, 1.0  ;;  %v3863_v17 = vadd.f32 %v9016_v57, %v3824_v7  ;;  %v3823_v9 = vadd.f32 %v3696_v45, %v3433_v38  ;;  %v3440_v38 = vadd.f32 %v9701_v47, %v3050_v13  ;;  %v9704_v7 = vld [vmem:[#allocation62_spill] sm:$0xff] }
 0x21b   : > { %v6171_v10 = vsel %vm3892_vm10, 1.0, %v9688_v16  ;;  %v7123_v37 = vpop.f32.mrf.mxu0  ;;  %v4088_v11 = vld [vmem:[#allocation3 + $0x31] ss:$2 sm:$0xff]  ;;  %v2663_v54 = vadd.f32 %v9703_v55, %v9702_v3  ;;  %v3051_v1 = vadd.f32 %v9704_v7, %v2660_v26  ;;  %v9710_v13 = vld [vmem:[#allocation38_spill] sm:$0xff]  ;;  %v9719_v7 = vld [vmem:[#allocation43_spill] sm:$0xff] }
 0x21c   : > { %4043 = vst.msk [vmem:[#allocation3 + $0x61] sm:$0xff] %vm279_vm1, %v6171_v10  ;;  %vm3895_vm11 = vcmp.ge.f32.partialorder %v3863_v17, 1.0  ;;  %v3862_v2 = vadd.f32 %v9016_v57, %v3823_v9  ;;  %v3826_v0 = vadd.f32 %v7123_v37, %v3436_v46  ;;  %7157 = vmatmul.mubr.msk.f32.vlgmr.msra.gmra.mxu1 %vm279_vm1, %v4088_v11  ;;  %v9705_v46 = vld [vmem:[#allocation8_spill] sm:$0xff]  ;;  %v3442_v11 = vadd.f32 %v9003_v42, %v3052_v58  ;;  %v9715_v58 = vld [vmem:[#allocation42_spill] sm:$0xff] }
 0x21d   : > { %v6174_v15 = vsel %vm3895_vm11, 1.0, %v9688_v16  ;;  %v3706_v31 = vpop.f32.mrf.mxu0  ;;  %7169 = vmatpush3.msk.msra.mxu1 %vm563_vm0, %v8890_v63  ;;  %v3439_v17 = vadd.f32 %v9705_v46, %v3049_v27  ;;  %v9707_v10 = vld [vmem:[#allocation36_spill] sm:$0xff]  ;;  %v9714_v27 = vld [vmem:[#allocation65_spill] sm:$0xff] }
 0x21e   : > { %4046 = vst.msk [vmem:[#allocation3 + $0x81] sm:$0xff] %vm279_vm1, %v6174_v15  ;;  %vm3894_vm12 = vcmp.ge.f32.partialorder %v3862_v2, 1.0  ;;  %v3865_v39 = vadd.f32 %v9016_v57, %v3826_v0  ;;  %v3825_v36 = vadd.f32 %v3706_v31, %v3435_v40  ;;  %7182 = vmatprep.subr.msk.mxu1 %vm563_vm0, %v9096_v53  ;;  %v2662_v37 = vadd.f32 %v9707_v10, %v9706_v34  ;;  %v9152_v40 = vpop.f32.mrf.mxu1  ;;  %v9721_v34 = vld [vmem:[#allocation45_spill] sm:$0xff]  ;;  %v9722_v10 = vld [vmem:[#allocation44_spill] sm:$0xff] }
 0x21f   : > { %v6173_v5 = vsel %vm3894_vm12, 1.0, %v9688_v16  ;;  %v7126_v33 = vpop.f32.mrf.mxu0  ;;  %v4685_v63 = vld [vmem:[#allocation3 + $0x49] ss:$2 sm:$0xff] }
 0x220   : > { %4045 = vst.msk [vmem:[#allocation3 + $0x79] sm:$0xff] %vm279_vm1, %v6173_v5  ;;  %vm3897_vm13 = vcmp.ge.f32.partialorder %v3865_v39, 1.0  ;;  %v3864_v61 = vadd.f32 %v9016_v57, %v3825_v36  ;;  %v3828_v49 = vadd.f32 %v7126_v33, %v3438_v59  ;;  %7213 = vmatmul.mubr.msk.f32.vlgmr.msra.gmra.mxu0 %vm279_vm1, %v4685_v63  ;;  %v3054_v59 = vadd.f32 %v9708_v52, %v2663_v54  ;;  %v9712_v33 = vld [vmem:[#allocation30_spill] sm:$0xff]  ;;  %v9713_v63 = vld [vmem:[#allocation40_spill] sm:$0xff]  ;;  %v9718_v54 = vld [vmem:[#allocation31_spill] sm:$0xff] }
 0x221   : > { %v6176_v21 = vsel %vm3897_vm13, 1.0, %v9688_v16  ;;  %v3716_v51 = vpop.f32.mrf.mxu0  ;;  %7239 = vmatpush3.msk.msra.mxu0 %vm563_vm0, %v9700_v43  ;;  %v2665_v39 = vadd.f32 %v9710_v13, %v9709_v18  ;;  %v3441_v36 = vadd.f32 %v9023_v24, %v3051_v1  ;;  %v3053_v8 = vadd.f32 %v9711_v19, %v2662_v37  ;;  %v9169_v24 = vpop.f32.mrf.mxu1  ;;  %v9717_v43 = vld [vmem:[#allocation66_spill] sm:$0xff]  ;;  %v9723_v52 = vld [vmem:[#allocation68_spill] sm:$0xff]  ;;  %v9724_v18 = vld [vmem:[#allocation47_spill] sm:$0xff] }
 0x222   : > { %4048 = vst.msk [vmem:[#allocation3 + $0x99] sm:$0xff] %vm279_vm1, %v6176_v21  ;;  %vm3896_vm14 = vcmp.ge.f32.partialorder %v3864_v61, 1.0  ;;  %v3867_v28 = vadd.f32 %v9016_v57, %v3828_v49  ;;  %v3827_v20 = vadd.f32 %v3716_v51, %v3437_v6  ;;  %7266 = vmatprep.subr.msk.mxu0 %vm563_vm0, %v9122_v44  ;;  %v2664_v62 = vadd.f32 %v9713_v63, %v9712_v33  ;;  %v9716_v21 = vld [vmem:[#allocation41_spill] sm:$0xff]  ;;  %v9725_v13 = vld [vmem:[#allocation46_spill] sm:$0xff]  ;;  %v9728_v33 = vld [vmem:[#allocation48_spill] sm:$0xff] }
 0x223   : > { %v6175_v22 = vsel %vm3896_vm14, 1.0, %v9688_v16  ;;  %v7129_v4 = vpop.f32.mrf.mxu0  ;;  %v4090_v45 = vld [vmem:[#allocation3 + $0x61] ss:$2 sm:$0xff]  ;;  %v3056_v61 = vadd.f32 %v9714_v27, %v2665_v39  ;;  %v3444_v12 = vadd.f32 %v9034_v41, %v3054_v59  ;;  %v2667_v51 = vadd.f32 %v9716_v21, %v9715_v58 }
 0x224   : > { %4047 = vst.msk [vmem:[#allocation3 + $0x91] sm:$0xff] %vm279_vm1, %v6175_v22  ;;  %vm3899_vm15 = vcmp.ge.f32.partialorder %v3867_v28, 1.0  ;;  %v3866_v9 = vadd.f32 %v9016_v57, %v3827_v20  ;;  %v3830_v29 = vadd.f32 %v7129_v4, %v3440_v38  ;;  %7159 = vmatprep.mubr.msk.f32.mxu1 %vm279_vm1, %v4090_v45  ;;  %v3055_v47 = vadd.f32 %v9717_v43, %v2664_v62  ;;  %v9186_v4 = vpop.f32.mrf.mxu1  ;;  %v9729_v62 = vld [vmem:[#allocation71_spill] sm:$0xff]  ;;  %v9731_v58 = vld [vmem:[#allocation50_spill] sm:$0xff] }
 0x225   : > { %v6178_v2 = vsel %vm3899_vm15, 1.0, %v9688_v16  ;;  %v3726_v0 = vpop.f32.mrf.mxu0  ;;  %v3443_v3 = vadd.f32 %v9050_v23, %v3053_v8  ;;  %v2666_v1 = vadd.f32 %v9719_v7, %v9718_v54  ;;  %v3446_v22 = vadd.f32 %v9066_v56, %v3056_v61 }
 0x226   : > { %4050 = vst.msk [vmem:[#allocation3 + $0xb1] sm:$0xff] %vm279_vm1, %v6178_v2  ;;  %vm3898_vm2 = vcmp.ge.f32.partialorder %v3866_v9, 1.0  ;;  %v3869_v15 = vadd.f32 %v9016_v57, %v3830_v29  ;;  %v3829_v31 = vadd.f32 %v3726_v0, %v3439_v17  ;;  %v9720_v17 = vld [vmem:[#allocation67_spill] sm:$0xff]  ;;  %v2669_v37 = vadd.f32 %v9722_v10, %v9721_v34  ;;  %v9738_v10 = vld [vmem:[#allocation73_spill] sm:$0xff] }
 0x227   : > { %v6177_v42 = vsel %vm3898_vm2, 1.0, %v9688_v16  ;;  %v7132_v50 = vpop.f32.mrf.mxu0  ;;  %v4687_v14 = vld [vmem:[#allocation3 + $0x79] ss:$2 sm:$0xff]  ;;  %v3058_v23 = vadd.f32 %v9720_v17, %v2667_v51  ;;  %v3057_v59 = vadd.f32 %v9723_v52, %v2666_v1  ;;  %v2668_v39 = vadd.f32 %v9725_v13, %v9724_v18  ;;  %v9741_v18 = vld [vmem:[#allocation7_spill] sm:$0xff] }
 0x228   : > { %4049 = vst.msk [vmem:[#allocation3 + $0xa9] sm:$0xff] %vm279_vm1, %v6177_v42  ;;  %vm3901_vm3 = vcmp.ge.f32.partialorder %v3869_v15, 1.0  ;;  %v3868_v6 = vadd.f32 %v9016_v57, %v3829_v31  ;;  %v3832_v5 = vadd.f32 %v7132_v50, %v3442_v11  ;;  %7215 = vmatprep.mubr.msk.f32.mxu0 %vm279_vm1, %v4687_v14  ;;  %v3445_v11 = vadd.f32 %v9083_v25, %v3055_v47  ;;  %v3396_v25 = vpop.f32.mrf.mxu1 }
 0x229   : > { %v6180_v49 = vsel %vm3901_vm3, 1.0, %v9688_v16  ;;  %v3736_v35 = vpop.f32.mrf.mxu0  ;;  %v3448_v19 = vadd.f32 %v9105_v48, %v3058_v23  ;;  %v3059_v27 = vadd.f32 %v9729_v62, %v2668_v39 }
 0x22a   : > { %4052 = vst.msk [vmem:[#allocation3 + $0xc9] sm:$0xff] %vm279_vm1, %v6180_v49  ;;  %vm3900_vm4 = vcmp.ge.f32.partialorder %v3868_v6, 1.0  ;;  %v3871_v26 = vadd.f32 %v9016_v57, %v3832_v5  ;;  %v3831_v32 = vadd.f32 %v3736_v35, %v3441_v36  ;;  %v9726_v36 = vld [vmem:[#allocation69_spill] sm:$0xff]  ;;  %v7100_v43 = vpop.f32.mrf.mxu1 }
 0x22b   : > { %v6179_v38 = vsel %vm3900_vm4, 1.0, %v9688_v16  ;;  %v7135_v28 = vpop.f32.mrf.mxu0  ;;  %v4092_v20 = vld [vmem:[#allocation3 + $0x91] ss:$2 sm:$0xff]  ;;  %v3060_v42 = vadd.f32 %v9726_v36, %v2669_v37  ;;  %v3449_v7 = vadd.f32 %v9169_v24, %v3059_v27  ;;  %v9744_v27 = vld [vmem:[#allocation15_spill] sm:$0xff] }
 0x22c   : > { %4051 = vst.msk [vmem:[#allocation3 + $0xc1] sm:$0xff] %vm279_vm1, %v6179_v38  ;;  %vm3903_vm5 = vcmp.ge.f32.partialorder %v3871_v26, 1.0  ;;  %v3870_v41 = vadd.f32 %v9016_v57, %v3831_v32  ;;  %v3834_v55 = vadd.f32 %v7135_v28, %v3444_v12  ;;  %7160 = vmatmul.mubr.msk.f32.gmra.mxu1 %vm279_vm1, %v4092_v20  ;;  %v9727_v5 = vld [vmem:[#allocation49_spill] sm:$0xff]  ;;  %v3447_v12 = vadd.f32 %v9131_v60, %v3057_v59  ;;  %v9730_v32 = vld [vmem:[#allocation4_spill] sm:$0xff]  ;;  %v3406_v24 = vpop.f32.mrf.mxu1 }
 0x22d   : > { %v6182_v45 = vsel %vm3903_vm5, 1.0, %v9688_v16  ;;  %v3746_v46 = vpop.f32.mrf.mxu0  ;;  %v2671_v63 = vadd.f32 %v9728_v33, %v9727_v5  ;;  %v2670_v21 = vadd.f32 %v9731_v58, %v9730_v32  ;;  %v3450_v51 = vadd.f32 %v9152_v40, %v3060_v42  ;;  %v9732_v28 = vld [vmem:[#allocation72_spill] sm:$0xff]  ;;  %v9739_v59 = vld [vmem:[#allocation13_spill] sm:$0xff] }
 0x22e   : > { %4054 = vst.msk [vmem:[#allocation3 + $0xe1] sm:$0xff] %vm279_vm1, %v6182_v45  ;;  %vm3902_vm6 = vcmp.ge.f32.partialorder %v3870_v41, 1.0  ;;  %v3873_v9 = vadd.f32 %v9016_v57, %v3834_v55  ;;  %v3833_v29 = vadd.f32 %v3746_v46, %v3443_v3  ;;  %v9733_v41 = vld [vmem:[#allocation52_spill] sm:$0xff]  ;;  %v9734_v55 = vld [vmem:[#allocation51_spill] sm:$0xff]  ;;  %v9735_v45 = vld [vmem:[#allocation5_spill] sm:$0xff]  ;;  %v7103_v33 = vpop.f32.mrf.mxu1 }
 0x22f   : > { %v6181_v56 = vsel %vm3902_vm6, 1.0, %v9688_v16  ;;  %v7138_v2 = vpop.f32.mrf.mxu0  ;;  %v4689_v0 = vld [vmem:[#allocation3 + $0xa9] ss:$2 sm:$0xff]  ;;  %v3062_v20 = vadd.f32 %v9732_v28, %v2671_v63  ;;  %v2673_v54 = vadd.f32 %v9734_v55, %v9733_v41  ;;  %v3061_v46 = vadd.f32 %v9735_v45, %v2670_v21 }
 0x230   : > { %4053 = vst.msk [vmem:[#allocation3 + $0xd9] sm:$0xff] %vm279_vm1, %v6181_v56  ;;  %vm3905_vm7 = vcmp.ge.f32.partialorder %v3873_v9, 1.0  ;;  %v3872_v15 = vadd.f32 %v9016_v57, %v3833_v29  ;;  %v3836_v31 = vadd.f32 %v7138_v2, %v3446_v22  ;;  %7216 = vmatmul.mubr.msk.f32.gmra.mxu0 %vm279_vm1, %v4689_v0  ;;  %v9736_v9 = vld [vmem:[#allocation54_spill] sm:$0xff]  ;;  %v9737_v29 = vld [vmem:[#allocation53_spill] sm:$0xff] }
 0x231   : > { %v6184_v50 = vsel %vm3905_vm7, 1.0, %v9688_v16  ;;  %v3756_v14 = vpop.f32.mrf.mxu0  ;;  %v2672_v34 = vadd.f32 %v9737_v29, %v9736_v9  ;;  %v3064_v37 = vadd.f32 %v9738_v10, %v2673_v54  ;;  %v3452_v2 = vadd.f32 %v9186_v4, %v3062_v20  ;;  %v4069_v9 = vld [vmem:[#allocation3] ss:$2 sm:$0xff]  ;;  %v4071_v10 = vld [vmem:[#allocation3 + $0x30] ss:$2 sm:$0xff] }
 0x232   : > { %4056 = vst.msk [vmem:[#allocation3 + $0xf9] sm:$0xff] %vm279_vm1, %v6184_v50  ;;  %vm3904_vm8 = vcmp.ge.f32.partialorder %v3872_v15, 1.0  ;;  %v3875_v8 = vadd.f32 %v9016_v57, %v3836_v31  ;;  %v3835_v6 = vadd.f32 %v3756_v14, %v3445_v11  ;;  %v9740_v15 = vld [vmem:[#allocation55_spill] sm:$0xff]  ;;  %v3451_v50 = vadd.f32 %v3396_v25, %v3061_v46 }
 0x233   : > { %v6183_v61 = vsel %vm3904_vm8, 1.0, %v9688_v16  ;;  %v7141_v49 = vpop.f32.mrf.mxu0  ;;  %v4094_v35 = vld [vmem:[#allocation3 + $0xc1] ss:$2 sm:$0xff]  ;;  %v2675_v31 = vadd.f32 %v9740_v15, %v9739_v59  ;;  %v3063_v13 = vadd.f32 %v9741_v18, %v2672_v34  ;;  %v3454_v5 = vadd.f32 %v7100_v43, %v3064_v37  ;;  %v5005_v59 = vld [vmem:[#allocation3 + $0xc0] ss:$2 sm:$0xff] }
 0x234   : > { %4055 = vst.msk [vmem:[#allocation3 + $0xf1] sm:$0xff] %vm279_vm1, %v6183_v61  ;;  %vm3907_vm9 = vcmp.ge.f32.partialorder %v3875_v8, 1.0  ;;  %v3874_v48 = vadd.f32 %v9016_v57, %v3835_v6  ;;  %v3838_v26 = vadd.f32 %v7141_v49, %v3448_v19  ;;  %7162 = vmatprep.mubr.msk.f32.mxu1 %vm279_vm1, %v4094_v35  ;;  %v9742_v19 = vld [vmem:[#allocation57_spill] sm:$0xff]  ;;  %v9743_v8 = vld [vmem:[#allocation56_spill] sm:$0xff] }
 0x235   : > { %v6186_v47 = vsel %vm3907_vm9, 1.0, %v9688_v16  ;;  %v3766_v38 = vpop.f32.mrf.mxu0  ;;  %v2674_v6 = vadd.f32 %v9743_v8, %v9742_v19  ;;  %v3066_v61 = vadd.f32 %v9744_v27, %v2675_v31  ;;  %v3453_v35 = vadd.f32 %v3406_v24, %v3063_v13  ;;  %v4073_v24 = vld [vmem:[#allocation3 + $0x60] ss:$2 sm:$0xff] }
 0x236   : > { %4058 = vst.msk [vmem:[#allocation3 + $0x111] sm:$0xff] %vm279_vm1, %v6186_v47  ;;  %vm3906_vm10 = vcmp.ge.f32.partialorder %v3874_v48, 1.0  ;;  %v3877_v60 = vadd.f32 %v9016_v57, %v3838_v26  ;;  %v3837_v3 = vadd.f32 %v3766_v38, %v3447_v12  ;;  %v4368_v18 = vld [vmem:[#allocation3 + $0x2] ss:$2 sm:$0xff]  ;;  %v4374_v19 = vld [vmem:[#allocation3 + $0x92] ss:$2 sm:$0xff] }
 0x237   : > { %v6185_v1 = vsel %vm3906_vm10, 1.0, %v9688_v16  ;;  %v7144_v40 = vpop.f32.mrf.mxu0  ;;  %v4691_v22 = vld [vmem:[#allocation3 + $0xd9] ss:$2 sm:$0xff]  ;;  %v3065_v32 = vadd.f32 %v9005_v30, %v2674_v6  ;;  %v3456_v38 = vadd.f32 %v7103_v33, %v3066_v61  ;;  %v5317_v8 = vld [vmem:[#allocation3 + $0x62] ss:$2 sm:$0xff] }
 0x238   : > { %4057 = vst.msk [vmem:[#allocation3 + $0x109] sm:$0xff] %vm279_vm1, %v6185_v1  ;;  %vm3909_vm11 = vcmp.ge.f32.partialorder %v3877_v60, 1.0  ;;  %v3876_v17 = vadd.f32 %v9016_v57, %v3837_v3  ;;  %v3840_v23 = vadd.f32 %v7144_v40, %v3450_v51  ;;  %7218 = vmatprep.mubr.msk.f32.mxu0 %vm279_vm1, %v4691_v22  ;;  %v3416_v51 = vpop.f32.mrf.mxu1  ;;  %v4376_v6 = vld [vmem:[#allocation3 + $0xc2] ss:$2 sm:$0xff] }
 0x239   : > { %v6188_v11 = vsel %vm3909_vm11, 1.0, %v9688_v16  ;;  %v3776_v56 = vpop.f32.mrf.mxu0  ;;  %v3455_v41 = vadd.f32 %v3416_v51, %v3065_v32  ;;  %v4529_v32 = vld [vmem:[#allocation3 + $0x78] ss:$2 sm:$0xff] }
 0x23a   : > { %4060 = vst.msk [vmem:[#allocation3 + $0x129] sm:$0xff] %vm279_vm1, %v6188_v11  ;;  %vm3908_vm12 = vcmp.ge.f32.partialorder %v3876_v17, 1.0  ;;  %v3879_v0 = vadd.f32 %v9016_v57, %v3840_v23  ;;  %v3839_v52 = vadd.f32 %v3776_v56, %v3449_v7  ;;  %v4999_v11 = vld [vmem:[#allocation3 + $0x30] ss:$2 sm:$0xff] }
 0x23b   : > { %v6187_v39 = vsel %vm3908_vm12, 1.0, %v9688_v16  ;;  %v7147_v36 = vpop.f32.mrf.mxu0  ;;  %v4096_v42 = vld [vmem:[#allocation3 + $0xf1] ss:$2 sm:$0xff]  ;;  %v4075_v56 = vld [vmem:[#allocation3 + $0x90] ss:$2 sm:$0xff] }
 0x23c   : > { %4059 = vst.msk [vmem:[#allocation3 + $0x121] sm:$0xff] %vm279_vm1, %v6187_v39  ;;  %vm3911_vm13 = vcmp.ge.f32.partialorder %v3879_v0, 1.0  ;;  %v3878_v4 = vadd.f32 %v9016_v57, %v3839_v52  ;;  %v3842_v14 = vadd.f32 %v7147_v36, %v3452_v2  ;;  %7163 = vmatmul.mubr.msk.f32.gmra.mxu1 %vm279_vm1, %v4096_v42  ;;  %v5001_v2 = vld [vmem:[#allocation3 + $0x60] ss:$2 sm:$0xff]  ;;  %v5003_v52 = vld [vmem:[#allocation3 + $0x90] ss:$2 sm:$0xff] }
 0x23d   : > { %v6190_v63 = vsel %vm3911_vm13, 1.0, %v9688_v16  ;;  %v3786_v62 = vpop.f32.mrf.mxu0  ;;  %v4077_v0 = vld [vmem:[#allocation3 + $0xc0] ss:$2 sm:$0xff]  ;;  %v5007_v31 = vld [vmem:[#allocation3 + $0xf0] ss:$2 sm:$0xff] }
 0x23e   : > { %4062 = vst.msk [vmem:[#allocation3 + $0x141] sm:$0xff] %vm279_vm1, %v6190_v63  ;;  %vm3910_vm14 = vcmp.ge.f32.partialorder %v3878_v4, 1.0  ;;  %v3881_v25 = vadd.f32 %v9016_v57, %v3842_v14  ;;  %v3841_v49 = vadd.f32 %v3786_v62, %v3451_v50  ;;  %v4370_v36 = vld [vmem:[#allocation3 + $0x32] ss:$2 sm:$0xff]  ;;  %v6246_v50 = vld [vmem:[%s9487_s3 + $0x14] sm:$0xf] }
 0x23f   : > { %v6189_v12 = vsel %vm3910_vm14, 1.0, %v9688_v16  ;;  %v7150_v48 = vpop.f32.mrf.mxu0  ;;  %v4693_v26 = vld [vmem:[#allocation3 + $0x109] ss:$2 sm:$0xff]  ;;  %v4372_v4 = vld [vmem:[#allocation3 + $0x62] ss:$2 sm:$0xff] }
 0x240   : > { %4061 = vst.msk [vmem:[#allocation3 + $0x139] sm:$0xff] %vm279_vm1, %v6189_v12  ;;  %vm3913_vm15 = vcmp.ge.f32.partialorder %v3881_v25, 1.0  ;;  %v3880_v58 = vadd.f32 %v9016_v57, %v3841_v49  ;;  %v3844_v21 = vadd.f32 %v7150_v48, %v3454_v5  ;;  %7219 = vmatmul.mubr.msk.f32.gmra.mxu0 %vm279_vm1, %v4693_v26  ;;  %v5315_v14 = vld [vmem:[#allocation3 + $0x32] ss:$2 sm:$0xff]  ;;  %v5321_v63 = vld [vmem:[#allocation3 + $0xc2] ss:$2 sm:$0xff] }
 0x241   : > { %v6192_v43 = vsel %vm3913_vm15, 1.0, %v9688_v16  ;;  %v3796_v47 = vpop.f32.mrf.mxu0  ;;  %v5319_v5 = vld [vmem:[#allocation3 + $0x92] ss:$2 sm:$0xff]  ;;  %v6266_v26 = vld [vmem:[%s9487_s3 + $0x1c] sm:$0xf] }
 0x242   : > { %4064 = vst.msk [vmem:[#allocation3 + $0x159] sm:$0xff] %vm279_vm1, %v6192_v43  ;;  %vm3912_vm2 = vcmp.ge.f32.partialorder %v3880_v58, 1.0  ;;  %v3883_v28 = vadd.f32 %v9016_v57, %v3844_v21  ;;  %v3843_v20 = vadd.f32 %v3796_v47, %v3453_v35  ;;  %v4378_v33 = vld [vmem:[#allocation3 + $0xf2] ss:$2 sm:$0xff] }
 0x243   : > { %v6191_v30 = vsel %vm3912_vm2, 1.0, %v9688_v16  ;;  %v7153_v60 = vpop.f32.mrf.mxu0  ;;  %v4098_v3 = vld [vmem:[#allocation3 + $0x121] ss:$2 sm:$0xff]  ;;  %v4081_v15 = vld [vmem:[#allocation3 + $0x120] ss:$2 sm:$0xff] }
 0x244   : > { %4063 = vst.msk [vmem:[#allocation3 + $0x151] sm:$0xff] %vm279_vm1, %v6191_v30  ;;  %vm3915_vm3 = vcmp.ge.f32.partialorder %v3883_v28, 1.0  ;;  %v3882_v55 = vadd.f32 %v9016_v57, %v3843_v20  ;;  %v3846_v54 = vadd.f32 %v7153_v60, %v3456_v38  ;;  %7165 = vmatprep.mubr.msk.f32.mxu1 %vm279_vm1, %v4098_v3  ;;  %v5009_v39 = vld [vmem:[#allocation3 + $0x120] ss:$2 sm:$0xff]  ;;  %v5527_v20 = vld [vmem:[%s9489_s5] sm:$0xf] }
 0x245   : > { %v6194_v7 = vsel %vm3915_vm3, 1.0, %v9688_v16  ;;  %v3806_v1 = vpop.f32.mrf.mxu0  ;;  %v4380_v62 = vld [vmem:[#allocation3 + $0x122] ss:$2 sm:$0xff]  ;;  %v5323_v27 = vld [vmem:[#allocation3 + $0xf2] ss:$2 sm:$0xff] }
 0x246   : > { %4066 = vst.msk [vmem:[#allocation3 + $0x171] sm:$0xff] %vm279_vm1, %v6194_v7  ;;  %vm3914_vm4 = vcmp.ge.f32.partialorder %v3882_v55, 1.0  ;;  %v3885_v40 = vadd.f32 %v9016_v57, %v3846_v54  ;;  %v3845_v22 = vadd.f32 %v3806_v1, %v3455_v41  ;;  %v5325_v25 = vld [vmem:[#allocation3 + $0x122] ss:$2 sm:$0xff]  ;;  %v5157_v7 = vld [vmem:[#allocation3 + $0x31] ss:$2 sm:$0xff] }
 0x247   : > { %v6193_v45 = vsel %vm3914_vm4, 1.0, %v9688_v16  ;;  %v4695_v46 = vld [vmem:[#allocation3 + $0x139] ss:$2 sm:$0xff]  ;;  %v4525_v49 = vld [vmem:[#allocation3 + $0x18] ss:$2 sm:$0xff] }
 0x248   : > { %4065 = vst.msk [vmem:[#allocation3 + $0x169] sm:$0xff] %vm279_vm1, %v6193_v45  ;;  %vm3917_vm5 = vcmp.ge.f32.partialorder %v3885_v40, 1.0  ;;  %v3884_v17 = vadd.f32 %v9016_v57, %v3845_v22  ;;  %7221 = vmatprep.mubr.msk.f32.mxu0 %vm279_vm1, %v4695_v46  ;;  %v6226_v57 = vld [vmem:[%s9487_s3 + $0xc] sm:$0xf]  ;;  %v4527_v12 = vld [vmem:[#allocation3 + $0x48] ss:$2 sm:$0xff] }
 0x249   : > { %v6196_v23 = vsel %vm3917_vm5, 1.0, %v9688_v16  ;;  %v4531_v58 = vld [vmem:[#allocation3 + $0xa8] ss:$2 sm:$0xff]  ;;  %v4533_v21 = vld [vmem:[#allocation3 + $0xd8] ss:$2 sm:$0xff] }
 0x24a   : > { %4068 = vst.msk [vmem:[#allocation3 + $0x189] sm:$0xff] %vm279_vm1, %v6196_v23  ;;  %vm3916_vm6 = vcmp.ge.f32.partialorder %v3884_v17, 1.0  ;;  %v4535_v51 = vld [vmem:[#allocation3 + $0x108] ss:$2 sm:$0xff]  ;;  %v4537_v43 = vld [vmem:[#allocation3 + $0x138] ss:$2 sm:$0xff] }
 0x24b   : > { %v6195_v29 = vsel %vm3916_vm6, 1.0, %v9688_v16  ;;  %v4100_v34 = vld [vmem:[#allocation3 + $0x151] ss:$2 sm:$0xff]  ;;  %v4083_v13 = vld [vmem:[#allocation3 + $0x150] ss:$2 sm:$0xff] }
 0x24c   : > { %4067 = vst.msk [vmem:[#allocation3 + $0x181] sm:$0xff] %vm279_vm1, %v6195_v29  ;;  %7166 = vmatmul.mubr.msk.f32.gmra.mxu1 %vm279_vm1, %v4100_v34  ;;  %v4382_v61 = vld [vmem:[#allocation3 + $0x152] ss:$2 sm:$0xff]  ;;  %v5159_v1 = vld [vmem:[#allocation3 + $0x61] ss:$2 sm:$0xff] }
 0x24d   : > { %7170 = vmatprep.mubr.msk.f32.mxu1 %vm279_vm1, %v4069_v9  ;;  %v5327_v35 = vld [vmem:[#allocation3 + $0x152] ss:$2 sm:$0xff]  ;;  %v5161_v40 = vld [vmem:[#allocation3 + $0x91] ss:$2 sm:$0xff]  ;;  %v5163_v22 = vld [vmem:[#allocation3 + $0xc1] ss:$2 sm:$0xff] }
 0x24e   : > { %v4841_v38 = vld [vmem:[#allocation3 + $0x1a] ss:$2 sm:$0xff]  ;;  %v4843_v28 = vld [vmem:[#allocation3 + $0x4a] ss:$2 sm:$0xff]  ;;  %v5165_v45 = vld [vmem:[#allocation3 + $0xf1] ss:$2 sm:$0xff] }
 0x24f   : > { %v4697_v37 = vld [vmem:[#allocation3 + $0x169] ss:$2 sm:$0xff]  ;;  %v4539_v47 = vld [vmem:[#allocation3 + $0x168] ss:$2 sm:$0xff]  ;;  %v5514_v29 = vld [vmem:[#allocation2 + $0x49] ss:$2 sm:$0xff] }
 0x250   : > { %7171 = vmatmul.mubr.msk.f32.vlgmr.msra.gmra.mxu1 %vm279_vm1, %v4071_v10  ;;  %7222 = vmatmul.mubr.msk.f32.gmra.mxu0 %vm279_vm1, %v4697_v37  ;;  %v4845_v30 = vld [vmem:[#allocation3 + $0x7a] ss:$2 sm:$0xff]  ;;  %v4847_v60 = vld [vmem:[#allocation3 + $0xaa] ss:$2 sm:$0xff]  ;;  %v5167_v46 = vld [vmem:[#allocation3 + $0x121] ss:$2 sm:$0xff] }
 0x251   : > { %7183 = vmatpush3.msk.msra.mxu1 %vm563_vm0, %v9096_v53  ;;  %7173 = vmatprep.mubr.msk.f32.mxu1 %vm279_vm1, %v4073_v24  ;;  %v4079_v53 = vld [vmem:[#allocation3 + $0xf0] ss:$2 sm:$0xff]  ;;  %v5169_v17 = vld [vmem:[#allocation3 + $0x151] ss:$2 sm:$0xff] }
 0x252   : > { %7240 = vmatprep.mubr.msk.f32.mxu0 %vm279_vm1, %v4999_v11  ;;  %7196 = vmatprep.subr.msk.mxu1 %vm563_vm0, %v6226_v57  ;;  %v4849_v3 = vld [vmem:[#allocation3 + $0xda] ss:$2 sm:$0xff]  ;;  %v4851_v41 = vld [vmem:[#allocation3 + $0x10a] ss:$2 sm:$0xff]  ;;  %v5512_v23 = vld [vmem:[#allocation2 + $0x19] ss:$2 sm:$0xff] }
 0x253   : > { %v5013_v42 = vld [vmem:[#allocation3 + $0x180] ss:$2 sm:$0xff]  ;;  %v5171_v9 = vld [vmem:[#allocation3 + $0x181] ss:$2 sm:$0xff] }
 0x254   : > { %7174 = vmatmul.mubr.msk.f32.gmra.mxu1 %vm279_vm1, %v4075_v56  ;;  %7241 = vmatmul.mubr.msk.f32.vlgmr.msra.gmra.mxu0 %vm279_vm1, %v5001_v2  ;;  %v5329_v48 = vld [vmem:[#allocation3 + $0x182] ss:$2 sm:$0xff]  ;;  %v5516_v34 = vld [vmem:[#allocation2 + $0x79] ss:$2 sm:$0xff]  ;;  %v5518_v10 = vld [vmem:[#allocation2 + $0xa9] ss:$2 sm:$0xff] }
 0x255   : > { %7176 = vmatprep.mubr.msk.f32.mxu1 %vm279_vm1, %v4077_v0  ;;  %7243 = vmatprep.mubr.msk.f32.mxu0 %vm279_vm1, %v5003_v52  ;;  %v4853_v55 = vld [vmem:[#allocation3 + $0x13a] ss:$2 sm:$0xff]  ;;  %v4855_v54 = vld [vmem:[#allocation3 + $0x16a] ss:$2 sm:$0xff]  ;;  %v5520_v37 = vld [vmem:[#allocation2 + $0xd9] ss:$2 sm:$0xff] }
 0x256   : > { %7267 = vmatpush3.msk.msra.mxu0 %vm563_vm0, %v9122_v44  ;;  %v5011_v44 = vld [vmem:[#allocation3 + $0x150] ss:$2 sm:$0xff]  ;;  %v5524_v24 = vld [vmem:[#allocation2 + $0x139] ss:$2 sm:$0xff]  ;;  %v5526_v11 = vld [vmem:[#allocation2 + $0x169] ss:$2 sm:$0xff] }
 0x258   : > { %7177 = vmatmul.mubr.msk.f32.gmra.mxu1 %vm279_vm1, %v4079_v53  ;;  %7244 = vmatmul.mubr.msk.f32.gmra.mxu0 %vm279_vm1, %v5005_v59 }
 0x259   : > { %7179 = vmatprep.mubr.msk.f32.mxu1 %vm279_vm1, %v4081_v15  ;;  %7246 = vmatprep.mubr.msk.f32.mxu0 %vm279_vm1, %v5007_v31 }
 0x25c   : > { %7180 = vmatmul.mubr.msk.f32.gmra.mxu1 %vm279_vm1, %v4083_v13  ;;  %7247 = vmatmul.mubr.msk.f32.gmra.mxu0 %vm279_vm1, %v5009_v39 }
 0x25d   : > { %7249 = vmatprep.mubr.msk.f32.mxu0 %vm279_vm1, %v5011_v44  ;;  %7184 = vmatprep.mubr.msk.f32.mxu1 %vm279_vm1, %v4368_v18 }
 0x260   : > { %7185 = vmatmul.mubr.msk.f32.vlgmr.msra.gmra.mxu1 %vm279_vm1, %v4370_v36  ;;  %7250 = vmatmul.mubr.msk.f32.gmra.mxu0 %vm279_vm1, %v5013_v42 }
 0x261   : > { %7197 = vmatpush3.msk.msra.mxu1 %vm563_vm0, %v6226_v57  ;;  %7187 = vmatprep.mubr.msk.f32.mxu1 %vm279_vm1, %v4372_v4  ;;  %v5522_v57 = vld [vmem:[#allocation2 + $0x109] ss:$2 sm:$0xff] }
 0x262   : > { %7268 = vmatprep.mubr.msk.f32.mxu0 %vm279_vm1, %v5315_v14  ;;  %7224 = vmatprep.subr.msk.mxu1 %vm563_vm0, %v6246_v50 }
 0x264   : > { %7188 = vmatmul.mubr.msk.f32.gmra.mxu1 %vm279_vm1, %v4374_v19  ;;  %7269 = vmatmul.mubr.msk.f32.vlgmr.msra.gmra.mxu0 %vm279_vm1, %v5317_v8 }
 0x265   : > { %7190 = vmatprep.mubr.msk.f32.mxu1 %vm279_vm1, %v4376_v6  ;;  %7271 = vmatprep.mubr.msk.f32.mxu0 %vm279_vm1, %v5319_v5 }
 0x268   : > { %7191 = vmatmul.mubr.msk.f32.gmra.mxu1 %vm279_vm1, %v4378_v33  ;;  %7272 = vmatmul.mubr.msk.f32.gmra.mxu0 %vm279_vm1, %v5321_v63 }
 0x269   : > { %7193 = vmatprep.mubr.msk.f32.mxu1 %vm279_vm1, %v4380_v62  ;;  %7274 = vmatprep.mubr.msk.f32.mxu0 %vm279_vm1, %v5323_v27 }
 0x26c   : > { %7194 = vmatmul.mubr.msk.f32.gmra.mxu1 %vm279_vm1, %v4382_v61  ;;  %7275 = vmatmul.mubr.msk.f32.gmra.mxu0 %vm279_vm1, %v5325_v25 }
 0x26d   : > { %7198 = vmatprep.mubr.msk.f32.mxu1 %vm279_vm1, %v4525_v49  ;;  %7277 = vmatprep.mubr.msk.f32.mxu0 %vm279_vm1, %v5327_v35 }
 0x270   : > { %7199 = vmatmul.mubr.msk.f32.vlgmr.msra.gmra.mxu1 %vm279_vm1, %v4527_v12  ;;  %7278 = vmatmul.mubr.msk.f32.gmra.mxu0 %vm279_vm1, %v5329_v48 }
 0x271   : > { %7225 = vmatpush3.msk.msra.mxu1 %vm563_vm0, %v6246_v50  ;;  %7201 = vmatprep.mubr.msk.f32.mxu1 %vm279_vm1, %v4529_v32 }
 0x272   : > { %7252 = vmatprep.subr.msk.mxu1 %vm563_vm0, %v6266_v26 }
 0x274   : > { %7202 = vmatmul.mubr.msk.f32.gmra.mxu1 %vm279_vm1, %v4531_v58 }
 0x275   : > { %7204 = vmatprep.mubr.msk.f32.mxu1 %vm279_vm1, %v4533_v21 }
 0x278   : > { %7205 = vmatmul.mubr.msk.f32.gmra.mxu1 %vm279_vm1, %v4535_v51 }
 0x279   : > { %7207 = vmatprep.mubr.msk.f32.mxu1 %vm279_vm1, %v4537_v43 }
 0x27c   : > { %7208 = vmatmul.mubr.msk.f32.gmra.mxu1 %vm279_vm1, %v4539_v47 }
 0x27d   : > { %7226 = vmatprep.mubr.msk.f32.mxu1 %vm279_vm1, %v4841_v38 }
 0x280   : > { %7227 = vmatmul.mubr.msk.f32.vlgmr.msra.gmra.mxu1 %vm279_vm1, %v4843_v28 }
 0x281   : > { %7253 = vmatpush3.msk.msra.mxu1 %vm563_vm0, %v6266_v26  ;;  %7229 = vmatprep.mubr.msk.f32.mxu1 %vm279_vm1, %v4845_v30 }
 0x282   : > { %7280 = vmatprep.subr.msk.mxu1 %vm563_vm0, %v5527_v20 }
 0x284   : > { %7230 = vmatmul.mubr.msk.f32.gmra.mxu1 %vm279_vm1, %v4847_v60 }
 0x285   : > { %7232 = vmatprep.mubr.msk.f32.mxu1 %vm279_vm1, %v4849_v3 }
 0x288   : > { %7233 = vmatmul.mubr.msk.f32.gmra.mxu1 %vm279_vm1, %v4851_v41 }
 0x289   : > { %7235 = vmatprep.mubr.msk.f32.mxu1 %vm279_vm1, %v4853_v55 }
 0x28c   : > { %7236 = vmatmul.mubr.msk.f32.gmra.mxu1 %vm279_vm1, %v4855_v54 }
 0x28d   : > { %7254 = vmatprep.mubr.msk.f32.mxu1 %vm279_vm1, %v5157_v7 }
 0x290   : > { %7255 = vmatmul.mubr.msk.f32.vlgmr.msra.gmra.mxu1 %vm279_vm1, %v5159_v1 }
 0x291   : > { %7281 = vmatpush3.msk.msra.mxu1 %vm563_vm0, %v5527_v20  ;;  %7257 = vmatprep.mubr.msk.f32.mxu1 %vm279_vm1, %v5161_v40  ;;  %vm5691_vm0 = vcmask 64512  }
 0x294   : > { %7258 = vmatmul.mubr.msk.f32.gmra.mxu1 %vm279_vm1, %v5163_v22 }
 0x295   : > { %7260 = vmatprep.mubr.msk.f32.mxu1 %vm279_vm1, %v5165_v45 }
 0x298   : > { %7261 = vmatmul.mubr.msk.f32.gmra.mxu1 %vm279_vm1, %v5167_v46 }
 0x299   : > { %7263 = vmatprep.mubr.msk.f32.mxu1 %vm279_vm1, %v5169_v17 }
 0x29c   : > { %7264 = vmatmul.mubr.msk.f32.gmra.mxu1 %vm279_vm1, %v5171_v9 }
 0x29d   : > { %7282 = vmatprep.mubr.msk.f32.mxu1 %vm279_vm1, %v5512_v23 }
 0x2a0   : > { %7283 = vmatmul.mubr.msk.f32.vlgmr.msra.gmra.mxu1 %vm279_vm1, %v5514_v29 }
 0x2a1   : > { %7285 = vmatprep.mubr.msk.f32.mxu1 %vm279_vm1, %v5516_v34 }
 0x2a4   : > { %7286 = vmatmul.mubr.msk.f32.gmra.mxu1 %vm279_vm1, %v5518_v10 }
 0x2a5   : > { %7288 = vmatprep.mubr.msk.f32.mxu1 %vm279_vm1, %v5520_v37 }
 0x2a8   : > { %7289 = vmatmul.mubr.msk.f32.gmra.mxu1 %vm279_vm1, %v5522_v57 }
 0x2a9   : > { %7291 = vmatprep.mubr.msk.f32.mxu1 %vm279_vm1, %v5524_v24 }
 0x2ac   : > { %7292 = vmatmul.mubr.msk.f32.gmra.mxu1 %vm279_vm1, %v5526_v11 }
 0x2dc   : > { %v7158_v56 = vpop.f32.mrf.mxu1 }
 0x2de   : > { %v4196_v2 = vpop.f32.mrf.mxu1 }
 0x2e0   : > { %v7214_v59 = vpop.f32.mrf.mxu0 }
 0x2e2   : > { %v9365_v18 = vpop.f32.mrf.mxu0 }
 0x2ec   : > { %v7161_v0 = vpop.f32.mrf.mxu1 }
 0x2ee   : > { %v4206_v52 = vpop.f32.mrf.mxu1 }
 0x2f0   : > { %v9369_v39 = vpop.f32.mrf.mxu0 }
 0x2f2   : > { %v9371_v42 = vpop.f32.mrf.mxu0 }
 0x2fc   : > { %v7164_v53 = vpop.f32.mrf.mxu1 }
 0x2fe   : > { %v4216_v15 = vpop.f32.mrf.mxu1 }
 0x300   : > { %v9373_v4 = vpop.f32.mrf.mxu0 }
 0x302   : > { %v9375_v8 = vpop.f32.mrf.mxu0 }
 0x30c   : > { %v9363_v31 = vpop.f32.mrf.mxu1 }
 0x30e   : > { %v9367_v13 = vpop.f32.mrf.mxu1 }
 0x310   : > { %v7172_v44 = vpop.f32.mrf.mxu1  ;;  %v9377_v5 = vpop.f32.mrf.mxu0 }
 0x311   : > { %v4334_v40 = vadd.f32 %v7172_v44, %v7158_v56 }
 0x312   : > { %v4328_v36 = vpop.f32.mrf.mxu1  ;;  %v9379_v62 = vpop.f32.mrf.mxu0 }
 0x313   : > { %9745 = vst [vmem:[#allocation14_spill] sm:$0xff] %v9379_v62  ;;  %v4329_v45 = vadd.f32 %v4328_v36, %v4196_v2 }
 0x314   : > { %v7175_v50 = vpop.f32.mrf.mxu1  ;;  %v7242_v25 = vpop.f32.mrf.mxu0 }
 0x315   : > { %v4344_v9 = vadd.f32 %v7175_v50, %v7161_v0 }
 0x316   : > { %v4338_v14 = vpop.f32.mrf.mxu1  ;;  %v9381_v12 = vpop.f32.mrf.mxu0 }
 0x317   : > { %v4339_v37 = vadd.f32 %v4338_v14, %v4206_v52 }
 0x318   : > { %v7178_v19 = vpop.f32.mrf.mxu1  ;;  %v9383_v32 = vpop.f32.mrf.mxu0 }
 0x319   : > { %v4354_v11 = vadd.f32 %v7178_v19, %v7164_v53 }
 0x31a   : > { %v4348_v6 = vpop.f32.mrf.mxu1  ;;  %v9385_v51 = vpop.f32.mrf.mxu0 }
 0x31b   : > { %v4349_v62 = vadd.f32 %v4348_v6, %v4216_v15 }
 0x31c   : > { %v7181_v33 = vpop.f32.mrf.mxu1  ;;  %v9387_v38 = vpop.f32.mrf.mxu0 }
 0x31d   : > { %9746 = vst [vmem:[#allocation16_spill] sm:$0xff] %v9387_v38  ;;  %v4364_v0 = vadd.f32 %v7181_v33, %v9363_v31 }
 0x31e   : > { %v4358_v63 = vpop.f32.mrf.mxu1  ;;  %v9389_v30 = vpop.f32.mrf.mxu0 }
 0x31f   : > { %9747 = vst [vmem:[#allocation10_spill] sm:$0xff] %v9389_v30  ;;  %v4359_v19 = vadd.f32 %v4358_v63, %v9367_v13 }
 0x320   : > { %v7186_v27 = vpop.f32.mrf.mxu1  ;;  %v9391_v41 = vpop.f32.mrf.mxu0 }
 0x321   : > { %9748 = vst [vmem:[#allocation9_spill] sm:$0xff] %v9391_v41  ;;  %v4518_v46 = vadd.f32 %v7186_v27, %v4334_v40 }
 0x322   : > { %v4478_v61 = vpop.f32.mrf.mxu1  ;;  %v9393_v7 = vpop.f32.mrf.mxu0 }
 0x323   : > { %9749 = vst [vmem:[#allocation18_spill] sm:$0xff] %v9393_v7  ;;  %v4517_v29 = vadd.f32 %v4478_v61, %v4329_v45 }
 0x324   : > { %v7189_v49 = vpop.f32.mrf.mxu1  ;;  %v7270_v17 = vpop.f32.mrf.mxu0  ;;  %v9751_v40 = vld [vmem:[#allocation16_spill] sm:$0xff] }
 0x325   : > { %v4520_v57 = vadd.f32 %v7189_v49, %v4344_v9 }
 0x326   : > { %v4488_v35 = vpop.f32.mrf.mxu1  ;;  %v5425_v41 = vpop.f32.mrf.mxu0 }
 0x327   : > { %v4519_v16 = vadd.f32 %v4488_v35, %v4339_v37 }
 0x328   : > { %v7192_v48 = vpop.f32.mrf.mxu1  ;;  %v7273_v50 = vpop.f32.mrf.mxu0 }
 0x329   : > { %v4522_v56 = vadd.f32 %v7192_v48, %v4354_v11 }
 0x32a   : > { %v4498_v26 = vpop.f32.mrf.mxu1 }
 0x32b   : > { %v4521_v61 = vadd.f32 %v4498_v26, %v4349_v62 }
 0x32c   : > { %v7195_v58 = vpop.f32.mrf.mxu1 }
 0x32d   : > { %v4524_v35 = vadd.f32 %v7195_v58, %v4364_v0  ;;  %v9406_v58 = vld [vmem:[%s9488_s4] ss:$0 sm:$0xff] }
 0x32e   : > { %v4508_v21 = vpop.f32.mrf.mxu1 }
 0x330   : > { %v7200_v43 = vpop.f32.mrf.mxu1 }
 0x331   : > { %v4675_v34 = vadd.f32 %v7200_v43, %v4518_v46  ;;  %v4523_v43 = vadd.f32 %v4508_v21, %v4359_v19 }
 0x332   : > { %v4635_v47 = vpop.f32.mrf.mxu1 }
 0x333   : > { %v4674_v24 = vadd.f32 %v4635_v47, %v4517_v29  ;;  %v4833_v7 = vadd.f32 %v7214_v59, %v4675_v34  ;;  %v9753_v29 = vld [vmem:[#allocation10_spill] sm:$0xff] }
 0x334   : > { %v7203_v28 = vpop.f32.mrf.mxu1 }
 0x335   : > { %v4677_v38 = vadd.f32 %v7203_v28, %v4520_v57  ;;  %v4832_v27 = vadd.f32 %v9365_v18, %v4674_v24  ;;  %v5435_v18 = vpop.f32.mrf.mxu0 }
 0x336   : > { %v4645_v20 = vpop.f32.mrf.mxu1 }
 0x337   : > { %v4676_v2 = vadd.f32 %v4645_v20, %v4519_v16  ;;  %v4835_v53 = vadd.f32 %v9369_v39, %v4677_v38  ;;  %v7276_v28 = vpop.f32.mrf.mxu0 }
 0x338   : > { %v7206_v60 = vpop.f32.mrf.mxu1 }
 0x339   : > { %v4679_v52 = vadd.f32 %v7206_v60, %v4522_v56  ;;  %v4834_v16 = vadd.f32 %v9371_v42, %v4676_v2  ;;  %v9754_v56 = vld [vmem:[#allocation9_spill] sm:$0xff] }
 0x33a   : > { %v4655_v3 = vpop.f32.mrf.mxu1 }
 0x33b   : > { %v4678_v59 = vadd.f32 %v4655_v3, %v4521_v61  ;;  %v4837_v33 = vadd.f32 %v9373_v4, %v4679_v52  ;;  %v9755_v52 = vld [vmem:[#allocation18_spill] sm:$0xff] }
 0x33c   : > { %v7209_v55 = vpop.f32.mrf.mxu1 }
 0x33d   : > { %v4681_v31 = vadd.f32 %v7209_v55, %v4524_v35  ;;  %v4836_v63 = vadd.f32 %v9375_v8, %v4678_v59 }
 0x33e   : > { %v4665_v54 = vpop.f32.mrf.mxu1 }
 0x33f   : > { %v4680_v38 = vadd.f32 %v4665_v54, %v4523_v43  ;;  %v4839_v60 = vadd.f32 %v9377_v5, %v4681_v31 }
 0x340   : > { %v7228_v1 = vpop.f32.mrf.mxu1 }
 0x341   : > { %v4991_v36 = vadd.f32 %v7228_v1, %v4833_v7  ;;  %v9750_v7 = vld [vmem:[#allocation14_spill] sm:$0xff] }
 0x342   : > { %v4951_v22 = vpop.f32.mrf.mxu1  ;;  %v4838_v1 = vadd.f32 %v9750_v7, %v4680_v38 }
 0x343   : > { %v4990_v49 = vadd.f32 %v4951_v22, %v4832_v27  ;;  %v5149_v48 = vadd.f32 %v7242_v25, %v4991_v36 }
 0x344   : > { %v7231_v23 = vpop.f32.mrf.mxu1 }
 0x345   : > { %v4993_v6 = vadd.f32 %v7231_v23, %v4835_v53  ;;  %v5148_v39 = vadd.f32 %v9381_v12, %v4990_v49 }
 0x346   : > { %v4961_v10 = vpop.f32.mrf.mxu1 }
 0x347   : > { %v4992_v26 = vadd.f32 %v4961_v10, %v4834_v16  ;;  %v5151_v4 = vadd.f32 %v9383_v32, %v4993_v6 }
 0x348   : > { %v7234_v30 = vpop.f32.mrf.mxu1 }
 0x349   : > { %v4995_v13 = vadd.f32 %v7234_v30, %v4837_v33  ;;  %v5150_v55 = vadd.f32 %v9385_v51, %v4992_v26  ;;  %v5445_v51 = vpop.f32.mrf.mxu0 }
 0x34a   : > { %v4971_v44 = vpop.f32.mrf.mxu1 }
 0x34b   : > { %v4994_v20 = vadd.f32 %v4971_v44, %v4836_v63  ;;  %v5153_v5 = vadd.f32 %v9751_v40, %v4995_v13  ;;  %v7279_v0 = vpop.f32.mrf.mxu0 }
 0x34c   : > { %v7237_v14 = vpop.f32.mrf.mxu1 }
 0x34d   : > { %v4997_v54 = vadd.f32 %v7237_v14, %v4839_v60  ;;  %v5152_v34 = vadd.f32 %v9753_v29, %v4994_v20 }
 0x34e   : > { %v4981_v15 = vpop.f32.mrf.mxu1 }
 0x34f   : > { %v4996_v46 = vadd.f32 %v4981_v15, %v4838_v1  ;;  %v5155_v44 = vadd.f32 %v9754_v56, %v4997_v54  ;;  %v6295_v15 = vld [vmem:[%s9490_s6] ss:$0 sm:$0xff] }
 0x350   : > { %v7256_v62 = vpop.f32.mrf.mxu1 }
 0x351   : > { %v5307_v47 = vadd.f32 %v7256_v62, %v5149_v48  ;;  %v5154_v14 = vadd.f32 %v9755_v52, %v4996_v46 }
 0x352   : > { %v5267_v42 = vpop.f32.mrf.mxu1 }
 0x353   : > { %v5465_v25 = vadd.f32 %v7270_v17, %v5307_v47  ;;  %v5306_v21 = vadd.f32 %v5267_v42, %v5148_v39  ;;  %v9752_v17 = vmov 0.0  }
 0x354   : > { %v7259_v12 = vpop.f32.mrf.mxu1 }
 0x355   : > { %v5480_v30 = vadd.f32 %v9406_v58, %v5465_v25  ;;  %v5464_v3 = vadd.f32 %v5425_v41, %v5306_v21  ;;  %v5309_v8 = vadd.f32 %v7259_v12, %v5151_v4 }
 0x356   : > { %v5277_v32 = vpop.f32.mrf.mxu1 }
 0x357   : > { %vm5488_vm1 = vcmp.ge.f32.partialorder %v5480_v30, 1.0  ;;  %v5479_v22 = vadd.f32 %v9406_v58, %v5464_v3  ;;  %v5467_v41 = vadd.f32 %v7273_v50, %v5309_v8  ;;  %v5308_v45 = vadd.f32 %v5277_v32, %v5150_v55 }
 0x358   : > { %v6288_v23 = vsel %vm5488_vm1, 1.0, %v9752_v17  ;;  %v7262_v9 = vpop.f32.mrf.mxu1  ;;  %vm5732_vm1 = vcmask 97344  }
 0x359   : > { %5693 = vst.msk [vmem:[%s9417_s10 + $0x8] sm:$0xff] %vm5691_vm0, %v6288_v23  ;;  %vm5487_vm7 = vcmp.ge.f32.partialorder %v5479_v22, 1.0  ;;  %v5482_v10 = vadd.f32 %v9406_v58, %v5467_v41  ;;  %v5466_v37 = vadd.f32 %v5435_v18, %v5308_v45  ;;  %v5311_v57 = vadd.f32 %v7262_v9, %v5153_v5  ;;  %v5455_v18 = vpop.f32.mrf.mxu0 }
 0x35a   : > { %v6287_v24 = vsel %vm5487_vm7, 1.0, %v9752_v17  ;;  %v5287_v11 = vpop.f32.mrf.mxu1 }
 0x35b   : > { %5692 = vst.msk [vmem:[%s9417_s10] sm:$0xff] %vm5691_vm0, %v6287_v24  ;;  %vm5490_vm8 = vcmp.ge.f32.partialorder %v5482_v10, 1.0  ;;  %v5481_v2 = vadd.f32 %v9406_v58, %v5466_v37  ;;  %v5469_v36 = vadd.f32 %v7276_v28, %v5311_v57  ;;  %v5310_v27 = vadd.f32 %v5287_v11, %v5152_v34 }
 0x35c   : > { %v6290_v50 = vsel %vm5490_vm8, 1.0, %v9752_v17  ;;  %v7265_v61 = vpop.f32.mrf.mxu1 }
 0x35d   : > { %5695 = vst.msk [vmem:[%s9417_s10 + $0x18] sm:$0xff] %vm5691_vm0, %v6290_v50  ;;  %vm5489_vm9 = vcmp.ge.f32.partialorder %v5481_v2, 1.0  ;;  %v5484_v49 = vadd.f32 %v9406_v58, %v5469_v36  ;;  %v5468_v53 = vadd.f32 %v5445_v51, %v5310_v27  ;;  %v5313_v19 = vadd.f32 %v7265_v61, %v5155_v44 }
 0x35e   : > { %v6289_v35 = vsel %vm5489_vm9, 1.0, %v9752_v17  ;;  %v5297_v59 = vpop.f32.mrf.mxu1 }
 0x35f   : > { %5694 = vst.msk [vmem:[%s9417_s10 + $0x10] sm:$0xff] %vm5691_vm0, %v6289_v35  ;;  %vm5492_vm10 = vcmp.ge.f32.partialorder %v5484_v49, 1.0  ;;  %v5483_v6 = vadd.f32 %v9406_v58, %v5468_v53  ;;  %v5471_v16 = vadd.f32 %v7279_v0, %v5313_v19  ;;  %v5312_v48 = vadd.f32 %v5297_v59, %v5154_v14 }
 0x360   : > { %v6292_v43 = vsel %vm5492_vm10, 1.0, %v9752_v17  ;;  %v7284_v31 = vpop.f32.mrf.mxu1 }
 0x361   : > { %5697 = vst.msk [vmem:[%s9417_s10 + $0x28] sm:$0xff] %vm5691_vm0, %v6292_v43  ;;  %vm5491_vm11 = vcmp.ge.f32.partialorder %v5483_v6, 1.0  ;;  %v5486_v33 = vadd.f32 %v9406_v58, %v5471_v16  ;;  %v5470_v62 = vadd.f32 %v5455_v18, %v5312_v48  ;;  %v5634_v26 = vadd.f32 %v7284_v31, %v6295_v15 }
 0x362   : > { %v6291_v47 = vsel %vm5491_vm11, 1.0, %v9752_v17  ;;  %v5628_v39 = vpop.f32.mrf.mxu1 }
 0x363   : > { %5696 = vst.msk [vmem:[%s9417_s10 + $0x20] sm:$0xff] %vm5691_vm0, %v6291_v47  ;;  %vm5494_vm12 = vcmp.ge.f32.partialorder %v5486_v33, 1.0  ;;  %v5485_v38 = vadd.f32 %v9406_v58, %v5470_v62  ;;  %vm5668_vm13 = vcmp.ge.f32.partialorder %v5634_v26, 1.0  ;;  %v5629_v13 = vadd.f32 %v6295_v15, %v5628_v39 }
 0x364   : > { %v6294_v63 = vsel %vm5494_vm12, 1.0, %v9752_v17  ;;  %v7287_v42 = vpop.f32.mrf.mxu1  ;;  %v6306_v4 = vsel %vm5668_vm13, 1.0, %v9752_v17 }
 0x365   : > { %5699 = vst.msk [vmem:[%s9417_s10 + $0x38] sm:$0xff] %vm5691_vm0, %v6294_v63  ;;  %vm5493_vm14 = vcmp.ge.f32.partialorder %v5485_v38, 1.0  ;;  %vm5667_vm15 = vcmp.ge.f32.partialorder %v5629_v13, 1.0  ;;  %v5644_v25 = vadd.f32 %v7287_v42, %v6295_v15 }
 0x366   : > { %v6293_v21 = vsel %vm5493_vm14, 1.0, %v9752_v17  ;;  %v6305_v28 = vsel %vm5667_vm15, 1.0, %v9752_v17  ;;  %v5638_v20 = vpop.f32.mrf.mxu1 }
 0x367   : > { %5698 = vst.msk [vmem:[%s9417_s10 + $0x30] sm:$0xff] %vm5691_vm0, %v6293_v21  ;;  %vm5670_vm2 = vcmp.ge.f32.partialorder %v5644_v25, 1.0  ;;  %v5639_v58 = vadd.f32 %v6295_v15, %v5638_v20  ;;  %v7304_v60 = vpack.i.bf16 %v6306_v4, %v6305_v28 }
 0x368   : > { %v7290_v12 = vpop.f32.mrf.mxu1  ;;  %v6308_v3 = vsel %vm5670_vm2, 1.0, %v9752_v17 }
 0x369   : > { %vm5669_vm3 = vcmp.ge.f32.partialorder %v5639_v58, 1.0  ;;  %v5654_v30 = vadd.f32 %v7290_v12, %v6295_v15  ;;  %7305 = vrot.lane.b32.xlu0 %v7304_v60, %s7333_s13 }
 0x36a   : > { %v6307_v8 = vsel %vm5669_vm3, 1.0, %v9752_v17  ;;  %v5648_v55 = vpop.f32.mrf.mxu1 }
 0x36b   : > { %v7309_v54 = vpack.i.bf16 %v6308_v3, %v6307_v8  ;;  %vm5672_vm4 = vcmp.ge.f32.partialorder %v5654_v30, 1.0  ;;  %v5649_v7 = vadd.f32 %v6295_v15, %v5648_v55 }
 0x36c   : > { %v7293_v1 = vpop.f32.mrf.mxu1  ;;  %v6310_v40 = vsel %vm5672_vm4, 1.0, %v9752_v17 }
 0x36d   : > { %vm5671_vm5 = vcmp.ge.f32.partialorder %v5649_v7, 1.0  ;;  %v5664_v32 = vadd.f32 %v7293_v1, %v6295_v15  ;;  %7310 = vrot.lane.b32.xlu0 %v7309_v54, %s7333_s13 }
 0x36e   : > { %v6309_v5 = vsel %vm5671_vm5, 1.0, %v9752_v17  ;;  %v5658_v22 = vpop.f32.mrf.mxu1 }
 0x36f   : > { %vm5674_vm6 = vcmp.ge.f32.partialorder %v5664_v32, 1.0  ;;  %v5659_v41 = vadd.f32 %v6295_v15, %v5658_v22  ;;  %v7314_v45 = vpack.i.bf16 %v6310_v40, %v6309_v5 }
 0x370   : > { %v6312_v51 = vsel %vm5674_vm6, 1.0, %v9752_v17 }
 0x371   : > { %vm5673_vm0 = vcmp.ge.f32.partialorder %v5659_v41, 1.0  ;;  %7315 = vrot.lane.b32.xlu1 %v7314_v45, %s7333_s13 }
 0x372   : > { %v6311_v46 = vsel %vm5673_vm0, 1.0, %v9752_v17 }
 0x373   : > { %v7319_v23 = vpack.i.bf16 %v6312_v51, %v6311_v46 }
 0x375   : > { %7320 = vrot.lane.b32.xlu1 %v7319_v23, %s7333_s13 }
 0x3db   : > { %v7306_v9 = vpop.permute.xlu0 %7305 }
 0x3dc   : > { %v7308_v29 = vunpack.i.h.bf16 %v7306_v9  ;;  %v7307_v34 = vunpack.i.l.bf16 %v7306_v9 }
 0x3de   : > { %5734 = vst.msk [vmem:[%s9417_s10 + $0x8] sm:$0xff] %vm5732_vm1, %v7308_v29  ;;  %5733 = vst.msk [vmem:[%s9417_s10] sm:$0xff] %vm5732_vm1, %v7307_v34 }
 0x3df   : > { %v7311_v10 = vpop.permute.xlu0 %7310 }
 0x3e0   : > { %v7313_v37 = vunpack.i.h.bf16 %v7311_v10  ;;  %v7312_v57 = vunpack.i.l.bf16 %v7311_v10 }
 0x3e2   : > { %5736 = vst.msk [vmem:[%s9417_s10 + $0x18] sm:$0xff] %vm5732_vm1, %v7313_v37  ;;  %5735 = vst.msk [vmem:[%s9417_s10 + $0x10] sm:$0xff] %vm5732_vm1, %v7312_v57 }
 0x3e3   : > { %v7316_v17 = vpop.permute.xlu1 %7315 }
 0x3e4   : > { %v7318_v24 = vunpack.i.h.bf16 %v7316_v17  ;;  %v7317_v11 = vunpack.i.l.bf16 %v7316_v17 }
 0x3e6   : > { %5738 = vst.msk [vmem:[%s9417_s10 + $0x28] sm:$0xff] %vm5732_vm1, %v7318_v24  ;;  %5737 = vst.msk [vmem:[%s9417_s10 + $0x20] sm:$0xff] %vm5732_vm1, %v7317_v11 }
 0x3e7   : > { %v7321_v56 = vpop.permute.xlu1 %7320 }
 0x3e8   : > { %v7323_v44 = vunpack.i.h.bf16 %v7321_v56  ;;  %v7322_v2 = vunpack.i.l.bf16 %v7321_v56 }
 0x3ea   : > { %5740 = vst.msk [vmem:[%s9417_s10 + $0x38] sm:$0xff] %vm5732_vm1, %v7323_v44  ;;  %5739 = vst.msk [vmem:[%s9417_s10 + $0x30] sm:$0xff] %vm5732_vm1, %v7322_v2 }
 0x3eb PF: > { %s17_s24 = sadd.s32 1, %s7330_s24  }
 0x3ec   : > { %p14_p4 = scmp.ge.s32.totalorder %s17_s24, 4  }
 0x3ee   :  { %16 = sbr.rel (!%p14_p4) target bundleno = 1 (0x1), region = 175 }

</bundles_post_ra>
